<compile_context>
chip_gen: v7x
topology: tpu7x:2x2x1
jax: 0.10.0
libtpu: 0.0.40
codegen_flags: <defaults>
</compile_context>

<pallas_src>
import functools

import jax
import jax.numpy as jnp
from jax import random
from jax.experimental import pallas as pl
from jax.experimental.pallas import tpu as pltpu

BN_EPS = 1e-3


def _choose_tn(cout):
    """Cout tile: multiples of 128 when possible, else full-extent block."""
    if cout % 256 == 0:
        return 256
    if cout % 128 == 0:
        return 128
    return cout  # block dim == full array dim is always legal


# --------------------------------------------------------------------------- #
# Pallas kernel: direct 3x3 conv + (folded BN) bias + SiLU (+ residual add)
# --------------------------------------------------------------------------- #
def _conv3x3_kernel(*refs, H, W, add):
    """One image x one Cout tile.

    x_ref : (1, H+2, W+2, Cin)  bf16   zero-padded input slab
    w_ref : (9, Cin, TN)        bf16   per-tap weights (BN folded in)
    b_ref : (1, TN)             f32    folded BN bias
    r_ref : (1, H, W, TN)       f32    residual (only when add=True)
    o_ref : (1, H, W, TN)              output
    """
    if add:
        x_ref, w_ref, b_ref, r_ref, o_ref = refs
    else:
        x_ref, w_ref, b_ref, o_ref = refs

    cin = x_ref.shape[3]
    tn = o_ref.shape[3]

    x = x_ref[0]                                     # (H+2, W+2, Cin) bf16
    acc = jnp.zeros((H * W, tn), jnp.float32)        # f32 accumulator
    for dh in range(3):                              # 9 taps, bf16 MXU matmuls
        for dw in range(3):
            patch = x[dh:dh + H, dw:dw + W, :].reshape(H * W, cin)
            acc = acc + jnp.dot(patch, w_ref[dh * 3 + dw],
                                preferred_element_type=jnp.float32)

    y = acc + b_ref[...]                             # bias, f32
    y = y * (1.0 / (1.0 + jnp.exp(-y)))              # SiLU, f32 epilogue
    if add:
        y = y + r_ref[0].reshape(H * W, tn).astype(jnp.float32)
    o_ref[0] = y.reshape(H, W, tn).astype(o_ref.dtype)


def conv3x3_bn_silu(x_nhwc, p, residual=None, out_dtype=jnp.float32):
    """x: (N,H,W,Cin).  p['w']: (9,Cin,Cout) bf16, p['b']: (1,Cout) f32."""
    n, h, w, cin = x_nhwc.shape
    cout = p['w'].shape[2]
    tn = _choose_tn(cout)
    add = residual is not None

    # Only plain-JAX glue: spatial zero-pad + bf16 cast (no im2col in HBM).
    xp = jnp.pad(x_nhwc.astype(jnp.bfloat16), ((0, 0), (1, 1), (1, 1), (0, 0)))

    in_specs = [
        pl.BlockSpec((1, h + 2, w + 2, cin), lambda b, j: (b, 0, 0, 0)),
        pl.BlockSpec((9, cin, tn), lambda b, j: (0, 0, j)),
        pl.BlockSpec((1, tn), lambda b, j: (0, j)),
    ]
    args = [xp, p['w'], p['b']]
    if add:
        in_specs.append(pl.BlockSpec((1, h, w, tn), lambda b, j: (b, 0, 0, j)))
        args.append(residual)

    return pl.pallas_call(
        functools.partial(_conv3x3_kernel, H=h, W=w, add=add),
        out_shape=jax.ShapeDtypeStruct((n, h, w, cout), out_dtype),
        grid_spec=pltpu.PrefetchScalarGridSpec(
            num_scalar_prefetch=0,
            grid=(n, cout // tn),
            in_specs=in_specs,
            out_specs=pl.BlockSpec((1, h, w, tn), lambda b, j: (b, 0, 0, j)),
        ),
        compiler_params=pltpu.CompilerParams(
            dimension_semantics=("parallel", "parallel")),
    )(*args)


# --------------------------------------------------------------------------- #
# Parameters (random init; BatchNorm in eval mode folded into conv, bf16)
# --------------------------------------------------------------------------- #
def make_conv_params(key, cin, cout):
    kw, kg = random.split(key)
    w = 0.05 * random.normal(kw, (3, 3, cin, cout), dtype=jnp.float32)
    gamma = 1.0 + 0.02 * random.normal(kg, (cout,), dtype=jnp.float32)
    beta = jnp.zeros((cout,), jnp.float32)
    mean = jnp.zeros((cout,), jnp.float32)
    var = jnp.ones((cout,), jnp.float32)
    scale = gamma / jnp.sqrt(var + BN_EPS)
    wf = (w * scale).reshape(9, cin, cout).astype(jnp.bfloat16)   # once, here
    bf = (beta - mean * scale).reshape(1, cout).astype(jnp.float32)
    return dict(w=wf, b=bf)


def make_bottleneck_params(key, c1, c2, shortcut=True, e=0.5):
    c_ = int(c2 * e)
    k1, k2 = random.split(key)
    return dict(cv1=make_conv_params(k1, c1, c_),
                cv2=make_conv_params(k2, c_, c2),
                add=bool(shortcut and c1 == c2))


# --------------------------------------------------------------------------- #
# Forward (NCHW in / NCHW out, like the PyTorch module)
# --------------------------------------------------------------------------- #
def make_forward(params):
    cv1, cv2, add = params['cv1'], params['cv2'], params['add']

    def fwd(x_nchw):
        x = jnp.transpose(x_nchw, (0, 2, 3, 1)).astype(jnp.float32)  # NHWC
        y1 = conv3x3_bn_silu(x, cv1, out_dtype=jnp.bfloat16)         # cv1
        y2 = conv3x3_bn_silu(y1, cv2,                                # cv2 (+x)
                             residual=(x if add else None),
                             out_dtype=jnp.float32)
        return jnp.transpose(y2, (0, 3, 1, 2))                       # NCHW

    return jax.jit(fwd)


# --------------------------------------------------------------------------- #
if __name__ == "__main__":
    key = random.PRNGKey(0)
    pkey, xkey = random.split(key)

    c1 = c2 = 64                                  # shortcut path active
    params = make_bottleneck_params(pkey, c1, c2, shortcut=True)
    x = random.normal(xkey, (2, c1, 16, 16), dtype=jnp.float32)

    fwd = make_forward(params)
    out = jax.block_until_ready(fwd(x))

    assert out.shape == (2, c2, 16, 16), out.shape
    assert bool(jnp.all(jnp.isfinite(out)))
    print("KERNEL_OK")
</pallas_src>

<mosaic_0001>
module attributes {stable_mosaic.version = 11 : i64} {
  func.func @_conv3x3_kernel(%arg0: i32, %arg1: i32, %arg2: memref<1x18x18x64xbf16, #tpu.memory_space<vmem>>, %arg3: memref<9x64x32xbf16, #tpu.memory_space<vmem>>, %arg4: memref<1x32xf32, #tpu.memory_space<vmem>>, %arg5: memref<1x16x16x32xbf16, #tpu.memory_space<vmem>>) attributes {dimension_semantics = [#tpu.dimension_semantics<parallel>, #tpu.dimension_semantics<parallel>], iteration_bounds = array<i64: 2, 1>, scalar_prefetch = 0 : i64, scratch_operands = 0 : i64, tpu.core_type = #tpu.core_type<tc>, window_params = [{transform_indices = @transform_0, window_bounds = array<i64: 1, 18, 18, 64>}, {transform_indices = @transform_1, window_bounds = array<i64: 9, 64, 32>}, {transform_indices = @transform_2, window_bounds = array<i64: 1, 32>}, {transform_indices = @transform_3, window_bounds = array<i64: 1, 16, 16, 32>}]} {
    %c0 = arith.constant 0 : index
    %c0_0 = arith.constant 0 : index
    %c0_1 = arith.constant 0 : index
    %c0_2 = arith.constant 0 : index
    %0 = vector.load %arg2[%c0, %c0_0, %c0_1, %c0_2] : memref<1x18x18x64xbf16, #tpu.memory_space<vmem>>, vector<1x18x18x64xbf16>
    %1 = vector.shape_cast %0 : vector<1x18x18x64xbf16> to vector<18x18x64xbf16>
    %cst = arith.constant 0.000000e+00 : f32
    %2 = vector.broadcast %cst : f32 to vector<256x32xf32>
    %3 = vector.extract_strided_slice %1 {offsets = [0, 0, 0], sizes = [16, 16, 64], strides = [1, 1, 1]} : vector<18x18x64xbf16> to vector<16x16x64xbf16>
    %4 = vector.shape_cast %3 : vector<16x16x64xbf16> to vector<256x64xbf16>
    %c0_3 = arith.constant 0 : index
    %c0_4 = arith.constant 0 : index
    %c0_5 = arith.constant 0 : index
    %5 = vector.load %arg3[%c0_3, %c0_4, %c0_5] : memref<9x64x32xbf16, #tpu.memory_space<vmem>>, vector<1x64x32xbf16>
    %6 = vector.shape_cast %5 : vector<1x64x32xbf16> to vector<64x32xbf16>
    %cst_6 = arith.constant dense<0.000000e+00> : vector<256x32xf32>
    %7 = tpu.matmul %4, %6, %cst_6 {dimension_numbers = #tpu.dot_dimension_numbers<[1], [0], [0], [1], [0, 0, 1, 1], [], []>} : vector<256x64xbf16>, vector<64x32xbf16>, vector<256x32xf32> -> vector<256x32xf32>
    %8 = arith.addf %2, %7 : vector<256x32xf32>
    %9 = vector.extract_strided_slice %1 {offsets = [0, 1, 0], sizes = [16, 16, 64], strides = [1, 1, 1]} : vector<18x18x64xbf16> to vector<16x16x64xbf16>
    %10 = vector.shape_cast %9 : vector<16x16x64xbf16> to vector<256x64xbf16>
    %c1 = arith.constant 1 : index
    %c0_7 = arith.constant 0 : index
    %c0_8 = arith.constant 0 : index
    %11 = vector.load %arg3[%c1, %c0_7, %c0_8] : memref<9x64x32xbf16, #tpu.memory_space<vmem>>, vector<1x64x32xbf16>
    %12 = vector.shape_cast %11 : vector<1x64x32xbf16> to vector<64x32xbf16>
    %cst_9 = arith.constant dense<0.000000e+00> : vector<256x32xf32>
    %13 = tpu.matmul %10, %12, %cst_9 {dimension_numbers = #tpu.dot_dimension_numbers<[1], [0], [0], [1], [0, 0, 1, 1], [], []>} : vector<256x64xbf16>, vector<64x32xbf16>, vector<256x32xf32> -> vector<256x32xf32>
    %14 = arith.addf %8, %13 : vector<256x32xf32>
    %15 = vector.extract_strided_slice %1 {offsets = [0, 2, 0], sizes = [16, 16, 64], strides = [1, 1, 1]} : vector<18x18x64xbf16> to vector<16x16x64xbf16>
    %16 = vector.shape_cast %15 : vector<16x16x64xbf16> to vector<256x64xbf16>
    %c2 = arith.constant 2 : index
    %c0_10 = arith.constant 0 : index
    %c0_11 = arith.constant 0 : index
    %17 = vector.load %arg3[%c2, %c0_10, %c0_11] : memref<9x64x32xbf16, #tpu.memory_space<vmem>>, vector<1x64x32xbf16>
    %18 = vector.shape_cast %17 : vector<1x64x32xbf16> to vector<64x32xbf16>
    %cst_12 = arith.constant dense<0.000000e+00> : vector<256x32xf32>
    %19 = tpu.matmul %16, %18, %cst_12 {dimension_numbers = #tpu.dot_dimension_numbers<[1], [0], [0], [1], [0, 0, 1, 1], [], []>} : vector<256x64xbf16>, vector<64x32xbf16>, vector<256x32xf32> -> vector<256x32xf32>
    %20 = arith.addf %14, %19 : vector<256x32xf32>
    %21 = vector.extract_strided_slice %1 {offsets = [1, 0, 0], sizes = [16, 16, 64], strides = [1, 1, 1]} : vector<18x18x64xbf16> to vector<16x16x64xbf16>
    %22 = vector.shape_cast %21 : vector<16x16x64xbf16> to vector<256x64xbf16>
    %c3 = arith.constant 3 : index
    %c0_13 = arith.constant 0 : index
    %c0_14 = arith.constant 0 : index
    %23 = vector.load %arg3[%c3, %c0_13, %c0_14] : memref<9x64x32xbf16, #tpu.memory_space<vmem>>, vector<1x64x32xbf16>
    %24 = vector.shape_cast %23 : vector<1x64x32xbf16> to vector<64x32xbf16>
    %cst_15 = arith.constant dense<0.000000e+00> : vector<256x32xf32>
    %25 = tpu.matmul %22, %24, %cst_15 {dimension_numbers = #tpu.dot_dimension_numbers<[1], [0], [0], [1], [0, 0, 1, 1], [], []>} : vector<256x64xbf16>, vector<64x32xbf16>, vector<256x32xf32> -> vector<256x32xf32>
    %26 = arith.addf %20, %25 : vector<256x32xf32>
    %27 = vector.extract_strided_slice %1 {offsets = [1, 1, 0], sizes = [16, 16, 64], strides = [1, 1, 1]} : vector<18x18x64xbf16> to vector<16x16x64xbf16>
    %28 = vector.shape_cast %27 : vector<16x16x64xbf16> to vector<256x64xbf16>
    %c4 = arith.constant 4 : index
    %c0_16 = arith.constant 0 : index
    %c0_17 = arith.constant 0 : index
    %29 = vector.load %arg3[%c4, %c0_16, %c0_17] : memref<9x64x32xbf16, #tpu.memory_space<vmem>>, vector<1x64x32xbf16>
    %30 = vector.shape_cast %29 : vector<1x64x32xbf16> to vector<64x32xbf16>
    %cst_18 = arith.constant dense<0.000000e+00> : vector<256x32xf32>
    %31 = tpu.matmul %28, %30, %cst_18 {dimension_numbers = #tpu.dot_dimension_numbers<[1], [0], [0], [1], [0, 0, 1, 1], [], []>} : vector<256x64xbf16>, vector<64x32xbf16>, vector<256x32xf32> -> vector<256x32xf32>
    %32 = arith.addf %26, %31 : vector<256x32xf32>
    %33 = vector.extract_strided_slice %1 {offsets = [1, 2, 0], sizes = [16, 16, 64], strides = [1, 1, 1]} : vector<18x18x64xbf16> to vector<16x16x64xbf16>
    %34 = vector.shape_cast %33 : vector<16x16x64xbf16> to vector<256x64xbf16>
    %c5 = arith.constant 5 : index
    %c0_19 = arith.constant 0 : index
    %c0_20 = arith.constant 0 : index
    %35 = vector.load %arg3[%c5, %c0_19, %c0_20] : memref<9x64x32xbf16, #tpu.memory_space<vmem>>, vector<1x64x32xbf16>
    %36 = vector.shape_cast %35 : vector<1x64x32xbf16> to vector<64x32xbf16>
    %cst_21 = arith.constant dense<0.000000e+00> : vector<256x32xf32>
    %37 = tpu.matmul %34, %36, %cst_21 {dimension_numbers = #tpu.dot_dimension_numbers<[1], [0], [0], [1], [0, 0, 1, 1], [], []>} : vector<256x64xbf16>, vector<64x32xbf16>, vector<256x32xf32> -> vector<256x32xf32>
    %38 = arith.addf %32, %37 : vector<256x32xf32>
    %39 = vector.extract_strided_slice %1 {offsets = [2, 0, 0], sizes = [16, 16, 64], strides = [1, 1, 1]} : vector<18x18x64xbf16> to vector<16x16x64xbf16>
    %40 = vector.shape_cast %39 : vector<16x16x64xbf16> to vector<256x64xbf16>
    %c6 = arith.constant 6 : index
    %c0_22 = arith.constant 0 : index
    %c0_23 = arith.constant 0 : index
    %41 = vector.load %arg3[%c6, %c0_22, %c0_23] : memref<9x64x32xbf16, #tpu.memory_space<vmem>>, vector<1x64x32xbf16>
    %42 = vector.shape_cast %41 : vector<1x64x32xbf16> to vector<64x32xbf16>
    %cst_24 = arith.constant dense<0.000000e+00> : vector<256x32xf32>
    %43 = tpu.matmul %40, %42, %cst_24 {dimension_numbers = #tpu.dot_dimension_numbers<[1], [0], [0], [1], [0, 0, 1, 1], [], []>} : vector<256x64xbf16>, vector<64x32xbf16>, vector<256x32xf32> -> vector<256x32xf32>
    %44 = arith.addf %38, %43 : vector<256x32xf32>
    %45 = vector.extract_strided_slice %1 {offsets = [2, 1, 0], sizes = [16, 16, 64], strides = [1, 1, 1]} : vector<18x18x64xbf16> to vector<16x16x64xbf16>
    %46 = vector.shape_cast %45 : vector<16x16x64xbf16> to vector<256x64xbf16>
    %c7 = arith.constant 7 : index
    %c0_25 = arith.constant 0 : index
    %c0_26 = arith.constant 0 : index
    %47 = vector.load %arg3[%c7, %c0_25, %c0_26] : memref<9x64x32xbf16, #tpu.memory_space<vmem>>, vector<1x64x32xbf16>
    %48 = vector.shape_cast %47 : vector<1x64x32xbf16> to vector<64x32xbf16>
    %cst_27 = arith.constant dense<0.000000e+00> : vector<256x32xf32>
    %49 = tpu.matmul %46, %48, %cst_27 {dimension_numbers = #tpu.dot_dimension_numbers<[1], [0], [0], [1], [0, 0, 1, 1], [], []>} : vector<256x64xbf16>, vector<64x32xbf16>, vector<256x32xf32> -> vector<256x32xf32>
    %50 = arith.addf %44, %49 : vector<256x32xf32>
    %51 = vector.extract_strided_slice %1 {offsets = [2, 2, 0], sizes = [16, 16, 64], strides = [1, 1, 1]} : vector<18x18x64xbf16> to vector<16x16x64xbf16>
    %52 = vector.shape_cast %51 : vector<16x16x64xbf16> to vector<256x64xbf16>
    %c8 = arith.constant 8 : index
    %c0_28 = arith.constant 0 : index
    %c0_29 = arith.constant 0 : index
    %53 = vector.load %arg3[%c8, %c0_28, %c0_29] : memref<9x64x32xbf16, #tpu.memory_space<vmem>>, vector<1x64x32xbf16>
    %54 = vector.shape_cast %53 : vector<1x64x32xbf16> to vector<64x32xbf16>
    %cst_30 = arith.constant dense<0.000000e+00> : vector<256x32xf32>
    %55 = tpu.matmul %52, %54, %cst_30 {dimension_numbers = #tpu.dot_dimension_numbers<[1], [0], [0], [1], [0, 0, 1, 1], [], []>} : vector<256x64xbf16>, vector<64x32xbf16>, vector<256x32xf32> -> vector<256x32xf32>
    %56 = arith.addf %50, %55 : vector<256x32xf32>
    %c0_31 = arith.constant 0 : index
    %c0_32 = arith.constant 0 : index
    %57 = vector.load %arg4[%c0_31, %c0_32] : memref<1x32xf32, #tpu.memory_space<vmem>>, vector<1x32xf32>
    %58 = vector.broadcast %57 : vector<1x32xf32> to vector<256x32xf32>
    %59 = arith.addf %56, %58 : vector<256x32xf32>
    %cst_33 = arith.constant 0.000000e+00 : f32
    %60 = vector.broadcast %cst_33 : f32 to vector<256x32xf32>
    %61 = arith.subf %60, %59 : vector<256x32xf32>
    %62 = math.exp %61 : vector<256x32xf32>
    %cst_34 = arith.constant 1.000000e+00 : f32
    %63 = vector.broadcast %cst_34 : f32 to vector<256x32xf32>
    %64 = arith.addf %63, %62 : vector<256x32xf32>
    %cst_35 = arith.constant 1.000000e+00 : f32
    %65 = vector.broadcast %cst_35 : f32 to vector<256x32xf32>
    %66 = arith.divf %65, %64 : vector<256x32xf32>
    %67 = arith.mulf %59, %66 : vector<256x32xf32>
    %68 = vector.shape_cast %67 : vector<256x32xf32> to vector<16x16x32xf32>
    %69 = arith.truncf %68 : vector<16x16x32xf32> to vector<16x16x32xbf16>
    %c0_36 = arith.constant 0 : index
    %c0_37 = arith.constant 0 : index
    %c0_38 = arith.constant 0 : index
    %c0_39 = arith.constant 0 : index
    %70 = vector.load %arg5[%c0_36, %c0_37, %c0_38, %c0_39] : memref<1x16x16x32xbf16, #tpu.memory_space<vmem>>, vector<1x16x16x32xbf16>
    %71 = vector.shape_cast %70 : vector<1x16x16x32xbf16> to vector<16x16x32xbf16>
    %72 = vector.shape_cast %69 : vector<16x16x32xbf16> to vector<1x16x16x32xbf16>
    tpu.vector_store %arg5[%c0_36, %c0_37, %c0_38, %c0_39], %72 {strides = array<i32>} : memref<1x16x16x32xbf16, #tpu.memory_space<vmem>>, vector<1x16x16x32xbf16>,
    return
  }
  func.func @transform_0(%arg0: i32, %arg1: i32) -> (i32, i32, i32, i32) {
    %c0_i32 = arith.constant 0 : i32
    %c0_i32_0 = arith.constant 0 : i32
    %c0_i32_1 = arith.constant 0 : i32
    %c0_i32_2 = arith.constant 0 : i32
    return %arg0, %c0_i32, %c0_i32_0, %c0_i32_1 : i32, i32, i32, i32
  }
  func.func @transform_1(%arg0: i32, %arg1: i32) -> (i32, i32, i32) {
    %c0_i32 = arith.constant 0 : i32
    %c0_i32_0 = arith.constant 0 : i32
    %c0_i32_1 = arith.constant 0 : i32
    return %c0_i32, %c0_i32_0, %arg1 : i32, i32, i32
  }
  func.func @transform_2(%arg0: i32, %arg1: i32) -> (i32, i32) {
    %c0_i32 = arith.constant 0 : i32
    %c0_i32_0 = arith.constant 0 : i32
    return %c0_i32, %arg1 : i32, i32
  }
  func.func @transform_3(%arg0: i32, %arg1: i32) -> (i32, i32, i32, i32) {
    %c0_i32 = arith.constant 0 : i32
    %c0_i32_0 = arith.constant 0 : i32
    %c0_i32_1 = arith.constant 0 : i32
    return %arg0, %c0_i32, %c0_i32_0, %arg1 : i32, i32, i32, i32
  }
}

module attributes {stable_mosaic.version = 11 : i64} {
  func.func @_conv3x3_kernel(%arg0: i32, %arg1: i32, %arg2: memref<1x18x18x32xbf16, #tpu.memory_space<vmem>>, %arg3: memref<9x32x64xbf16, #tpu.memory_space<vmem>>, %arg4: memref<1x64xf32, #tpu.memory_space<vmem>>, %arg5: memref<1x16x16x64xf32, #tpu.memory_space<vmem>>, %arg6: memref<1x16x16x64xf32, #tpu.memory_space<vmem>>) attributes {dimension_semantics = [#tpu.dimension_semantics<parallel>, #tpu.dimension_semantics<parallel>], iteration_bounds = array<i64: 2, 1>, scalar_prefetch = 0 : i64, scratch_operands = 0 : i64, tpu.core_type = #tpu.core_type<tc>, window_params = [{transform_indices = @transform_0, window_bounds = array<i64: 1, 18, 18, 32>}, {transform_indices = @transform_1, window_bounds = array<i64: 9, 32, 64>}, {transform_indices = @transform_2, window_bounds = array<i64: 1, 64>}, {transform_indices = @transform_3, window_bounds = array<i64: 1, 16, 16, 64>}, {transform_indices = @transform_4, window_bounds = array<i64: 1, 16, 16, 64>}]} {
    %c0 = arith.constant 0 : index
    %c0_0 = arith.constant 0 : index
    %c0_1 = arith.constant 0 : index
    %c0_2 = arith.constant 0 : index
    %0 = vector.load %arg2[%c0, %c0_0, %c0_1, %c0_2] : memref<1x18x18x32xbf16, #tpu.memory_space<vmem>>, vector<1x18x18x32xbf16>
    %1 = vector.shape_cast %0 : vector<1x18x18x32xbf16> to vector<18x18x32xbf16>
    %cst = arith.constant 0.000000e+00 : f32
    %2 = vector.broadcast %cst : f32 to vector<256x64xf32>
    %3 = vector.extract_strided_slice %1 {offsets = [0, 0, 0], sizes = [16, 16, 32], strides = [1, 1, 1]} : vector<18x18x32xbf16> to vector<16x16x32xbf16>
    %4 = vector.shape_cast %3 : vector<16x16x32xbf16> to vector<256x32xbf16>
    %c0_3 = arith.constant 0 : index
    %c0_4 = arith.constant 0 : index
    %c0_5 = arith.constant 0 : index
    %5 = vector.load %arg3[%c0_3, %c0_4, %c0_5] : memref<9x32x64xbf16, #tpu.memory_space<vmem>>, vector<1x32x64xbf16>
    %6 = vector.shape_cast %5 : vector<1x32x64xbf16> to vector<32x64xbf16>
    %cst_6 = arith.constant dense<0.000000e+00> : vector<256x64xf32>
    %7 = tpu.matmul %4, %6, %cst_6 {dimension_numbers = #tpu.dot_dimension_numbers<[1], [0], [0], [1], [0, 0, 1, 1], [], []>} : vector<256x32xbf16>, vector<32x64xbf16>, vector<256x64xf32> -> vector<256x64xf32>
    %8 = arith.addf %2, %7 : vector<256x64xf32>
    %9 = vector.extract_strided_slice %1 {offsets = [0, 1, 0], sizes = [16, 16, 32], strides = [1, 1, 1]} : vector<18x18x32xbf16> to vector<16x16x32xbf16>
    %10 = vector.shape_cast %9 : vector<16x16x32xbf16> to vector<256x32xbf16>
    %c1 = arith.constant 1 : index
    %c0_7 = arith.constant 0 : index
    %c0_8 = arith.constant 0 : index
    %11 = vector.load %arg3[%c1, %c0_7, %c0_8] : memref<9x32x64xbf16, #tpu.memory_space<vmem>>, vector<1x32x64xbf16>
    %12 = vector.shape_cast %11 : vector<1x32x64xbf16> to vector<32x64xbf16>
    %cst_9 = arith.constant dense<0.000000e+00> : vector<256x64xf32>
    %13 = tpu.matmul %10, %12, %cst_9 {dimension_numbers = #tpu.dot_dimension_numbers<[1], [0], [0], [1], [0, 0, 1, 1], [], []>} : vector<256x32xbf16>, vector<32x64xbf16>, vector<256x64xf32> -> vector<256x64xf32>
    %14 = arith.addf %8, %13 : vector<256x64xf32>
    %15 = vector.extract_strided_slice %1 {offsets = [0, 2, 0], sizes = [16, 16, 32], strides = [1, 1, 1]} : vector<18x18x32xbf16> to vector<16x16x32xbf16>
    %16 = vector.shape_cast %15 : vector<16x16x32xbf16> to vector<256x32xbf16>
    %c2 = arith.constant 2 : index
    %c0_10 = arith.constant 0 : index
    %c0_11 = arith.constant 0 : index
    %17 = vector.load %arg3[%c2, %c0_10, %c0_11] : memref<9x32x64xbf16, #tpu.memory_space<vmem>>, vector<1x32x64xbf16>
    %18 = vector.shape_cast %17 : vector<1x32x64xbf16> to vector<32x64xbf16>
    %cst_12 = arith.constant dense<0.000000e+00> : vector<256x64xf32>
    %19 = tpu.matmul %16, %18, %cst_12 {dimension_numbers = #tpu.dot_dimension_numbers<[1], [0], [0], [1], [0, 0, 1, 1], [], []>} : vector<256x32xbf16>, vector<32x64xbf16>, vector<256x64xf32> -> vector<256x64xf32>
    %20 = arith.addf %14, %19 : vector<256x64xf32>
    %21 = vector.extract_strided_slice %1 {offsets = [1, 0, 0], sizes = [16, 16, 32], strides = [1, 1, 1]} : vector<18x18x32xbf16> to vector<16x16x32xbf16>
    %22 = vector.shape_cast %21 : vector<16x16x32xbf16> to vector<256x32xbf16>
    %c3 = arith.constant 3 : index
    %c0_13 = arith.constant 0 : index
    %c0_14 = arith.constant 0 : index
    %23 = vector.load %arg3[%c3, %c0_13, %c0_14] : memref<9x32x64xbf16, #tpu.memory_space<vmem>>, vector<1x32x64xbf16>
    %24 = vector.shape_cast %23 : vector<1x32x64xbf16> to vector<32x64xbf16>
    %cst_15 = arith.constant dense<0.000000e+00> : vector<256x64xf32>
    %25 = tpu.matmul %22, %24, %cst_15 {dimension_numbers = #tpu.dot_dimension_numbers<[1], [0], [0], [1], [0, 0, 1, 1], [], []>} : vector<256x32xbf16>, vector<32x64xbf16>, vector<256x64xf32> -> vector<256x64xf32>
    %26 = arith.addf %20, %25 : vector<256x64xf32>
    %27 = vector.extract_strided_slice %1 {offsets = [1, 1, 0], sizes = [16, 16, 32], strides = [1, 1, 1]} : vector<18x18x32xbf16> to vector<16x16x32xbf16>
    %28 = vector.shape_cast %27 : vector<16x16x32xbf16> to vector<256x32xbf16>
    %c4 = arith.constant 4 : index
    %c0_16 = arith.constant 0 : index
    %c0_17 = arith.constant 0 : index
    %29 = vector.load %arg3[%c4, %c0_16, %c0_17] : memref<9x32x64xbf16, #tpu.memory_space<vmem>>, vector<1x32x64xbf16>
    %30 = vector.shape_cast %29 : vector<1x32x64xbf16> to vector<32x64xbf16>
    %cst_18 = arith.constant dense<0.000000e+00> : vector<256x64xf32>
    %31 = tpu.matmul %28, %30, %cst_18 {dimension_numbers = #tpu.dot_dimension_numbers<[1], [0], [0], [1], [0, 0, 1, 1], [], []>} : vector<256x32xbf16>, vector<32x64xbf16>, vector<256x64xf32> -> vector<256x64xf32>
    %32 = arith.addf %26, %31 : vector<256x64xf32>
    %33 = vector.extract_strided_slice %1 {offsets = [1, 2, 0], sizes = [16, 16, 32], strides = [1, 1, 1]} : vector<18x18x32xbf16> to vector<16x16x32xbf16>
    %34 = vector.shape_cast %33 : vector<16x16x32xbf16> to vector<256x32xbf16>
    %c5 = arith.constant 5 : index
    %c0_19 = arith.constant 0 : index
    %c0_20 = arith.constant 0 : index
    %35 = vector.load %arg3[%c5, %c0_19, %c0_20] : memref<9x32x64xbf16, #tpu.memory_space<vmem>>, vector<1x32x64xbf16>
    %36 = vector.shape_cast %35 : vector<1x32x64xbf16> to vector<32x64xbf16>
    %cst_21 = arith.constant dense<0.000000e+00> : vector<256x64xf32>
    %37 = tpu.matmul %34, %36, %cst_21 {dimension_numbers = #tpu.dot_dimension_numbers<[1], [0], [0], [1], [0, 0, 1, 1], [], []>} : vector<256x32xbf16>, vector<32x64xbf16>, vector<256x64xf32> -> vector<256x64xf32>
    %38 = arith.addf %32, %37 : vector<256x64xf32>
    %39 = vector.extract_strided_slice %1 {offsets = [2, 0, 0], sizes = [16, 16, 32], strides = [1, 1, 1]} : vector<18x18x32xbf16> to vector<16x16x32xbf16>
    %40 = vector.shape_cast %39 : vector<16x16x32xbf16> to vector<256x32xbf16>
    %c6 = arith.constant 6 : index
    %c0_22 = arith.constant 0 : index
    %c0_23 = arith.constant 0 : index
    %41 = vector.load %arg3[%c6, %c0_22, %c0_23] : memref<9x32x64xbf16, #tpu.memory_space<vmem>>, vector<1x32x64xbf16>
    %42 = vector.shape_cast %41 : vector<1x32x64xbf16> to vector<32x64xbf16>
    %cst_24 = arith.constant dense<0.000000e+00> : vector<256x64xf32>
    %43 = tpu.matmul %40, %42, %cst_24 {dimension_numbers = #tpu.dot_dimension_numbers<[1], [0], [0], [1], [0, 0, 1, 1], [], []>} : vector<256x32xbf16>, vector<32x64xbf16>, vector<256x64xf32> -> vector<256x64xf32>
    %44 = arith.addf %38, %43 : vector<256x64xf32>
    %45 = vector.extract_strided_slice %1 {offsets = [2, 1, 0], sizes = [16, 16, 32], strides = [1, 1, 1]} : vector<18x18x32xbf16> to vector<16x16x32xbf16>
    %46 = vector.shape_cast %45 : vector<16x16x32xbf16> to vector<256x32xbf16>
    %c7 = arith.constant 7 : index
    %c0_25 = arith.constant 0 : index
    %c0_26 = arith.constant 0 : index
    %47 = vector.load %arg3[%c7, %c0_25, %c0_26] : memref<9x32x64xbf16, #tpu.memory_space<vmem>>, vector<1x32x64xbf16>
    %48 = vector.shape_cast %47 : vector<1x32x64xbf16> to vector<32x64xbf16>
    %cst_27 = arith.constant dense<0.000000e+00> : vector<256x64xf32>
    %49 = tpu.matmul %46, %48, %cst_27 {dimension_numbers = #tpu.dot_dimension_numbers<[1], [0], [0], [1], [0, 0, 1, 1], [], []>} : vector<256x32xbf16>, vector<32x64xbf16>, vector<256x64xf32> -> vector<256x64xf32>
    %50 = arith.addf %44, %49 : vector<256x64xf32>
    %51 = vector.extract_strided_slice %1 {offsets = [2, 2, 0], sizes = [16, 16, 32], strides = [1, 1, 1]} : vector<18x18x32xbf16> to vector<16x16x32xbf16>
    %52 = vector.shape_cast %51 : vector<16x16x32xbf16> to vector<256x32xbf16>
    %c8 = arith.constant 8 : index
    %c0_28 = arith.constant 0 : index
    %c0_29 = arith.constant 0 : index
    %53 = vector.load %arg3[%c8, %c0_28, %c0_29] : memref<9x32x64xbf16, #tpu.memory_space<vmem>>, vector<1x32x64xbf16>
    %54 = vector.shape_cast %53 : vector<1x32x64xbf16> to vector<32x64xbf16>
    %cst_30 = arith.constant dense<0.000000e+00> : vector<256x64xf32>
    %55 = tpu.matmul %52, %54, %cst_30 {dimension_numbers = #tpu.dot_dimension_numbers<[1], [0], [0], [1], [0, 0, 1, 1], [], []>} : vector<256x32xbf16>, vector<32x64xbf16>, vector<256x64xf32> -> vector<256x64xf32>
    %56 = arith.addf %50, %55 : vector<256x64xf32>
    %c0_31 = arith.constant 0 : index
    %c0_32 = arith.constant 0 : index
    %57 = vector.load %arg4[%c0_31, %c0_32] : memref<1x64xf32, #tpu.memory_space<vmem>>, vector<1x64xf32>
    %58 = vector.broadcast %57 : vector<1x64xf32> to vector<256x64xf32>
    %59 = arith.addf %56, %58 : vector<256x64xf32>
    %cst_33 = arith.constant 0.000000e+00 : f32
    %60 = vector.broadcast %cst_33 : f32 to vector<256x64xf32>
    %61 = arith.subf %60, %59 : vector<256x64xf32>
    %62 = math.exp %61 : vector<256x64xf32>
    %cst_34 = arith.constant 1.000000e+00 : f32
    %63 = vector.broadcast %cst_34 : f32 to vector<256x64xf32>
    %64 = arith.addf %63, %62 : vector<256x64xf32>
    %cst_35 = arith.constant 1.000000e+00 : f32
    %65 = vector.broadcast %cst_35 : f32 to vector<256x64xf32>
    %66 = arith.divf %65, %64 : vector<256x64xf32>
    %67 = arith.mulf %59, %66 : vector<256x64xf32>
    %c0_36 = arith.constant 0 : index
    %c0_37 = arith.constant 0 : index
    %c0_38 = arith.constant 0 : index
    %c0_39 = arith.constant 0 : index
    %68 = vector.load %arg5[%c0_36, %c0_37, %c0_38, %c0_39] : memref<1x16x16x64xf32, #tpu.memory_space<vmem>>, vector<1x16x16x64xf32>
    %69 = vector.shape_cast %68 : vector<1x16x16x64xf32> to vector<16x16x64xf32>
    %70 = vector.shape_cast %69 : vector<16x16x64xf32> to vector<256x64xf32>
    %71 = arith.addf %67, %70 : vector<256x64xf32>
    %72 = vector.shape_cast %71 : vector<256x64xf32> to vector<16x16x64xf32>
    %c0_40 = arith.constant 0 : index
    %c0_41 = arith.constant 0 : index
    %c0_42 = arith.constant 0 : index
    %c0_43 = arith.constant 0 : index
    %73 = vector.load %arg6[%c0_40, %c0_41, %c0_42, %c0_43] : memref<1x16x16x64xf32, #tpu.memory_space<vmem>>, vector<1x16x16x64xf32>
    %74 = vector.shape_cast %73 : vector<1x16x16x64xf32> to vector<16x16x64xf32>
    %75 = vector.shape_cast %72 : vector<16x16x64xf32> to vector<1x16x16x64xf32>
    tpu.vector_store %arg6[%c0_40, %c0_41, %c0_42, %c0_43], %75 {strides = array<i32>} : memref<1x16x16x64xf32, #tpu.memory_space<vmem>>, vector<1x16x16x64xf32>,
    return
  }
  func.func @transform_0(%arg0: i32, %arg1: i32) -> (i32, i32, i32, i32) {
    %c0_i32 = arith.constant 0 : i32
    %c0_i32_0 = arith.constant 0 : i32
    %c0_i32_1 = arith.constant 0 : i32
    %c0_i32_2 = arith.constant 0 : i32
    return %arg0, %c0_i32, %c0_i32_0, %c0_i32_1 : i32, i32, i32, i32
  }
  func.func @transform_1(%arg0: i32, %arg1: i32) -> (i32, i32, i32) {
    %c0_i32 = arith.constant 0 : i32
    %c0_i32_0 = arith.constant 0 : i32
    %c0_i32_1 = arith.constant 0 : i32
    return %c0_i32, %c0_i32_0, %arg1 : i32, i32, i32
  }
  func.func @transform_2(%arg0: i32, %arg1: i32) -> (i32, i32) {
    %c0_i32 = arith.constant 0 : i32
    %c0_i32_0 = arith.constant 0 : i32
    return %c0_i32, %arg1 : i32, i32
  }
  func.func @transform_3(%arg0: i32, %arg1: i32) -> (i32, i32, i32, i32) {
    %c0_i32 = arith.constant 0 : i32
    %c0_i32_0 = arith.constant 0 : i32
    %c0_i32_1 = arith.constant 0 : i32
    return %arg0, %c0_i32, %c0_i32_0, %arg1 : i32, i32, i32, i32
  }
  func.func @transform_4(%arg0: i32, %arg1: i32) -> (i32, i32, i32, i32) {
    %c0_i32 = arith.constant 0 : i32
    %c0_i32_0 = arith.constant 0 : i32
    %c0_i32_1 = arith.constant 0 : i32
    return %arg0, %c0_i32, %c0_i32_0, %arg1 : i32, i32, i32, i32
  }
}

</mosaic_0001>

<bundles_post_ra>
// kernel: fwd.3
= control target key start
LH: loop header
LB: loop body
LE: loop exit
PB: predicated region body
PF: predicated region fallthrough
CT: control target
= control target key end

     0   :  { %9 = vsyncpa [#allocation3], 0  ;;  %s6318_s0 = inlined_call_operand.vmem [shape: bf16[2,18,18,32], index: 0, kind: input, shape index: {}]   ;;  %s6319_s1 = inlined_call_operand.vmem [shape: bf16[9,32,64], index: 1, kind: input, shape index: {}]   ;;  %s6320_s2 = inlined_call_operand.vmem [shape: f32[1,64], index: 2, kind: input, shape index: {}]   ;;  %s6321_s3 = inlined_call_operand.vmem [shape: f32[2,16,16,64], index: 3, kind: input, shape index: {}]   ;;  %s6322_s4 = inlined_call_operand.hbm [shape: f32[2,16,16,64], index: 4, kind: output, shape index: {}]  }
   0x1   :  { %11 = vsyncpa [#allocation3 + $0x1], 0  ;;  %s4953_s15 = smov 0   ;;  %s4955_s16 = smov 0  }
   0x2   :  { %s4957_s17 = smov 0   ;;  %s4959_s18 = smov 0  }
   0x3   :  { %s4961_s19 = smov 0   ;;  %s4963_s20 = smov 0  }
   0x4 LB: > { %s3587_s21 = sadd.s32 4294967295, %s4923_s20   ;;  %s3588_s22 = sadd.s32 4294967294, %s4923_s20   ;;  %s4923_s20 = sphi %s4963_s20, %s17_s20   ;;  %s4919_s19 = sphi %s4961_s19, %s6403_s19   ;;  %s4915_s18 = sphi %s4959_s18, %s6402_s18   ;;  %s4911_s17 = sphi %s4957_s17, %s6401_s17   ;;  %s4907_s16 = sphi %s4955_s16, %s6400_s16   ;;  %s4903_s15 = sphi %s4953_s15, %s6399_s15  }
   0x5   : > { %s29_s23 = sadd.s32 1, %s4919_s19  ;;  %s144_s24 = sadd.s32 1, %s4911_s17 }
   0x6   : > { %p31_p0 = scmp.ge.s32.totalorder %s29_s23, 2  ;;  %p154_p1 = scmp.ne.s32.totalorder %s4911_s17, %s4907_s16 }
   0x7   : > { %p155_p2 = scmp.eq.s32.totalorder %s3587_s21, 1  ;;  %p160_p3 = scmp.ne.s32.totalorder %s4907_s16, %s4903_s15 }
   0x8   : > { %s6405_s23 = smov (%p31_p0, %s29_s23), 0  ;;  %p161_p5 = scmp.eq.s32.totalorder %s3588_s22, 1 }
   0x9   : > { %p4993_p4 = por %p155_p2, %p154_p1  ;;  %s139_s26 = ssub.s32 %s4919_s19, %s6405_s23 }
   0xa   : > { %p3593_p6 = scmp.ge.s32.totalorder %s4923_s20, 1  ;;  %p142_p7 = scmp.eq.s32.totalorder %s139_s26, 0 }
   0xb   : > { %p5000_p8 = por %p161_p5, %p160_p3  ;;  %p211_p9 = scmp.lt.s32.totalorder %s4923_s20, 3 }
   0xc   : > { %s5006_s28 = scalar_select %p142_p7, %s4911_s17, %s144_s24  }
   0xd   : > { %p212_p10 = pnand %p3593_p6, %p211_p9 }
   0xf   : > { %215 = sbr.rel (%p212_p10) target bundleno = 617 (0x269), region = 36 }
  0x16   : > { %v4676_v0 = vld [vmem:[%s6319_s1 + $0x10] sm:$0xff]   ;;  %p252_p11 = scmp.lt.s32.totalorder %s4915_s18, 1  ;;  %v4677_v1 = vld [vmem:[%s6319_s1 + $0x40] sm:$0xff]   ;;  %v4678_v2 = vld [vmem:[%s6319_s1 + $0x18] sm:$0xff]   ;;  %vm331_vm0 = vsmask.f32 3328 }
  0x17   : > { %4034 = vmatprep.subr.bf16.mxu1 %v4676_v0  ;;  %4178 = vmatprep.subr.bf16.mxu0 %v4677_v1  ;;  %v4679_v3 = vld [vmem:[%s6319_s1 + $0x48] sm:$0xff]   ;;  %v5028_v4 = vld [vmem:[%s6319_s1] sm:$0xff]   ;;  %vm332_vm1 = vsmask.f32 7440  ;;  %v5038_v5 = vld [vmem:[%s6319_s1 + $0x50] sm:$0xff]   ;;  %vm783_vm2 = vcmask 261120  }
  0x18   : > { %s5019_s9 = scalar_select %p252_p11, %s4915_s18, 1  ;;  %4035 = vmatpush3.bf16.msra.mxu1 %v4676_v0  ;;  %4179 = vmatpush3.bf16.msra.mxu0 %v4677_v1  ;;  %vm5072_vm3 = vmor %vm331_vm0, %vm332_vm1  ;;  %vm1310_vm4 = vcmask 1042432   ;;  %vm1311_vm5 = vcmask 1046532   ;;  %vm3422_vm7 = vcmask 523264  }
  0x19   : > { %4036 = vmatprep.subr.bf16.mxu1 %v4678_v2  ;;  %4180 = vmatprep.subr.bf16.mxu0 %v4679_v3  ;;  %vm5262_vm6 = vmor %vm1310_vm4, %vm1311_vm5  ;;  %s4925_s29 = smov [#allocation2]  }
  0x1a   : > { %s4618_s12 = smul.u32 216, %s5019_s9  ;;  %s3870_s5 = sshll.u32 %s5019_s9, 8 }
  0x1b   : > { %s249_s9 = sand.u32 1, %s4907_s16   ;;  %s6046_s8 = scalar_lea.vmem %s6321_s3, %s3870_s5 }
  0x1c   : > { %s5033_s24 = scalar_lea.vmem %s6318_s0, %s4618_s12  ;;  %4037 = vmatpush3.bf16.msra.mxu1 %v4678_v2  ;;  %4181 = vmatpush3.bf16.msra.mxu0 %v4679_v3  ;;  %s6062_s10 = sshll.u32 %s249_s9, 8 }
  0x1d   : > { %v5041_v6 = vld [vmem:[%s5033_s24] sm:$0xf]  ;;  %v5044_v7 = vld [vmem:[%s5033_s24 + $0x4] sm:$0xf]  ;;  %v275_v8 = vld [vmem:[%s5033_s24 + $0x8] sm:$0x1]  ;;  %4070 = vmatprep.subr.bf16.mxu1 %v5028_v4  ;;  %4214 = vmatprep.subr.bf16.mxu0 %v5038_v5 }
  0x1e   : > { %v335_v9 = vshrl.u32 %v5041_v6, 16  ;;  %v338_v10 = vshll.u32 %v5041_v6, 16  ;;  %v344_v11 = vshll.u32 %v5044_v7, 16  ;;  %v348_v12 = vshrl.u32 %v5044_v7, 16  ;;  %v5053_v13 = vld [vmem:[%s5033_s24 + $0xc] sm:$0xf] }
  0x1f   : > { %v354_v14 = vshll.u32 %v275_v8, 16  ;;  %v5056_v15 = vld [vmem:[%s5033_s24 + $0x10] sm:$0xf]  ;;  %v5059_v16 = vld [vmem:[%s5033_s24 + $0x14] sm:$0x1]  ;;  %v359_v22 = vshrl.u32 %v5053_v13, 16 }
  0x20   : > { %v337_v17 = vrot.slane %v335_v9, 4  ;;  %v340_v18 = vrot.slane %v338_v10, 5  ;;  %v346_v19 = vrot.slane %v344_v11, 5  ;;  %v350_v20 = vrot.slane %v348_v12, 4  ;;  %v5068_v29 = vld [vmem:[%s5033_s24 + $0x18] sm:$0xf] }
  0x21   : > { %v356_v21 = vrot.slane %v354_v14, 5  ;;  %v362_v23 = vshll.u32 %v5053_v13, 16  ;;  %v368_v24 = vshll.u32 %v5056_v15, 16  ;;  %v372_v27 = vshrl.u32 %v5056_v15, 16  ;;  %v5081_v35 = vld [vmem:[%s5033_s24 + $0x1c] sm:$0xf] }
  0x22   : > { %v341_v25 = vor.u32 %v340_v18, %v337_v17  ;;  %v351_v26 = vor.u32 %v350_v20, %v346_v19  ;;  %v378_v28 = vshll.u32 %v5059_v16, 16  ;;  %v361_v31 = vrot.slane %v359_v22, 4  ;;  %v5085_v42 = vld [vmem:[%s5033_s24 + $0x20] sm:$0x1]  ;;  %v5095_v49 = vld [vmem:[%s5033_s24 + $0x24] sm:$0xf] }
  0x23   : > { %v364_v32 = vrot.slane %v362_v23, 5  ;;  %v370_v33 = vrot.slane %v368_v24, 5  ;;  %v5078_v34 = vcombine.low %v5053_v13, %v5056_v15  ;;  %v374_v38 = vrot.slane %v372_v27, 4  ;;  %v5098_v54 = vld [vmem:[%s5033_s24 + $0x28] sm:$0xf]  ;;  %s6081_s11 = scalar_lea.vmem [#allocation2], %s6062_s10 }
  0x24   : > { %v342_v36 = vrot.slane %v341_v25, 4  ;;  %v352_v37 = vrot.slane %v351_v26, 4  ;;  %v380_v39 = vrot.slane %v378_v28, 5  ;;  %v1325_v41 = vrot.slane %v5059_v16, 5  ;;  %v5103_v59 = vld [vmem:[%s5033_s24 + $0x2c] sm:$0x1] }
  0x25   : > { %v365_v40 = vor.u32 %v364_v32, %v361_v31  ;;  %v383_v43 = vshrl.u32 %v5068_v29, 16  ;;  %v386_v44 = vshll.u32 %v5068_v29, 16  ;;  %v375_v47 = vor.u32 %v374_v38, %v370_v33  ;;  %v5111_v0 = vld [vmem:[%s5033_s24 + $0x30] sm:$0xf]  ;;  %v4684_v14 = vld [vmem:[%s6319_s1 + $0x8] sm:$0xff]   ;;  %s3871_s12 = sshll.u32 %s4915_s18, 12 }
  0x26   : > { %v347_v45 = vsel %vm5072_vm3, %v342_v36, %v346_v19  ;;  %v357_v46 = vsel %vm5072_vm3, %v352_v37, %v356_v21  ;;  %v392_v48 = vshll.u32 %v5081_v35, 16  ;;  %v396_v57 = vshrl.u32 %v5081_v35, 16  ;;  %v5124_v21 = vld [vmem:[%s5033_s24 + $0x34] sm:$0xf]  ;;  %v5131_v25 = vld [vmem:[%s5033_s24 + $0x38] sm:$0x1]  ;;  %s6262_s22 = scalar_lea.hbm %s6322_s4, %s3871_s12 }
  0x27   : > { %v3602_v50 = vcombine.low %v347_v45, %v357_v46  ;;  %v366_v51 = vrot.slane %v365_v40, 4  ;;  %v385_v52 = vrot.slane %v383_v43, 4  ;;  %v388_v53 = vrot.slane %v386_v44, 5  ;;  %v5145_v45 = vld [vmem:[%s5033_s24 + $0x40] sm:$0xf]  ;;  %s3470_s13 = sshll.u32 %s6081_s11, 4  ;;  %s6264_s13 = int_to_ptr.vmem [resolvable:$true] %s3470_s13 }
  0x28   : > { %v376_v55 = vrot.slane %v375_v47, 4  ;;  %v394_v56 = vrot.slane %v392_v48, 5  ;;  %v402_v58 = vshll.u32 %v5085_v42, 16  ;;  %v1329_v62 = vrot.slane %v5081_v35, 5  ;;  %v5150_v46 = vld [vmem:[%s6319_s1 + $0x20] sm:$0xff]   ;;  %s6272_s18 = scalar_lea.sflag [#allocation3], %s249_s9 }
  0x29   : > { %4038 = vmatprep.mubr.msk.bf16.mxu1 %vm783_vm2, %v3602_v50  ;;  %v371_v60 = vsel %vm5072_vm3, %v366_v51, %v370_v33  ;;  %v389_v61 = vor.u32 %v388_v53, %v385_v52  ;;  %v1332_v63 = vrot.slane %v5085_v42, 5  ;;  %v398_v2 = vrot.slane %v396_v57, 4  ;;  %v5155_v52 = vld [vmem:[%s5033_s24 + $0x44] sm:$0x1]  ;;  %v4683_v53 = vld [vmem:[%s6319_s1 + $0x58] sm:$0xff]   ;;  %s4845_s26 = scalar_lea.vmem %s6264_s13, 4096 }
  0x2a   : > { %v381_v1 = vsel %vm5072_vm3, %v376_v55, %v380_v39  ;;  %v404_v3 = vrot.slane %v402_v58, 5  ;;  %v407_v8 = vshrl.u32 %v5095_v49, 16  ;;  %v410_v11 = vshll.u32 %v5095_v49, 16  ;;  %v5139_v39 = vld [vmem:[%s5033_s24 + $0x3c] sm:$0xf]  ;;  %p4846_p12 = scmp.ne.s32.totalorder %s6264_s13, %s4845_s26 }
  0x2b   : > { %v3603_v9 = vcombine.low %v371_v60, %v381_v1  ;;  %v390_v10 = vrot.slane %v389_v61, 4  ;;  %v416_v12 = vshll.u32 %v5098_v54, 16  ;;  %v399_v17 = vor.u32 %v398_v2, %v394_v56  ;;  %v5161_v55 = vld [vmem:[%s5033_s24 + $0x48] sm:$0xf]  ;;  %v5165_v61 = vld [vmem:[%s5033_s24 + $0x4c] sm:$0xf] }
  0x2c   : > { %v409_v18 = vrot.slane %v407_v8, 4  ;;  %v420_v19 = vshrl.u32 %v5098_v54, 16  ;;  %v426_v20 = vshll.u32 %v5103_v59, 16  ;;  %v412_v23 = vrot.slane %v410_v11, 5  ;;  %p4847_p13 = pnand %p4846_p12, %p4993_p4 }
  0x2d   : > { %4182 = vmatprep.mubr.msk.bf16.mxu0 %vm783_vm2, %v3603_v9  ;;  %4039 = vmatmul.mubr.msk.bf16.vlgmr.msra.gmra.mrb[0].mxu1 %vm783_vm2, %v3603_v9  ;;  %v395_v22 = vsel %vm5072_vm3, %v390_v10, %v394_v56  ;;  %v418_v24 = vrot.slane %v416_v12, 5  ;;  %v431_v26 = vshrl.u32 %v5111_v0, 16  ;;  %v400_v27 = vrot.slane %v399_v17, 4 }
  0x2e   : > { %4071 = vmatpush3.bf16.msra.mxu1 %v5028_v4  ;;  %v422_v28 = vrot.slane %v420_v19, 4  ;;  %v428_v31 = vrot.slane %v426_v20, 5  ;;  %v434_v32 = vshll.u32 %v5111_v0, 16  ;;  %v413_v33 = vor.u32 %v412_v23, %v409_v18  ;;  %p4848_p0 = pneg %p4847_p13 }
  0x2f   : > { %v433_v36 = vrot.slane %v431_v26, 4  ;;  %v440_v37 = vshll.u32 %v5124_v21, 16  ;;  %v444_v38 = vshrl.u32 %v5124_v21, 16  ;;  %4072 = vmatprep.subr.bf16.mxu1 %v4684_v14  ;;  %v405_v40 = vsel %vm5072_vm3, %v400_v27, %v404_v3 }
  0x30   : > { %v423_v4 = vor.u32 %v422_v28, %v418_v24  ;;  %v436_v43 = vrot.slane %v434_v32, 5  ;;  %v450_v44 = vshll.u32 %v5131_v25, 16  ;;  %v5152_v47 = vcombine.low %v395_v22, %v405_v40  ;;  %v5198_v28 = vld [vmem:[%s5033_s24 + $0x50] sm:$0x1] }
  0x31   : > { %v414_v48 = vrot.slane %v413_v33, 4  ;;  %v442_v50 = vrot.slane %v440_v37, 5  ;;  %v446_v51 = vrot.slane %v444_v38, 4  ;;  %v455_v60 = vshrl.u32 %v5139_v39, 16  ;;  %v5203_v33 = vld [vmem:[%s5033_s24 + $0x54] sm:$0xf] }
  0x32   : > { %6357 = vst [vmem:[#allocation5_spill] sm:$0xff] %v5152_v47  ;;  %v424_v56 = vrot.slane %v423_v4, 4  ;;  %v437_v57 = vor.u32 %v436_v43, %v433_v36  ;;  %v452_v58 = vrot.slane %v450_v44, 5  ;;  %4073 = vmatpush3.bf16.msra.mxu1 %v4684_v14  ;;  %4183 = vmatmul.mubr.msk.bf16.vlgmr.msra.gmra.mrb[0].mxu0 %vm783_vm2, %v5152_v47  ;;  %v458_v3 = vshll.u32 %v5139_v39, 16  ;;  %6359 = vst [vmem:[#allocation7_spill] sm:$0xff] %v5203_v33 }
  0x33   : > { %4042 = vmatprep.mubr.msk.bf16.mxu1 %vm783_vm2, %v5152_v47  ;;  %v419_v1 = vsel %vm5072_vm3, %v414_v48, %v418_v24  ;;  %v447_v2 = vor.u32 %v446_v51, %v442_v50  ;;  %v464_v8 = vshll.u32 %v5145_v45, 16  ;;  %4215 = vmatpush3.bf16.msra.mxu0 %v5038_v5  ;;  %v457_v11 = vrot.slane %v455_v60, 4  ;;  %v5185_v5 = vld [vmem:[%s6319_s1 + $0x60] sm:$0xff]   ;;  %v5208_v4 = vld [vmem:[%s5033_s24 + $0x58] sm:$0xf] }
  0x34   : > { %v429_v9 = vsel %vm5072_vm3, %v424_v56, %v428_v31  ;;  %v438_v10 = vrot.slane %v437_v57, 4  ;;  %v468_v12 = vshrl.u32 %v5145_v45, 16  ;;  %4106 = vmatprep.subr.bf16.mxu1 %v5150_v46  ;;  %v460_v18 = vrot.slane %v458_v3, 5  ;;  %4216 = vmatprep.subr.bf16.mxu0 %v4683_v53 }
  0x35   : > { %v5180_v14 = vcombine.low %v419_v1, %v429_v9  ;;  %v448_v17 = vrot.slane %v447_v2, 4  ;;  %v466_v19 = vrot.slane %v464_v8, 5  ;;  %v474_v23 = vshll.u32 %v5155_v52, 16  ;;  %v5222_v2 = vld [vmem:[%s5033_s24 + $0x5c] sm:$0x1] }
  0x36   : > { %v443_v20 = vsel %vm5072_vm3, %v438_v10, %v442_v50  ;;  %v470_v22 = vrot.slane %v468_v12, 4  ;;  %v479_v24 = vshrl.u32 %v5161_v55, 16  ;;  %v461_v27 = vor.u32 %v460_v18, %v457_v11  ;;  %v5226_v8 = vld [vmem:[%s5033_s24 + $0x60] sm:$0xf] }
  0x37   : > { %6358 = vst [vmem:[#allocation6_spill] sm:$0xff] %v5180_v14  ;;  %4186 = vmatprep.mubr.msk.bf16.mxu0 %vm783_vm2, %v5180_v14  ;;  %4043 = vmatmul.mubr.msk.bf16.gmra.mrb[4].mxu1 %vm783_vm2, %v5180_v14  ;;  %v453_v26 = vsel %vm5072_vm3, %v448_v17, %v452_v58  ;;  %v482_v31 = vshll.u32 %v5161_v55, 16  ;;  %v488_v32 = vshll.u32 %v5165_v61, 16  ;;  %v476_v38 = vrot.slane %v474_v23, 5  ;;  %v5231_v17 = vld [vmem:[%s5033_s24 + $0x64] sm:$0xf] }
  0x38   : > { %v5205_v36 = vcombine.low %v443_v20, %v453_v26  ;;  %v471_v37 = vor.u32 %v470_v22, %v466_v19  ;;  %v481_v40 = vrot.slane %v479_v24, 4  ;;  %4217 = vmatpush3.bf16.msra.mxu0 %v4683_v53  ;;  %v462_v43 = vrot.slane %v461_v27, 4  ;;  %v5445_v14 = vld [vmem:[%s5033_s24 + $0xa8] sm:$0xf] }
  0x39   : > { %v484_v44 = vrot.slane %v482_v31, 5  ;;  %v490_v48 = vrot.slane %v488_v32, 5  ;;  %v492_v50 = vshrl.u32 %v5165_v61, 16  ;;  %4250 = vmatprep.subr.bf16.mxu0 %v5185_v5  ;;  %v498_v56 = vshll.u32 %v5198_v28, 16 }
  0x3a   : > { %6360 = vst [vmem:[#allocation8_spill] sm:$0xff] %v5205_v36  ;;  %4046 = vmatprep.mubr.msk.bf16.mxu1 %vm783_vm2, %v5205_v36  ;;  %v472_v51 = vrot.slane %v471_v37, 4  ;;  %v503_v53 = vshrl.u32 %v5203_v33, 16  ;;  %v506_v57 = vshll.u32 %v5203_v33, 16  ;;  %4187 = vmatmul.mubr.msk.bf16.gmra.mrb[4].mxu0 %vm783_vm2, %v5205_v36  ;;  %v467_v58 = vsel %vm5072_vm3, %v462_v43, %v466_v19  ;;  %v5245_v37 = vld [vmem:[%s5033_s24 + $0x68] sm:$0x1] }
  0x3b   : > { %v485_v60 = vor.u32 %v484_v44, %v481_v40  ;;  %v494_v1 = vrot.slane %v492_v50, 4  ;;  %v512_v3 = vshll.u32 %v5208_v4, 16  ;;  %v500_v10 = vrot.slane %v498_v56, 5  ;;  %v5421_v36 = vld [vmem:[%s5033_s24 + $0xa0] sm:$0xf] }
  0x3c   : > { %v477_v9 = vsel %vm5072_vm3, %v472_v51, %v476_v38  ;;  %v505_v11 = vrot.slane %v503_v53, 4  ;;  %v508_v12 = vrot.slane %v506_v57, 5  ;;  %v516_v24 = vshrl.u32 %v5208_v4, 16 }
  0x3d   : > { %v5233_v18 = vcombine.low %v467_v58, %v477_v9  ;;  %v486_v19 = vrot.slane %v485_v60, 4  ;;  %v495_v20 = vor.u32 %v494_v1, %v490_v48  ;;  %v514_v22 = vrot.slane %v512_v3, 5 }
  0x3e   : > { %v509_v23 = vor.u32 %v508_v12, %v505_v11  ;;  %v522_v26 = vshll.u32 %v5222_v2, 16  ;;  %v527_v27 = vshrl.u32 %v5226_v8, 16  ;;  %v530_v38 = vshll.u32 %v5226_v8, 16 }
  0x3f   : > { %6361 = vst [vmem:[#allocation9_spill] sm:$0xff] %v5233_v18  ;;  %4190 = vmatprep.mubr.msk.bf16.mxu0 %vm783_vm2, %v5233_v18  ;;  %4047 = vmatmul.mubr.msk.bf16.gmra.mrb[8].mxu1 %vm783_vm2, %v5233_v18  ;;  %v491_v31 = vsel %vm5072_vm3, %v486_v19, %v490_v48  ;;  %v496_v32 = vrot.slane %v495_v20, 4  ;;  %v536_v40 = vshll.u32 %v5231_v17, 16  ;;  %v518_v44 = vrot.slane %v516_v24, 4  ;;  %v5253_v48 = vld [vmem:[%s5033_s24 + $0x6c] sm:$0xf] }
  0x40   : > { %v510_v43 = vrot.slane %v509_v23, 4  ;;  %v524_v50 = vrot.slane %v522_v26, 5  ;;  %v529_v51 = vrot.slane %v527_v27, 4  ;;  %v532_v53 = vrot.slane %v530_v38, 5  ;;  %v5269_v23 = vld [vmem:[%s5033_s24 + $0x70] sm:$0xf] }
  0x41   : > { %v501_v56 = vsel %vm5072_vm3, %v496_v32, %v500_v10  ;;  %v538_v57 = vrot.slane %v536_v40, 5  ;;  %v540_v58 = vshrl.u32 %v5231_v17, 16  ;;  %v519_v3 = vor.u32 %v518_v44, %v514_v22  ;;  %v5276_v26 = vld [vmem:[%s5033_s24 + $0x74] sm:$0x1]  ;;  %v5283_v40 = vld [vmem:[%s5033_s24 + $0x78] sm:$0xf] }
  0x42   : > { %v5255_v60 = vcombine.low %v491_v31, %v501_v56  ;;  %v515_v1 = vsel %vm5072_vm3, %v510_v43, %v514_v22  ;;  %v546_v9 = vshll.u32 %v5245_v37, 16  ;;  %v533_v10 = vor.u32 %v532_v53, %v529_v51 }
  0x43   : > { %v542_v12 = vrot.slane %v540_v58, 4  ;;  %v3671_v19 = vrot.slane %v5053_v13, 9  ;;  %v1322_v20 = vrot.slane %v5056_v15, 5  ;;  %v520_v22 = vrot.slane %v519_v3, 4 }
  0x44   : > { %6362 = vst [vmem:[#allocation10_spill] sm:$0xff] %v5255_v60  ;;  %4191 = vmatmul.mubr.msk.bf16.gmra.mrb[8].mxu0 %vm783_vm2, %v5255_v60  ;;  %4050 = vmatprep.mubr.msk.bf16.mxu1 %vm783_vm2, %v5255_v60  ;;  %v548_v24 = vrot.slane %v546_v9, 5  ;;  %v551_v27 = vshrl.u32 %v5253_v48, 16  ;;  %v554_v31 = vshll.u32 %v5253_v48, 16  ;;  %v534_v32 = vrot.slane %v533_v10, 4 }
  0x45   : > { %v543_v13 = vor.u32 %v542_v12, %v538_v57  ;;  %v1323_v15 = vsel %vm5262_vm6, %v3671_v19, %v1322_v20  ;;  %v1324_v38 = vrot.slane %v1322_v20, 4  ;;  %v525_v43 = vsel %vm5072_vm3, %v520_v22, %v524_v50  ;;  %v5300_v20 = vld [vmem:[%s5033_s24 + $0x7c] sm:$0xf]  ;;  %v5313_v22 = vld [vmem:[%s5033_s24 + $0x80] sm:$0x1] }
  0x46   : > { %v553_v44 = vrot.slane %v551_v27, 4  ;;  %v556_v51 = vrot.slane %v554_v31, 5  ;;  %v560_v56 = vshll.u32 %v5269_v23, 16  ;;  %v5288_v53 = vcombine.low %v515_v1, %v525_v43  ;;  %v5414_v60 = vld [vmem:[%s5033_s24 + $0x9c] sm:$0xf] }
  0x47   : > { %v539_v58 = vsel %vm5072_vm3, %v534_v32, %v538_v57  ;;  %v544_v3 = vrot.slane %v543_v13, 4  ;;  %v1326_v9 = vsel %vm5262_vm6, %v1324_v38, %v1325_v41  ;;  %v564_v19 = vshrl.u32 %v5269_v23, 16 }
  0x48   : > { %6365 = vst [vmem:[#allocation11_spill] sm:$0xff] %v5288_v53  ;;  %v5296_v10 = vcombine.low %v1323_v15, %v1326_v9  ;;  %v557_v12 = vor.u32 %v556_v51, %v553_v44  ;;  %v562_v50 = vrot.slane %v560_v56, 5  ;;  %4194 = vmatprep.mubr.msk.bf16.mxu0 %vm783_vm2, %v5288_v53  ;;  %4051 = vmatmul.mubr.msk.bf16.gmra.mrb[12].mxu1 %vm783_vm2, %v5288_v53  ;;  %v570_v41 = vshll.u32 %v5276_v26, 16  ;;  %v5328_v44 = vld [vmem:[%s5033_s24 + $0x84] sm:$0xf] }
  0x49   : > { %v549_v16 = vsel %vm5072_vm3, %v544_v3, %v548_v24  ;;  %v3672_v57 = vrot.slane %v5068_v29, 9  ;;  %v1331_v1 = vrot.slane %v1329_v62, 4  ;;  %v566_v32 = vrot.slane %v564_v19, 4 }
  0x4a   : > { %6366 = vst [vmem:[#allocation12_spill] sm:$0xff] %v5296_v10  ;;  %v5315_v27 = vcombine.low %v539_v58, %v549_v16  ;;  %v558_v31 = vrot.slane %v557_v12, 4  ;;  %v575_v13 = vshrl.u32 %v5283_v40, 16  ;;  %v572_v15 = vrot.slane %v570_v41, 5  ;;  %v5344_v12 = vld [vmem:[%s5033_s24 + $0x88] sm:$0xf] }
  0x4b   : > { %v1330_v24 = vsel %vm5262_vm6, %v3672_v57, %v1329_v62  ;;  %v1333_v38 = vsel %vm5262_vm6, %v1331_v1, %v1332_v63  ;;  %v578_v43 = vshll.u32 %v5283_v40, 16  ;;  %v567_v56 = vor.u32 %v566_v32, %v562_v50 }
  0x4c   : > { %6367 = vst [vmem:[#allocation13_spill] sm:$0xff] %v5315_v27  ;;  %4195 = vmatmul.mubr.msk.bf16.gmra.mrb[12].mxu0 %vm783_vm2, %v5315_v27  ;;  %4054 = vmatprep.mubr.msk.bf16.mxu1 %vm783_vm2, %v5315_v27  ;;  %v563_v51 = vsel %vm5072_vm3, %v558_v31, %v562_v50  ;;  %v5336_v62 = vcombine.low %v1330_v24, %v1333_v38  ;;  %v577_v42 = vrot.slane %v575_v13, 4  ;;  %v584_v58 = vshll.u32 %v5300_v20, 16  ;;  %v5350_v13 = vld [vmem:[%s5033_s24 + $0x8c] sm:$0x1] }
  0x4d   : > { %4218 = vmatprep.mubr.msk.bf16.mxu0 %vm783_vm2, %v5296_v10  ;;  %v580_v63 = vrot.slane %v578_v43, 5  ;;  %v588_v3 = vshrl.u32 %v5300_v20, 16  ;;  %v594_v9 = vshll.u32 %v5313_v22, 16  ;;  %v568_v19 = vrot.slane %v567_v56, 4 }
  0x4e   : > { %6368 = vst [vmem:[#allocation14_spill] sm:$0xff] %v5336_v62  ;;  %v3673_v16 = vrot.slane %v5095_v49, 9  ;;  %v1336_v50 = vrot.slane %v5098_v54, 5  ;;  %v1339_v41 = vrot.slane %v5103_v59, 5  ;;  %v586_v1 = vrot.slane %v584_v58, 5 }
  0x4f   : > { %v581_v57 = vor.u32 %v580_v63, %v577_v42  ;;  %v590_v31 = vrot.slane %v588_v3, 4  ;;  %v596_v32 = vrot.slane %v594_v9, 5  ;;  %v573_v24 = vsel %vm5072_vm3, %v568_v19, %v572_v15  ;;  %v4688_v9 = vld [vmem:[%s6319_s1 + $0x68] sm:$0xff]  }
  0x50   : > { %v1337_v38 = vsel %vm5262_vm6, %v3673_v16, %v1336_v50  ;;  %v1338_v43 = vrot.slane %v1336_v50, 4  ;;  %v599_v56 = vshrl.u32 %v5328_v44, 16  ;;  %v5357_v27 = vcombine.low %v563_v51, %v573_v24 }
  0x51   : > { %v582_v53 = vrot.slane %v581_v57, 4  ;;  %v591_v59 = vor.u32 %v590_v31, %v586_v1  ;;  %v602_v42 = vshll.u32 %v5328_v44, 16  ;;  %v608_v3 = vshll.u32 %v5344_v12, 16 }
  0x52   : > { %6369 = vst [vmem:[#allocation15_spill] sm:$0xff] %v5357_v27  ;;  %v1340_v63 = vsel %vm5262_vm6, %v1338_v43, %v1339_v41  ;;  %v601_v58 = vrot.slane %v599_v56, 4  ;;  %v612_v15 = vshrl.u32 %v5344_v12, 16  ;;  %4055 = vmatmul.mubr.msk.bf16.gmra.mrb[16].mxu1 %vm783_vm2, %v5357_v27  ;;  %v5374_v41 = vld [vmem:[%s5033_s24 + $0x90] sm:$0xf]  ;;  %v618_v24 = vshll.u32 %v5350_v13, 16 }
  0x53   : > { %v587_v51 = vsel %vm5072_vm3, %v582_v53, %v586_v1  ;;  %v592_v19 = vrot.slane %v591_v59, 4  ;;  %v5371_v16 = vcombine.low %v1337_v38, %v1340_v63  ;;  %v604_v50 = vrot.slane %v602_v42, 5  ;;  %v5388_v59 = vld [vmem:[%s5033_s24 + $0x94] sm:$0xf] }
  0x54   : > { %4219 = vmatmul.mubr.msk.bf16.vlgmr.msra.gmra.mrb[0].mxu0 %vm783_vm2, %v5336_v62  ;;  %v610_v57 = vrot.slane %v608_v3, 5  ;;  %v614_v31 = vrot.slane %v612_v15, 4  ;;  %v3674_v43 = vrot.slane %v5111_v0, 9  ;;  %v1343_v38 = vrot.slane %v5124_v21, 5  ;;  %v5393_v15 = vld [vmem:[%s5033_s24 + $0x98] sm:$0x1] }
  0x55   : > { %6370 = vst [vmem:[#allocation16_spill] sm:$0xff] %v5371_v16  ;;  %4251 = vmatpush3.bf16.msra.mxu0 %v5185_v5  ;;  %v597_v53 = vsel %vm5072_vm3, %v592_v19, %v596_v32  ;;  %4222 = vmatprep.mubr.msk.bf16.mxu0 %vm783_vm2, %v5371_v16  ;;  %v605_v1 = vor.u32 %v604_v50, %v601_v58  ;;  %v1346_v56 = vrot.slane %v5131_v25, 5  ;;  %v620_v3 = vrot.slane %v618_v24, 5  ;;  %v5399_v32 = vld [vmem:[%s6319_s1 + $0x70] sm:$0xff]  }
  0x56   : > { %v5390_v42 = vcombine.low %v587_v51, %v597_v53  ;;  %v615_v63 = vor.u32 %v614_v31, %v610_v57  ;;  %v623_v5 = vshrl.u32 %v5374_v41, 16  ;;  %4252 = vmatprep.subr.bf16.mxu0 %v4688_v9  ;;  %6372 = vst [vmem:[#allocation18_spill] sm:$0xff] %v5399_v32  ;;  %v1344_v25 = vsel %vm5262_vm6, %v3674_v43, %v1343_v38 }
  0x57   : > { %v606_v58 = vrot.slane %v605_v1, 4  ;;  %v1345_v19 = vrot.slane %v1343_v38, 4  ;;  %v626_v51 = vshll.u32 %v5374_v41, 16  ;;  %v632_v24 = vshll.u32 %v5388_v59, 16 }
  0x58   : > { %6371 = vst [vmem:[#allocation17_spill] sm:$0xff] %v5390_v42  ;;  %4058 = vmatprep.mubr.msk.bf16.mxu1 %vm783_vm2, %v5390_v42  ;;  %v616_v50 = vrot.slane %v615_v63, 4  ;;  %v625_v31 = vrot.slane %v623_v5, 4  ;;  %v636_v53 = vshrl.u32 %v5388_v59, 16  ;;  %v642_v38 = vshll.u32 %v5393_v15, 16 }
  0x59   : > { %v611_v27 = vsel %vm5072_vm3, %v606_v58, %v610_v57  ;;  %v1347_v1 = vsel %vm5262_vm6, %v1345_v19, %v1346_v56  ;;  %v628_v43 = vrot.slane %v626_v51, 5  ;;  %4253 = vmatpush3.bf16.msra.mxu0 %v4688_v9  ;;  %v634_v42 = vrot.slane %v632_v24, 5 }
  0x5a   : > { %v621_v63 = vsel %vm5072_vm3, %v616_v50, %v620_v3  ;;  %v5418_v5 = vcombine.low %v1344_v25, %v1347_v1  ;;  %v638_v18 = vrot.slane %v636_v53, 4  ;;  %4286 = vmatprep.subr.bf16.mxu0 %v5399_v32  ;;  %v644_v58 = vrot.slane %v642_v38, 5  ;;  %v5435_v50 = vld [vmem:[%s5033_s24 + $0xa4] sm:$0x1] }
  0x5b   : > { %v5424_v57 = vcombine.low %v611_v27, %v621_v63  ;;  %v629_v56 = vor.u32 %v628_v43, %v625_v31  ;;  %v3675_v19 = vrot.slane %v5139_v39, 9  ;;  %v1350_v3 = vrot.slane %v5145_v45, 5 }
  0x5c   : > { %6373 = vst [vmem:[#allocation19_spill] sm:$0xff] %v5418_v5  ;;  %4223 = vmatmul.mubr.msk.bf16.gmra.mrb[4].mxu0 %vm783_vm2, %v5418_v5  ;;  %v639_v9 = vor.u32 %v638_v18, %v634_v42  ;;  %v1353_v25 = vrot.slane %v5155_v52, 5  ;;  %v647_v51 = vshrl.u32 %v5414_v60, 16  ;;  %v650_v31 = vshll.u32 %v5414_v60, 16 }
  0x5d   : > { %6374 = vst [vmem:[#allocation20_spill] sm:$0xff] %v5424_v57  ;;  %4059 = vmatmul.mubr.msk.bf16.gmra.mrb[20].mxu1 %vm783_vm2, %v5424_v57  ;;  %v630_v27 = vrot.slane %v629_v56, 4  ;;  %v656_v24 = vshll.u32 %v5421_v36, 16  ;;  %v660_v18 = vshrl.u32 %v5421_v36, 16  ;;  %v1351_v52 = vsel %vm5262_vm6, %v3675_v19, %v1350_v3 }
  0x5e   : > { %v640_v53 = vrot.slane %v639_v9, 4  ;;  %v1352_v1 = vrot.slane %v1350_v3, 4  ;;  %v649_v43 = vrot.slane %v647_v51, 4  ;;  %v652_v63 = vrot.slane %v650_v31, 5  ;;  %v5454_v3 = vld [vmem:[%s5033_s24 + $0xac] sm:$0xf] }
  0x5f   : > { %v635_v38 = vsel %vm5072_vm3, %v630_v27, %v634_v42  ;;  %v658_v56 = vrot.slane %v656_v24, 5  ;;  %v662_v57 = vrot.slane %v660_v18, 4  ;;  %v666_v9 = vshll.u32 %v5435_v50, 16 }
  0x60   : > { %v645_v47 = vsel %vm5072_vm3, %v640_v53, %v644_v58  ;;  %v1354_v5 = vsel %vm5262_vm6, %v1352_v1, %v1353_v25  ;;  %v3676_v19 = vrot.slane %v5161_v55, 9  ;;  %v653_v27 = vor.u32 %v652_v63, %v649_v43 }
  0x61   : > { %v5456_v51 = vcombine.low %v635_v38, %v645_v47  ;;  %v5458_v42 = vcombine.low %v1351_v52, %v1354_v5  ;;  %v663_v31 = vor.u32 %v662_v57, %v658_v56  ;;  %v668_v24 = vrot.slane %v666_v9, 5  ;;  %v5468_v5 = vld [vmem:[%s5033_s24 + $0xb0] sm:$0x1] }
  0x62   : > { %v1357_v18 = vrot.slane %v5165_v61, 5  ;;  %v1360_v58 = vrot.slane %v5198_v28, 5  ;;  %v671_v25 = vshrl.u32 %v5445_v14, 16  ;;  %v654_v47 = vrot.slane %v653_v27, 4 }
  0x63   : > { %6375 = vst [vmem:[#allocation21_spill] sm:$0xff] %v5456_v51  ;;  %6376 = vst [vmem:[#allocation22_spill] sm:$0xff] %v5458_v42  ;;  %4062 = vmatprep.mubr.msk.bf16.mxu1 %vm783_vm2, %v5456_v51  ;;  %4226 = vmatprep.mubr.msk.bf16.mxu0 %vm783_vm2, %v5458_v42  ;;  %v664_v53 = vrot.slane %v663_v31, 4  ;;  %v674_v57 = vshll.u32 %v5445_v14, 16  ;;  %v680_v52 = vshll.u32 %v5454_v3, 16  ;;  %v684_v38 = vshrl.u32 %v5454_v3, 16 }
  0x64   : > { %v1358_v28 = vsel %vm5262_vm6, %v3676_v19, %v1357_v18  ;;  %v1359_v1 = vrot.slane %v1357_v18, 4  ;;  %v673_v43 = vrot.slane %v671_v25, 4  ;;  %v659_v63 = vsel %vm5072_vm3, %v654_v47, %v658_v56  ;;  %v5480_v51 = vld [vmem:[%s5033_s24 + $0xb4] sm:$0xf]  ;;  %v5492_v47 = vld [vmem:[%s5033_s24 + $0xb8] sm:$0xf] }
  0x65   : > { %v669_v9 = vsel %vm5072_vm3, %v664_v53, %v668_v24  ;;  %v676_v27 = vrot.slane %v674_v57, 5  ;;  %v682_v31 = vrot.slane %v680_v52, 5  ;;  %v686_v18 = vrot.slane %v684_v38, 4 }
  0x66   : > { %v5482_v42 = vcombine.low %v659_v63, %v669_v9  ;;  %v1361_v19 = vsel %vm5262_vm6, %v1359_v1, %v1360_v58  ;;  %v690_v25 = vshll.u32 %v5468_v5, 16  ;;  %v3677_v56 = vrot.slane %v5203_v33, 9  ;;  %v5498_v58 = vld [vmem:[%s5033_s24 + $0xbc] sm:$0x1] }
  0x67   : > { %v5487_v16 = vcombine.low %v1358_v28, %v1361_v19  ;;  %v677_v62 = vor.u32 %v676_v27, %v673_v43  ;;  %v1364_v24 = vrot.slane %v5208_v4, 5  ;;  %v687_v53 = vor.u32 %v686_v18, %v682_v31 }
  0x68   : > { %6377 = vst [vmem:[#allocation23_spill] sm:$0xff] %v5482_v42  ;;  %4063 = vmatmul.mubr.msk.bf16.gmra.mrb[24].mxu1 %vm783_vm2, %v5482_v42  ;;  %v692_v57 = vrot.slane %v690_v25, 5  ;;  %v1367_v52 = vrot.slane %v5222_v2, 5  ;;  %v695_v1 = vshrl.u32 %v5480_v51, 16  ;;  %v698_v63 = vshll.u32 %v5480_v51, 16 }
  0x69   : > { %6378 = vst [vmem:[#allocation24_spill] sm:$0xff] %v5487_v16  ;;  %4227 = vmatmul.mubr.msk.bf16.gmra.mrb[8].mxu0 %vm783_vm2, %v5487_v16  ;;  %v678_v28 = vrot.slane %v677_v62, 4  ;;  %v1365_v43 = vsel %vm5262_vm6, %v3677_v56, %v1364_v24  ;;  %v1366_v38 = vrot.slane %v1364_v24, 4  ;;  %v688_v9 = vrot.slane %v687_v53, 4 }
  0x6a   : > { %v697_v27 = vrot.slane %v695_v1, 4  ;;  %v704_v19 = vshll.u32 %v5492_v47, 16  ;;  %v708_v2 = vshrl.u32 %v5492_v47, 16  ;;  %v700_v42 = vrot.slane %v698_v63, 5 }
  0x6b   : > { %v683_v18 = vsel %vm5072_vm3, %v678_v28, %v682_v31  ;;  %v1368_v25 = vsel %vm5262_vm6, %v1366_v38, %v1367_v52  ;;  %v714_v62 = vshll.u32 %v5498_v58, 16  ;;  %v693_v56 = vsel %vm5072_vm3, %v688_v9, %v692_v57 }
  0x6c   : > { %v5515_v24 = vcombine.low %v1365_v43, %v1368_v25  ;;  %v706_v53 = vrot.slane %v704_v19, 5  ;;  %v710_v1 = vrot.slane %v708_v2, 4  ;;  %v5517_v16 = vcombine.low %v683_v18, %v693_v56 }
  0x6d   : > { %v701_v10 = vor.u32 %v700_v42, %v697_v27  ;;  %v716_v32 = vrot.slane %v714_v62, 5  ;;  %v3678_v33 = vrot.slane %v5226_v8, 9  ;;  %v1371_v52 = vrot.slane %v5231_v17, 5 }
  0x6e   : > { %4230 = vmatprep.mubr.msk.bf16.mxu0 %vm783_vm2, %v5515_v24  ;;  %v711_v31 = vor.u32 %v710_v1, %v706_v53  ;;  %v1374_v28 = vrot.slane %v5245_v37, 5  ;;  %v3679_v57 = vrot.slane %v5253_v48, 9  ;;  %4066 = vmatprep.mubr.msk.bf16.mxu1 %vm783_vm2, %v5517_v16  ;;  %v3636_v42 = vcombine.low %v5041_v6, %v5044_v7 }
  0x6f   : > { %v702_v43 = vrot.slane %v701_v10, 4  ;;  %v1378_v38 = vrot.slane %v5269_v23, 5  ;;  %v1381_v63 = vrot.slane %v5276_v26, 5  ;;  %v1372_v27 = vsel %vm5262_vm6, %v3678_v33, %v1371_v52 }
  0x70   : > { %v712_v9 = vrot.slane %v711_v31, 4  ;;  %v1373_v19 = vrot.slane %v1371_v52, 4  ;;  %v1385_v37 = vrot.slane %v5300_v20, 5  ;;  %v3680_v6 = vrot.slane %v5283_v40, 9 }
  0x71   : > { %v707_v2 = vsel %vm5072_vm3, %v702_v43, %v706_v53  ;;  %v1379_v10 = vsel %vm5262_vm6, %v3679_v57, %v1378_v38  ;;  %v1380_v18 = vrot.slane %v1378_v38, 4  ;;  %v1388_v33 = vrot.slane %v5313_v22, 5 }
  0x72   : > { %v717_v7 = vsel %vm5072_vm3, %v712_v9, %v716_v32  ;;  %v1375_v26 = vsel %vm5262_vm6, %v1373_v19, %v1374_v28  ;;  %v1387_v25 = vrot.slane %v1385_v37, 4  ;;  %v3681_v31 = vrot.slane %v5328_v44, 9 }
  0x73   : > { %v5544_v62 = vcombine.low %v707_v2, %v717_v7  ;;  %v5546_v56 = vcombine.low %v1372_v27, %v1375_v26  ;;  %v1382_v53 = vsel %vm5262_vm6, %v1380_v18, %v1381_v63  ;;  %v1392_v52 = vrot.slane %v5344_v12, 5  ;;  %v4696_v7 = vld [vmem:[%s6319_s1 + $0x28] sm:$0xff]  }
  0x74   : > { %v5550_v1 = vcombine.low %v1379_v10, %v1382_v53  ;;  %v1395_v22 = vrot.slane %v5350_v13, 5  ;;  %v1386_v32 = vsel %vm5262_vm6, %v3680_v6, %v1385_v37  ;;  %v1389_v28 = vsel %vm5262_vm6, %v1387_v25, %v1388_v33 }
  0x75   : > { %4067 = vmatmul.mubr.msk.bf16.gmra.mrb[28].mxu1 %vm783_vm2, %v5544_v62  ;;  %4231 = vmatmul.mubr.msk.bf16.gmra.mrb[12].mxu0 %vm783_vm2, %v5546_v56  ;;  %v1394_v57 = vrot.slane %v1392_v52, 4  ;;  %v1399_v43 = vrot.slane %v5388_v59, 5  ;;  %v1406_v38 = vrot.slane %v5421_v36, 5  ;;  %v1393_v63 = vsel %vm5262_vm6, %v3681_v31, %v1392_v52 }
  0x76   : > { %4074 = vmatprep.mubr.msk.bf16.mxu1 %vm783_vm2, %v3636_v42  ;;  %4234 = vmatprep.mubr.msk.bf16.mxu0 %vm783_vm2, %v5550_v1  ;;  %v5572_v42 = vcombine.low %v1386_v32, %v1389_v28  ;;  %v3682_v9 = vrot.slane %v5374_v41, 9  ;;  %v1402_v19 = vrot.slane %v5393_v15, 5  ;;  %v5578_v37 = vcombine.low %v5068_v29, %v5081_v35 }
  0x77   : > { %v1396_v13 = vsel %vm5262_vm6, %v1394_v57, %v1395_v22  ;;  %v1401_v27 = vrot.slane %v1399_v43, 4  ;;  %v3683_v2 = vrot.slane %v5414_v60, 9  ;;  %v1408_v18 = vrot.slane %v1406_v38, 4 }
  0x78   : > { %v5581_v10 = vcombine.low %v1393_v63, %v1396_v13  ;;  %v1409_v6 = vrot.slane %v5435_v50, 5  ;;  %v1413_v26 = vrot.slane %v5454_v3, 5  ;;  %v1400_v29 = vsel %vm5262_vm6, %v3682_v9, %v1399_v43 }
  0x79   : > { %v1403_v35 = vsel %vm5262_vm6, %v1401_v27, %v1402_v19  ;;  %v5601_v15 = vcombine.low %v5095_v49, %v5098_v54  ;;  %v1407_v50 = vsel %vm5262_vm6, %v3683_v2, %v1406_v38  ;;  %v5607_v25 = vcombine.low %v5226_v8, %v5231_v17  ;;  %v5622_v54 = vld [vmem:[%s6319_s1 + $0x30] sm:$0xff]  }
  0x7a   : > { %v3684_v33 = vrot.slane %v5445_v14, 9  ;;  %v1420_v53 = vrot.slane %v5492_v47, 5  ;;  %v5617_v49 = vcombine.low %v5253_v48, %v5269_v23  ;;  %v5624_v8 = vcombine.low %v1400_v29, %v1403_v35 }
  0x7b   : > { %v1415_v17 = vrot.slane %v1413_v26, 4  ;;  %v1416_v31 = vrot.slane %v5468_v5, 5  ;;  %v5629_v52 = vcombine.low %v5283_v40, %v5300_v20  ;;  %v5633_v22 = vcombine.low %v5328_v44, %v5344_v12  ;;  %v323_v5 = vld [vmem:[%s5033_s24 + $0xc8] sm:$0x1] }
  0x7c   : > { %v5637_v48 = vcombine.low %v5374_v41, %v5388_v59  ;;  %v5641_v23 = vcombine.low %v5414_v60, %v5421_v36  ;;  %v5645_v32 = vcombine.low %v5445_v14, %v5454_v3  ;;  %v5649_v40 = vcombine.low %v5111_v0, %v5124_v21  ;;  %v5660_v14 = vld [vmem:[%s5033_s24 + $0xc4] sm:$0xf] }
  0x7d   : > { %4075 = vmatmul.mubr.msk.bf16.vlgmr.msra.gmra.mrb[0].mxu1 %vm783_vm2, %v5078_v34  ;;  %4235 = vmatmul.mubr.msk.bf16.gmra.mrb[16].mxu0 %vm783_vm2, %v5572_v42  ;;  %v5655_v44 = vcombine.low %v5480_v51, %v5492_v47  ;;  %v3685_v36 = vrot.slane %v5480_v51, 9  ;;  %v1422_v60 = vrot.slane %v1420_v53, 4  ;;  %v1423_v12 = vrot.slane %v5498_v58, 5  ;;  %v5681_v51 = vld [vmem:[%s5033_s24 + $0xc0] sm:$0xf] }
  0x7e   : > { %4107 = vmatpush3.bf16.msra.mxu1 %v5150_v46  ;;  %4078 = vmatprep.mubr.msk.bf16.mxu1 %vm783_vm2, %v5578_v37  ;;  %v1410_v46 = vsel %vm5262_vm6, %v1408_v18, %v1409_v6  ;;  %v1414_v0 = vsel %vm5262_vm6, %v3684_v33, %v1413_v26  ;;  %v1417_v21 = vsel %vm5262_vm6, %v1415_v17, %v1416_v31  ;;  %v2192_v41 = vrot.slane %v5660_v14, 5 }
  0x7f   : > { %4238 = vmatprep.mubr.msk.bf16.mxu0 %vm783_vm2, %v5581_v10  ;;  %4108 = vmatprep.subr.bf16.mxu1 %v4696_v7  ;;  %v5651_v20 = vcombine.low %v1407_v50, %v1410_v46  ;;  %v1421_v59 = vsel %vm5262_vm6, %v3685_v36, %v1420_v53  ;;  %v1424_v3 = vsel %vm5262_vm6, %v1422_v60, %v1423_v12  ;;  %v1950_v57 = vshrl.u32 %v5681_v51, 16  ;;  %v6379_v46 = vld [vmem:[#allocation7_spill] sm:$0xff]  ;;  %v6380_v60 = vld [vmem:[#allocation18_spill] sm:$0xff]  ;;  %v4710_v12 = vld [vmem:[%s6319_s1 + $0x80] sm:$0xff]  }
  0x80   : > { %v5686_v47 = vcombine.low %v5139_v39, %v5145_v45  ;;  %v5688_v58 = vcombine.low %v1414_v0, %v1417_v21  ;;  %v5692_v28 = vcombine.low %v5161_v55, %v5165_v61  ;;  %v1953_v43 = vshll.u32 %v5681_v51, 16  ;;  %v4840_v0 = vld [vmem:[%s5033_s24 + $0x4] sm:$0xf] }
  0x81   : > { %v1959_v38 = vshll.u32 %v5660_v14, 16  ;;  %v1963_v63 = vshrl.u32 %v5660_v14, 16  ;;  %v5698_v13 = vcombine.low %v1421_v59, %v1424_v3  ;;  %v3770_v9 = vrot.slane %v5681_v51, 9  ;;  %v4842_v3 = vld [vmem:[%s5033_s24] sm:$0xf] }
  0x82   : > { %4109 = vmatpush3.bf16.msra.mxu1 %v4696_v7  ;;  %v2194_v39 = vrot.slane %v2192_v41, 4  ;;  %v2195_v45 = vrot.slane %v323_v5, 5  ;;  %v1952_v27 = vrot.slane %v1950_v57, 4  ;;  %v1955_v19 = vrot.slane %v1953_v43, 5 }
  0x83   : > { %4142 = vmatprep.subr.bf16.mxu1 %v5622_v54  ;;  %v1961_v2 = vrot.slane %v1959_v38, 5  ;;  %v1965_v18 = vrot.slane %v1963_v63, 4  ;;  %v1969_v6 = vshll.u32 %v323_v5, 16  ;;  %v2193_v7 = vsel %vm5262_vm6, %v3770_v9, %v2192_v41  ;;  %v4841_v41 = vld [vmem:[%s5033_s24 + $0x8] sm:$0x1]  ;;  %v4709_v9 = vld [vmem:[%s6319_s1 + $0x38] sm:$0xff]  }
  0x84   : > { %v1956_v55 = vor.u32 %v1955_v19, %v1952_v27  ;;  %v2196_v26 = vsel %vm5262_vm6, %v2194_v39, %v2195_v45  ;;  %v5715_v33 = vcombine.low %v6379_v46, %v5208_v4  ;;  %v4706_v4 = vld [vmem:[%s6319_s1 + $0x78] sm:$0xff]   ;;  %v1315_v21 = vrot.slane %v4840_v0, 5  ;;  %v6382_v45 = vld [vmem:[#allocation14_spill] sm:$0xff]  ;;  %v4843_v27 = vld [vmem:[%s6319_s1 + $0x40] sm:$0xff]  }
  0x85   : > { %4079 = vmatmul.mubr.msk.bf16.gmra.mrb[4].mxu1 %vm783_vm2, %v5601_v15  ;;  %4239 = vmatmul.mubr.msk.bf16.gmra.mrb[20].mxu0 %vm783_vm2, %v5624_v8  ;;  %v1966_v61 = vor.u32 %v1965_v18, %v1961_v2  ;;  %v1971_v50 = vrot.slane %v1969_v6, 5  ;;  %v5717_v53 = vcombine.low %v2193_v7, %v2196_v26  ;;  %v1318_v59 = vrot.slane %v4841_v41, 5  ;;  %v6381_v39 = vld [vmem:[#allocation12_spill] sm:$0xff]  ;;  %v6385_v18 = vld [vmem:[#allocation22_spill] sm:$0xff]  ;;  %v5817_v6 = vld [vmem:[%s5033_s24 + $0xd0] sm:$0xf] }
  0x86   : > { %4082 = vmatprep.mubr.msk.bf16.mxu1 %vm783_vm2, %v5649_v40  ;;  %4242 = vmatprep.mubr.msk.bf16.mxu0 %vm783_vm2, %v5651_v20  ;;  %v1957_v29 = vrot.slane %v1956_v55, 4  ;;  %v3670_v5 = vrot.slane %v4842_v3, 9  ;;  %v1317_v57 = vrot.slane %v1315_v21, 4  ;;  %v6383_v19 = vld [vmem:[#allocation16_spill] sm:$0xff]  ;;  %v4711_v7 = vld [vmem:[%s6319_s1 + $0x88] sm:$0xff]   ;;  %v6392_v46 = vld [vmem:[#allocation11_spill] sm:$0xff] }
  0x87   : > { %v1967_v35 = vrot.slane %v1966_v61, 4  ;;  %v6386_v55 = vld [vmem:[#allocation24_spill] sm:$0xff]  ;;  %v5814_v61 = vld [vmem:[%s5033_s24 + $0xcc] sm:$0xf]  ;;  %v6397_v41 = vld [vmem:[#allocation21_spill] sm:$0xff]  ;;  %v2874_v30 = vrot.slane %v5817_v6, 5 }
  0x88   : > { %v1962_v17 = vsel %vm5072_vm3, %v1957_v29, %v1961_v2  ;;  %v1316_v43 = vsel %vm5262_vm6, %v3670_v5, %v1315_v21  ;;  %v1319_v38 = vsel %vm5262_vm6, %v1317_v57, %v1318_v59  ;;  %v5803_v2 = vcombine.low %v5681_v51, %v5660_v14  ;;  %v6387_v51 = vld [vmem:[#allocation5_spill] sm:$0xff]  ;;  %v6388_v26 = vld [vmem:[#allocation6_spill] sm:$0xff]  ;;  %v6389_v29 = vld [vmem:[#allocation8_spill] sm:$0xff] }
  0x89   : > { %v1972_v31 = vsel %vm5072_vm3, %v1967_v35, %v1971_v50  ;;  %v3690_v63 = vcombine.low %v1316_v43, %v1319_v38  ;;  %v3798_v14 = vcombine.low %v5814_v61, %v5817_v6  ;;  %v6390_v35 = vld [vmem:[#allocation9_spill] sm:$0xff]  ;;  %v6391_v50 = vld [vmem:[#allocation10_spill] sm:$0xff]  ;;  %v2635_v0 = vshll.u32 %v5814_v61, 16  ;;  %v326_v43 = vld [vmem:[%s5033_s24 + $0xd4] sm:$0x1]  ;;  %s4849_s24 = sshll.u32 %s4925_s29, 4  ;;  %s4850_s24 = int_to_ptr.vmem [resolvable:$false] %s4849_s24 }
  0x8a   : > { %v5723_v36 = vcombine.low %v1962_v17, %v1972_v31  ;;  %v6393_v17 = vld [vmem:[#allocation13_spill] sm:$0xff]  ;;  %v6394_v31 = vld [vmem:[#allocation15_spill] sm:$0xff]  ;;  %v2645_v21 = vshrl.u32 %v5817_v6, 16  ;;  %s4851_s30 = scalar_lea.vmem %s4850_s24, 8192  ;;  %p4852_p1 = scmp.lt.s32.totalorder %s6264_s13, %s4850_s24 }
  0x8b   : > { %v2637_v3 = vrot.slane %v2635_v0, 5  ;;  %p4853_p2 = scmp.lt.s32.totalorder %s4851_s30, %s4845_s26 }
  0x8c   : > { %v2647_v57 = vrot.slane %v2645_v21, 4 }
  0x8d   : > { %4083 = vmatmul.mubr.msk.bf16.gmra.mrb[8].mxu1 %vm783_vm2, %v5686_v47  ;;  %4243 = vmatmul.mubr.msk.bf16.gmra.mrb[24].mxu0 %vm783_vm2, %v5688_v58  ;;  %p4854_p3 = por %p4853_p2, %p4852_p1 }
  0x8e   : > { %4086 = vmatprep.mubr.msk.bf16.mxu1 %vm783_vm2, %v5692_v28  ;;  %4246 = vmatprep.mubr.msk.bf16.mxu0 %vm783_vm2, %v5698_v13 }
  0x8f   : > { %p4855_p5 = pnand %p4854_p3, %p4848_p0 }
  0x95   : > { %4087 = vmatmul.mubr.msk.bf16.gmra.mrb[12].mxu1 %vm783_vm2, %v5715_v33  ;;  %4247 = vmatmul.mubr.msk.bf16.gmra.mrb[28].mxu0 %vm783_vm2, %v5717_v53 }
  0x96   : > { %4090 = vmatprep.mubr.msk.bf16.mxu1 %vm783_vm2, %v5607_v25  ;;  %4254 = vmatprep.mubr.msk.bf16.mxu0 %vm783_vm2, %v5578_v37 }
  0x9d   : > { %4091 = vmatmul.mubr.msk.bf16.gmra.mrb[16].mxu1 %vm783_vm2, %v5617_v49  ;;  %4255 = vmatmul.mubr.msk.bf16.vlgmr.msra.gmra.mrb[0].mxu0 %vm783_vm2, %v5601_v15 }
  0x9e   : > { %4287 = vmatpush3.bf16.msra.mxu0 %v6380_v60  ;;  %4094 = vmatprep.mubr.msk.bf16.mxu1 %vm783_vm2, %v5629_v52  ;;  %v6396_v60 = vld [vmem:[#allocation20_spill] sm:$0xff] }
  0x9f   : > { %4258 = vmatprep.mubr.msk.bf16.mxu0 %vm783_vm2, %v5649_v40  ;;  %4288 = vmatprep.subr.bf16.mxu0 %v4706_v4 }
  0xa2   : > { %4289 = vmatpush3.bf16.msra.mxu0 %v4706_v4  ;;  %v6395_v4 = vld [vmem:[#allocation17_spill] sm:$0xff] }
  0xa3   : > { %4322 = vmatprep.subr.bf16.mxu0 %v4710_v12 }
  0xa5   : > { %4095 = vmatmul.mubr.msk.bf16.gmra.mrb[20].mxu1 %vm783_vm2, %v5633_v22  ;;  %4259 = vmatmul.mubr.msk.bf16.gmra.mrb[4].mxu0 %vm783_vm2, %v5686_v47 }
  0xa6   : > { %4098 = vmatprep.mubr.msk.bf16.mxu1 %vm783_vm2, %v5637_v48  ;;  %4262 = vmatprep.mubr.msk.bf16.mxu0 %vm783_vm2, %v5692_v28 }
  0xad   : > { %4099 = vmatmul.mubr.msk.bf16.gmra.mrb[24].mxu1 %vm783_vm2, %v5641_v23  ;;  %4263 = vmatmul.mubr.msk.bf16.gmra.mrb[8].mxu0 %vm783_vm2, %v5715_v33 }
  0xae   : > { %4102 = vmatprep.mubr.msk.bf16.mxu1 %vm783_vm2, %v5645_v32  ;;  %4266 = vmatprep.mubr.msk.bf16.mxu0 %vm783_vm2, %v5607_v25 }
  0xb5   : > { %4103 = vmatmul.mubr.msk.bf16.gmra.mrb[28].mxu1 %vm783_vm2, %v5655_v44  ;;  %4267 = vmatmul.mubr.msk.bf16.gmra.mrb[12].mxu0 %vm783_vm2, %v5617_v49 }
  0xb6   : > { %4110 = vmatprep.mubr.msk.bf16.mxu1 %vm783_vm2, %v3690_v63  ;;  %4270 = vmatprep.mubr.msk.bf16.mxu0 %vm783_vm2, %v5629_v52 }
  0xbd   : > { %4111 = vmatmul.mubr.msk.bf16.vlgmr.msra.gmra.mrb[0].mxu1 %vm783_vm2, %v6381_v39  ;;  %4271 = vmatmul.mubr.msk.bf16.gmra.mrb[16].mxu0 %vm783_vm2, %v5633_v22 }
  0xbe   : > { %4143 = vmatpush3.bf16.msra.mxu1 %v5622_v54  ;;  %4114 = vmatprep.mubr.msk.bf16.mxu1 %vm783_vm2, %v6382_v45  ;;  %v6384_v54 = vld [vmem:[#allocation19_spill] sm:$0xff] }
  0xbf   : > { %4274 = vmatprep.mubr.msk.bf16.mxu0 %vm783_vm2, %v5637_v48  ;;  %4144 = vmatprep.subr.bf16.mxu1 %v4709_v9 }
  0xc2   : > { %4145 = vmatpush3.bf16.msra.mxu1 %v4709_v9  ;;  %v2651_v9 = vshll.u32 %v326_v43, 16 }
  0xc3   : > { %4358 = vmatprep.subr.bf16.mxu1 %v4843_v27 }
  0xc5   : > { %4115 = vmatmul.mubr.msk.bf16.gmra.mrb[4].mxu1 %vm783_vm2, %v6383_v19  ;;  %4275 = vmatmul.mubr.msk.bf16.gmra.mrb[20].mxu0 %vm783_vm2, %v5641_v23 }
  0xc6   : > { %4118 = vmatprep.mubr.msk.bf16.mxu1 %vm783_vm2, %v6384_v54  ;;  %4278 = vmatprep.mubr.msk.bf16.mxu0 %vm783_vm2, %v5645_v32 }
  0xcd   : > { %4119 = vmatmul.mubr.msk.bf16.gmra.mrb[8].mxu1 %vm783_vm2, %v6385_v18  ;;  %4279 = vmatmul.mubr.msk.bf16.gmra.mrb[24].mxu0 %vm783_vm2, %v5655_v44 }
  0xce   : > { %4122 = vmatprep.mubr.msk.bf16.mxu1 %vm783_vm2, %v6386_v55  ;;  %4282 = vmatprep.mubr.msk.bf16.mxu0 %vm783_vm2, %v5803_v2 }
  0xd5   : > { %4123 = vmatmul.mubr.msk.bf16.gmra.mrb[12].mxu1 %vm783_vm2, %v5515_v24  ;;  %4283 = vmatmul.mubr.msk.bf16.gmra.mrb[28].mxu0 %vm783_vm2, %v3798_v14  ;;  %v2653_v14 = vrot.slane %v2651_v9, 5 }
  0xd6   : > { %4126 = vmatprep.mubr.msk.bf16.mxu1 %vm783_vm2, %v5546_v56  ;;  %4290 = vmatprep.mubr.msk.bf16.mxu0 %vm783_vm2, %v6387_v51 }
  0xdd   : > { %4127 = vmatmul.mubr.msk.bf16.gmra.mrb[16].mxu1 %vm783_vm2, %v5550_v1  ;;  %4291 = vmatmul.mubr.msk.bf16.vlgmr.msra.gmra.mrb[0].mxu0 %vm783_vm2, %v6388_v26 }
  0xde   : > { %4323 = vmatpush3.bf16.msra.mxu0 %v4710_v12  ;;  %4130 = vmatprep.mubr.msk.bf16.mxu1 %vm783_vm2, %v5572_v42  ;;  %v2632_v12 = vshrl.u32 %v5814_v61, 16 }
  0xdf   : > { %4294 = vmatprep.mubr.msk.bf16.mxu0 %vm783_vm2, %v6389_v29  ;;  %4324 = vmatprep.subr.bf16.mxu0 %v4711_v7 }
  0xe0   : > { %v2634_v59 = vrot.slane %v2632_v12, 4 }
  0xe2   : > { %4325 = vmatpush3.bf16.msra.mxu0 %v4711_v7  ;;  %v2638_v38 = vor.u32 %v2637_v3, %v2634_v59 }
  0xe4   : > { %v2639_v39 = vrot.slane %v2638_v38, 4 }
  0xe5   : > { %4131 = vmatmul.mubr.msk.bf16.gmra.mrb[20].mxu1 %vm783_vm2, %v5581_v10  ;;  %4295 = vmatmul.mubr.msk.bf16.gmra.mrb[4].mxu0 %vm783_vm2, %v6390_v35 }
  0xe6   : > { %4134 = vmatprep.mubr.msk.bf16.mxu1 %vm783_vm2, %v5624_v8  ;;  %4298 = vmatprep.mubr.msk.bf16.mxu0 %vm783_vm2, %v6391_v50 }
  0xed   : > { %4135 = vmatmul.mubr.msk.bf16.gmra.mrb[24].mxu1 %vm783_vm2, %v5651_v20  ;;  %4299 = vmatmul.mubr.msk.bf16.gmra.mrb[8].mxu0 %vm783_vm2, %v6392_v46 }
  0xee   : > { %4138 = vmatprep.mubr.msk.bf16.mxu1 %vm783_vm2, %v5688_v58  ;;  %4302 = vmatprep.mubr.msk.bf16.mxu0 %vm783_vm2, %v6393_v17 }
  0xf5   : > { %4139 = vmatmul.mubr.msk.bf16.gmra.mrb[28].mxu1 %vm783_vm2, %v5698_v13  ;;  %4303 = vmatmul.mubr.msk.bf16.gmra.mrb[12].mxu0 %vm783_vm2, %v6394_v31 }
  0xf6   : > { %4146 = vmatprep.mubr.msk.bf16.mxu1 %vm783_vm2, %v5078_v34  ;;  %4306 = vmatprep.mubr.msk.bf16.mxu0 %vm783_vm2, %v6395_v4  ;;  %v2641_v34 = vshll.u32 %v5817_v6, 16 }
  0xf8   : > { %v2643_v5 = vrot.slane %v2641_v34, 5 }
  0xfa   : > { %v2648_v63 = vor.u32 %v2647_v57, %v2643_v5 }
  0xfd   : > { %4147 = vmatmul.mubr.msk.bf16.vlgmr.msra.gmra.mrb[0].mxu1 %vm783_vm2, %v5578_v37  ;;  %4307 = vmatmul.mubr.msk.bf16.gmra.mrb[16].mxu0 %vm783_vm2, %v6396_v60  ;;  %v4844_v37 = vld [vmem:[%s6319_s1 + $0x48] sm:$0xff]  }
  0xfe   : > { %4360 = vmatpush3.bf16.msra.mxu1 %v4843_v27  ;;  %4150 = vmatprep.mubr.msk.bf16.mxu1 %vm783_vm2, %v5601_v15  ;;  %v6398_v15 = vld [vmem:[#allocation23_spill] sm:$0xff]  ;;  %v2649_v27 = vrot.slane %v2648_v63, 4 }
  0xff   : > { %4310 = vmatprep.mubr.msk.bf16.mxu0 %vm783_vm2, %v6397_v41  ;;  %4359 = vmatprep.subr.bf16.mxu1 %v4844_v37 }
 0x102   : > { %4361 = vmatpush3.bf16.msra.mxu1 %v4844_v37 }
 0x105   : > { %4151 = vmatmul.mubr.msk.bf16.gmra.mrb[4].mxu1 %vm783_vm2, %v5649_v40  ;;  %4311 = vmatmul.mubr.msk.bf16.gmra.mrb[20].mxu0 %vm783_vm2, %v6398_v15  ;;  %v2644_v40 = vsel %vm5072_vm3, %v2639_v39, %v2643_v5 }
 0x106   : > { %4154 = vmatprep.mubr.msk.bf16.mxu1 %vm783_vm2, %v5686_v47  ;;  %4314 = vmatprep.mubr.msk.bf16.mxu0 %vm783_vm2, %v5517_v16  ;;  %v2654_v47 = vsel %vm5072_vm3, %v2649_v27, %v2653_v14 }
 0x107   : > { %v3821_v51 = vcombine.low %v2644_v40, %v2654_v47 }
 0x10d   : > { %4155 = vmatmul.mubr.msk.bf16.gmra.mrb[8].mxu1 %vm783_vm2, %v5692_v28  ;;  %4315 = vmatmul.mubr.msk.bf16.gmra.mrb[24].mxu0 %vm783_vm2, %v5544_v62 }
 0x10e   : > { %4158 = vmatprep.mubr.msk.bf16.mxu1 %vm783_vm2, %v5715_v33  ;;  %4318 = vmatprep.mubr.msk.bf16.mxu0 %vm783_vm2, %v5723_v36 }
 0x115   : > { %4159 = vmatmul.mubr.msk.bf16.gmra.mrb[12].mxu1 %vm783_vm2, %v5607_v25  ;;  %4319 = vmatmul.mubr.msk.bf16.gmra.mrb[28].mxu0 %vm783_vm2, %v3821_v51 }
 0x116   : > { %4162 = vmatprep.mubr.msk.bf16.mxu1 %vm783_vm2, %v5617_v49  ;;  %4326 = vmatprep.mubr.msk.bf16.mxu0 %vm783_vm2, %v6382_v45 }
 0x11d   : > { %4163 = vmatmul.mubr.msk.bf16.gmra.mrb[16].mxu1 %vm783_vm2, %v5629_v52  ;;  %4327 = vmatmul.mubr.msk.bf16.vlgmr.msra.gmra.mrb[0].mxu0 %vm783_vm2, %v6383_v19 }
 0x11e   : > { %4166 = vmatprep.mubr.msk.bf16.mxu1 %vm783_vm2, %v5633_v22  ;;  %4330 = vmatprep.mubr.msk.bf16.mxu0 %vm783_vm2, %v6384_v54 }
 0x125   : > { %4167 = vmatmul.mubr.msk.bf16.gmra.mrb[20].mxu1 %vm783_vm2, %v5637_v48  ;;  %4331 = vmatmul.mubr.msk.bf16.gmra.mrb[4].mxu0 %vm783_vm2, %v6385_v18 }
 0x126   : > { %4170 = vmatprep.mubr.msk.bf16.mxu1 %vm783_vm2, %v5641_v23  ;;  %4334 = vmatprep.mubr.msk.bf16.mxu0 %vm783_vm2, %v6386_v55 }
 0x12d   : > { %4171 = vmatmul.mubr.msk.bf16.gmra.mrb[24].mxu1 %vm783_vm2, %v5645_v32  ;;  %4335 = vmatmul.mubr.msk.bf16.gmra.mrb[8].mxu0 %vm783_vm2, %v5515_v24  ;;  %v3840_v24 = vrot.slane %v5814_v61, 9 }
 0x12e   : > { %4174 = vmatprep.mubr.msk.bf16.mxu1 %vm783_vm2, %v5655_v44  ;;  %4338 = vmatprep.mubr.msk.bf16.mxu0 %vm783_vm2, %v5546_v56  ;;  %v2876_v56 = vrot.slane %v2874_v30, 4 }
 0x135   : > { %4175 = vmatmul.mubr.msk.bf16.gmra.mrb[28].mxu1 %vm783_vm2, %v5803_v2  ;;  %4339 = vmatmul.mubr.msk.bf16.gmra.mrb[12].mxu0 %vm783_vm2, %v5550_v1  ;;  %v2877_v1 = vrot.slane %v326_v43, 5 }
 0x136   : > { %4198 = vmatprep.mubr.msk.bf16.mxu1 %vm783_vm2, %v6394_v31  ;;  %4342 = vmatprep.mubr.msk.bf16.mxu0 %vm783_vm2, %v5572_v42  ;;  %v2875_v42 = vsel %vm5262_vm6, %v3840_v24, %v2874_v30 }
 0x13d   : > { %4199 = vmatmul.mubr.msk.bf16.vlgmr.msra.gmra.mrb[16].mxu1 %vm783_vm2, %v6395_v4  ;;  %4343 = vmatmul.mubr.msk.bf16.gmra.mrb[16].mxu0 %vm783_vm2, %v5581_v10  ;;  %v2878_v10 = vsel %vm5262_vm6, %v2876_v56, %v2877_v1 }
 0x13e   : > { %4202 = vmatprep.mubr.msk.bf16.mxu1 %vm783_vm2, %v6396_v60  ;;  %4346 = vmatprep.mubr.msk.bf16.mxu0 %vm783_vm2, %v5624_v8  ;;  %v3845_v25 = vcombine.low %v2875_v42, %v2878_v10 }
 0x145   : > { %4203 = vmatmul.mubr.msk.bf16.gmra.mrb[20].mxu1 %vm783_vm2, %v6397_v41  ;;  %4347 = vmatmul.mubr.msk.bf16.gmra.mrb[20].mxu0 %vm783_vm2, %v5651_v20 }
 0x146   : > { %4206 = vmatprep.mubr.msk.bf16.mxu1 %vm783_vm2, %v6398_v15  ;;  %4350 = vmatprep.mubr.msk.bf16.mxu0 %vm783_vm2, %v5688_v58 }
 0x14d   : > { %4207 = vmatmul.mubr.msk.bf16.gmra.mrb[24].mxu1 %vm783_vm2, %v5517_v16  ;;  %4351 = vmatmul.mubr.msk.bf16.gmra.mrb[24].mxu0 %vm783_vm2, %v5698_v13 }
 0x14e   : > { %4210 = vmatprep.mubr.msk.bf16.mxu1 %vm783_vm2, %v5544_v62  ;;  %4354 = vmatprep.mubr.msk.bf16.mxu0 %vm783_vm2, %v5717_v53 }
 0x155   : > { %4211 = vmatmul.mubr.msk.bf16.gmra.mrb[28].mxu1 %vm783_vm2, %v5723_v36  ;;  %4355 = vmatmul.mubr.msk.bf16.gmra.mrb[28].mxu0 %vm783_vm2, %v3845_v25  ;;  %v5984_v36 = vld [vmem:[%s6320_s2] ss:$0 sm:$0xff] }
 0x1d0   : > { %v4148_v16 = vpop.f32.mrb[0].mxu1 }
 0x1d1   : > { %v1790_v49 = vpop.f32.mrb[1].mxu1 }
 0x1d2   : > { %v4149_v8 = vpop.f32.mrb[2].mxu1 }
 0x1d3   : > { %v1793_v52 = vpop.f32.mrb[3].mxu1 }
 0x1d8   : > { %v4152_v62 = vpop.f32.mrb[4].mxu1 }
 0x1d9   : > { %v1806_v22 = vpop.f32.mrb[5].mxu1 }
 0x1da   : > { %v4153_v48 = vpop.f32.mrb[6].mxu1 }
 0x1db   : > { %v1809_v23 = vpop.f32.mrb[7].mxu1 }
 0x1e0   : > { %v4156_v32 = vpop.f32.mrb[8].mxu1 }
 0x1e1   : > { %v1822_v20 = vpop.f32.mrb[9].mxu1 }
 0x1e2   : > { %v4157_v44 = vpop.f32.mrb[10].mxu1 }
 0x1e3   : > { %v5971_v58 = vpop.f32.mrb[11].mxu1 }
 0x1e8   : > { %v5973_v11 = vpop.f32.mrb[12].mxu1 }
 0x1e9   : > { %v5975_v28 = vpop.f32.mrb[13].mxu1 }
 0x1ea   : > { %v5977_v13 = vpop.f32.mrb[14].mxu1 }
 0x1eb   : > { %v5979_v33 = vpop.f32.mrb[15].mxu1 }
 0x1f0   : > { %v4328_v53 = vpop.f32.mrb[0].mxu0 }
 0x1f1   : > { %v4362_v45 = vadd.f32 %v4328_v53, %v4148_v16  ;;  %v2936_v19 = vpop.f32.mrb[1].mxu0 }
 0x1f2   : > { %v4363_v54 = vadd.f32 %v2936_v19, %v1790_v49  ;;  %v4329_v2 = vpop.f32.mrb[2].mxu0 }
 0x1f3   : > { %v5987_v18 = vadd.f32 %v4362_v45, %v5984_v36  ;;  %v4364_v55 = vadd.f32 %v4329_v2, %v4149_v8  ;;  %v2939_v61 = vpop.f32.mrb[3].mxu0 }
 0x1f4   : > { %v5990_v6 = vadd.f32 %v4363_v54, %v5984_v36  ;;  %v4365_v7 = vadd.f32 %v2939_v61, %v1793_v52 }
 0x1f5   : > { %v3136_v26 = vsub.f32 0.0, %v5987_v18  ;;  %v5994_v29 = vadd.f32 %v4364_v55, %v5984_v36 }
 0x1f6   : > { %v3134_v35 = vsub.f32 0.0, %v5990_v6  ;;  %v5998_v50 = vadd.f32 %v4365_v7, %v5984_v36 }
 0x1f7   : > { %v3170_v46 = vmul.f32 1.442695, %v3136_v26  ;;  %v3137_v17 = vsub.f32 0.0, %v5994_v29 }
 0x1f8   : > { %v3166_v31 = vmul.f32 1.442695, %v3134_v35  ;;  %v3135_v4 = vsub.f32 0.0, %v5998_v50  ;;  %v4332_v60 = vpop.f32.mrb[4].mxu0 }
 0x1f9   : > { %4712 = vpow2.f32 %v3170_v46  ;;  %v3172_v12 = vmul.f32 1.442695, %v3137_v17  ;;  %v4366_v0 = vadd.f32 %v4332_v60, %v4152_v62  ;;  %v2952_v21 = vpop.f32.mrb[5].mxu0 }
 0x1fa   : > { %4714 = vpow2.f32 %v3166_v31  ;;  %v3168_v34 = vmul.f32 1.442695, %v3135_v4  ;;  %v4367_v41 = vadd.f32 %v2952_v21, %v1806_v22  ;;  %v4333_v37 = vpop.f32.mrb[6].mxu0 }
 0x1fb   : > { %4716 = vpow2.f32 %v3172_v12  ;;  %v6003_v59 = vadd.f32 %v4366_v0, %v5984_v36  ;;  %v4368_v3 = vadd.f32 %v4333_v37, %v4153_v48  ;;  %v2955_v5 = vpop.f32.mrb[7].mxu0 }
 0x1fc   : > { %4718 = vpow2.f32 %v3168_v34  ;;  %v6006_v57 = vadd.f32 %v4367_v41, %v5984_v36  ;;  %v4369_v43 = vadd.f32 %v2955_v5, %v1809_v23 }
 0x1fd   : > { %v3140_v15 = vsub.f32 0.0, %v6003_v59  ;;  %v6010_v38 = vadd.f32 %v4368_v3, %v5984_v36 }
 0x1fe   : > { %v3138_v63 = vsub.f32 0.0, %v6006_v57  ;;  %v6014_v9 = vadd.f32 %v4369_v43, %v5984_v36 }
 0x1ff   : > { %v3178_v39 = vmul.f32 1.442695, %v3140_v15  ;;  %v3141_v27 = vsub.f32 0.0, %v6010_v38 }
 0x200   : > { %v3174_v14 = vmul.f32 1.442695, %v3138_v63  ;;  %v3139_v40 = vsub.f32 0.0, %v6014_v9  ;;  %v4336_v47 = vpop.f32.mrb[8].mxu0 }
 0x201   : > { %4720 = vpow2.f32 %v3178_v39  ;;  %v3180_v51 = vmul.f32 1.442695, %v3141_v27  ;;  %v4370_v30 = vadd.f32 %v4336_v47, %v4156_v32  ;;  %v2968_v24 = vpop.f32.mrb[9].mxu0 }
 0x202   : > { %4722 = vpow2.f32 %v3174_v14  ;;  %v3176_v56 = vmul.f32 1.442695, %v3139_v40  ;;  %v4371_v1 = vadd.f32 %v2968_v24, %v1822_v20  ;;  %v4337_v42 = vpop.f32.mrb[10].mxu0 }
 0x203   : > { %v4713_v10 = vpop.eup %4712  ;;  %4724 = vpow2.f32 %v3180_v51  ;;  %v6019_v25 = vadd.f32 %v4370_v30, %v5984_v36  ;;  %v4372_v16 = vadd.f32 %v4337_v42, %v4157_v44  ;;  %v2971_v49 = vpop.f32.mrb[11].mxu0 }
 0x204   : > { %v4715_v8 = vpop.eup %4714  ;;  %v3232_v52 = vadd.f32 1.0, %v4713_v10  ;;  %4726 = vpow2.f32 %v3176_v56  ;;  %v6022_v62 = vadd.f32 %v4371_v1, %v5984_v36  ;;  %v4373_v22 = vadd.f32 %v2971_v49, %v5971_v58  ;;  %v3358_v10 = vld [vmem:[%s6046_s8] sm:$0xff] }
 0x205   : > { %v4717_v48 = vpop.eup %4716  ;;  %v3230_v23 = vadd.f32 1.0, %v4715_v8  ;;  %v3144_v32 = vsub.f32 0.0, %v6019_v25  ;;  %v6027_v20 = vadd.f32 %v4372_v16, %v5984_v36 }
 0x206   : > { %v4719_v53 = vpop.eup %4718  ;;  %4728 = vrcp.f32 %v3232_v52  ;;  %v3233_v44 = vadd.f32 1.0, %v4717_v48  ;;  %v3142_v45 = vsub.f32 0.0, %v6022_v62  ;;  %v6031_v19 = vadd.f32 %v4373_v22, %v5984_v36 }
 0x207   : > { %4730 = vrcp.f32 %v3230_v23  ;;  %v3231_v54 = vadd.f32 1.0, %v4719_v53  ;;  %v3186_v2 = vmul.f32 1.442695, %v3144_v32  ;;  %v3145_v58 = vsub.f32 0.0, %v6027_v20  ;;  %v3361_v23 = vld [vmem:[%s6046_s8 + $0x18] sm:$0xff] }
 0x208   : > { %4732 = vrcp.f32 %v3233_v44  ;;  %v3182_v55 = vmul.f32 1.442695, %v3142_v45  ;;  %v3143_v61 = vsub.f32 0.0, %v6031_v19  ;;  %v4340_v7 = vpop.f32.mrb[12].mxu0 }
 0x209   : > { %4734 = vrcp.f32 %v3231_v54  ;;  %v3188_v26 = vmul.f32 1.442695, %v3145_v58  ;;  %v4374_v35 = vadd.f32 %v4340_v7, %v5973_v11  ;;  %v2984_v46 = vpop.f32.mrb[13].mxu0  ;;  %v3359_v58 = vld [vmem:[%s6046_s8 + $0x8] sm:$0xff] }
 0x20a   : > { %4736 = vpow2.f32 %v3186_v2  ;;  %v3184_v17 = vmul.f32 1.442695, %v3143_v61  ;;  %v4375_v31 = vadd.f32 %v2984_v46, %v5975_v28  ;;  %v4341_v4 = vpop.f32.mrb[14].mxu0 }
 0x20b   : > { %v4721_v60 = vpop.eup %4720  ;;  %4738 = vpow2.f32 %v3182_v55  ;;  %v6039_v12 = vadd.f32 %v4374_v35, %v5984_v36  ;;  %v4376_v0 = vadd.f32 %v4341_v4, %v5977_v13  ;;  %v2987_v21 = vpop.f32.mrb[15].mxu0 }
 0x20c   : > { %v4723_v34 = vpop.eup %4722  ;;  %v3236_v11 = vadd.f32 1.0, %v4721_v60  ;;  %4740 = vpow2.f32 %v3188_v26  ;;  %v6049_v28 = vadd.f32 %v4375_v31, %v5984_v36  ;;  %v4377_v41 = vadd.f32 %v2987_v21, %v5979_v33  ;;  %v3360_v33 = vld [vmem:[%s6046_s8 + $0x10] sm:$0xff] }
 0x20d   : > { %v4725_v37 = vpop.eup %4724  ;;  %v3234_v3 = vadd.f32 1.0, %v4723_v34  ;;  %4742 = vpow2.f32 %v3184_v17  ;;  %v3148_v13 = vsub.f32 0.0, %v6039_v12  ;;  %v6054_v5 = vadd.f32 %v4376_v0, %v5984_v36 }
 0x20e   : > { %v4727_v43 = vpop.eup %4726  ;;  %4744 = vrcp.f32 %v3236_v11  ;;  %v3237_v15 = vadd.f32 1.0, %v4725_v37  ;;  %v3146_v63 = vsub.f32 0.0, %v6049_v28  ;;  %v6058_v39 = vadd.f32 %v4377_v41, %v5984_v36 }
 0x20f   : > { %4746 = vrcp.f32 %v3234_v3  ;;  %v3235_v27 = vadd.f32 1.0, %v4727_v43  ;;  %v3194_v14 = vmul.f32 1.442695, %v3148_v13  ;;  %v3149_v40 = vsub.f32 0.0, %v6054_v5  ;;  %v3364_v43 = vld [vmem:[%s6046_s8 + $0x30] sm:$0xff] }
 0x210   : > { %v4729_v47 = vpop.eup %4728  ;;  %4748 = vrcp.f32 %v3237_v15  ;;  %v3190_v51 = vmul.f32 1.442695, %v3146_v63  ;;  %v3147_v30 = vsub.f32 0.0, %v6058_v39  ;;  %v4200_v24 = vpop.f32.mrb[16].mxu1 }
 0x211   : > { %v4344_v56 = vpop.f32.mrb[16].mxu0  ;;  %v4731_v1 = vpop.eup %4730  ;;  %v3328_v42 = vmul.f32 %v4729_v47, %v5987_v18  ;;  %4750 = vrcp.f32 %v3235_v27  ;;  %v3196_v16 = vmul.f32 1.442695, %v3149_v40 }
 0x212   : > { %v4378_v49 = vadd.f32 %v4344_v56, %v4200_v24  ;;  %v2094_v8 = vpop.f32.mrb[17].mxu1  ;;  %v3000_v52 = vpop.f32.mrb[17].mxu0  ;;  %v3326_v48 = vmul.f32 %v4731_v1, %v5990_v6  ;;  %4752 = vpow2.f32 %v3194_v14  ;;  %v3192_v32 = vmul.f32 1.442695, %v3147_v30 }
 0x213   : > { %v4733_v22 = vpop.eup %4732  ;;  %v4379_v53 = vadd.f32 %v3000_v52, %v2094_v8  ;;  %v4201_v44 = vpop.f32.mrb[18].mxu1  ;;  %v3392_v2 = vadd.f32 %v3360_v33, %v3328_v42  ;;  %4754 = vpow2.f32 %v3190_v51  ;;  %v3362_v51 = vld [vmem:[%s6046_s8 + $0x20] sm:$0xff] }
 0x214   : > { %v4345_v45 = vpop.f32.mrb[18].mxu0  ;;  %v4735_v54 = vpop.eup %4734  ;;  %v3329_v18 = vmul.f32 %v4733_v22, %v5994_v29  ;;  %v6074_v55 = vadd.f32 %v4378_v49, %v5984_v36  ;;  %v3390_v6 = vadd.f32 %v3358_v10, %v3326_v48  ;;  %4756 = vpow2.f32 %v3196_v16  ;;  %v3365_v16 = vld [vmem:[%s6046_s8 + $0x38] sm:$0xff] }
 0x215   : > { %v2097_v61 = vpop.f32.mrb[19].mxu1  ;;  %v3003_v7 = vpop.f32.mrb[19].mxu0  ;;  %v3327_v35 = vmul.f32 %v4735_v54, %v5998_v50  ;;  %v6078_v46 = vadd.f32 %v4379_v53, %v5984_v36  ;;  %3425 = vst.msk [vmem:[%s6081_s11 + $0x10] sm:$0xff] %vm3422_vm7, %v3392_v2  ;;  %4758 = vpow2.f32 %v3192_v32  ;;  %v4380_v34 = vadd.f32 %v4345_v45, %v4201_v44  ;;  %v3363_v32 = vld [vmem:[%s6046_s8 + $0x28] sm:$0xff] }
 0x216   : > { %v4737_v26 = vpop.eup %4736  ;;  %v3393_v29 = vadd.f32 %v3361_v23, %v3329_v18  ;;  %v3152_v4 = vsub.f32 0.0, %v6074_v55  ;;  %3423 = vst.msk [vmem:[%s6081_s11] sm:$0xff] %vm3422_vm7, %v3390_v6  ;;  %v4381_v3 = vadd.f32 %v3003_v7, %v2097_v61 }
 0x217   : > { %v4739_v17 = vpop.eup %4738  ;;  %v3240_v31 = vadd.f32 1.0, %v4737_v26  ;;  %v3391_v60 = vadd.f32 %v3359_v58, %v3327_v35  ;;  %v3150_v21 = vsub.f32 0.0, %v6078_v46  ;;  %v6095_v33 = vadd.f32 %v4380_v34, %v5984_v36 }
 0x218   : > { %v4741_v50 = vpop.eup %4740  ;;  %v3238_v0 = vadd.f32 1.0, %v4739_v17  ;;  %3426 = vst.msk [vmem:[%s6081_s11 + $0x18] sm:$0xff] %vm3422_vm7, %v3393_v29  ;;  %v3202_v37 = vmul.f32 1.442695, %v3152_v4  ;;  %v4204_v27 = vpop.f32.mrb[20].mxu1  ;;  %v6100_v30 = vadd.f32 %v4381_v3, %v5984_v36 }
 0x219   : > { %v4743_v11 = vpop.eup %4742  ;;  %4760 = vrcp.f32 %v3240_v31  ;;  %v3241_v41 = vadd.f32 1.0, %v4741_v50  ;;  %3424 = vst.msk [vmem:[%s6081_s11 + $0x8] sm:$0xff] %vm3422_vm7, %v3391_v60  ;;  %v3198_v63 = vmul.f32 1.442695, %v3150_v21  ;;  %v4348_v14 = vpop.f32.mrb[20].mxu0  ;;  %v3153_v49 = vsub.f32 0.0, %v6095_v33 }
 0x21a   : > { %v4745_v13 = vpop.eup %4744  ;;  %4762 = vrcp.f32 %v3238_v0  ;;  %v3239_v15 = vadd.f32 1.0, %v4743_v11  ;;  %v4382_v24 = vadd.f32 %v4348_v14, %v4204_v27  ;;  %v2110_v56 = vpop.f32.mrb[21].mxu1  ;;  %v3151_v53 = vsub.f32 0.0, %v6100_v30 }
 0x21b   : > { %v4747_v40 = vpop.eup %4746  ;;  %v3332_v47 = vmul.f32 %v4745_v13, %v6003_v59  ;;  %4764 = vrcp.f32 %v3241_v41  ;;  %v3016_v1 = vpop.f32.mrb[21].mxu0  ;;  %v3204_v18 = vmul.f32 1.442695, %v3153_v49 }
 0x21c   : > { %v4749_v42 = vpop.eup %4748  ;;  %v3330_v10 = vmul.f32 %v4747_v40, %v6006_v57  ;;  %4766 = vrcp.f32 %v3239_v15  ;;  %v4383_v8 = vadd.f32 %v3016_v1, %v2110_v56  ;;  %v4205_v52 = vpop.f32.mrb[22].mxu1  ;;  %v3200_v7 = vmul.f32 1.442695, %v3151_v53  ;;  %v3366_v40 = vld [vmem:[%s6046_s8 + $0x40] sm:$0xff] }
 0x21d   : > { %v4349_v59 = vpop.f32.mrb[22].mxu0  ;;  %v4751_v22 = vpop.eup %4750  ;;  %v3396_v48 = vadd.f32 %v3364_v43, %v3332_v47  ;;  %v3333_v23 = vmul.f32 %v4749_v42, %v6010_v38  ;;  %4768 = vpow2.f32 %v3202_v37  ;;  %v6112_v26 = vadd.f32 %v4382_v24, %v5984_v36  ;;  %v3368_v37 = vld [vmem:[%s6046_s8 + $0x50] sm:$0xff] }
 0x21e   : > { %v2113_v44 = vpop.f32.mrb[23].mxu1  ;;  %v3019_v45 = vpop.f32.mrb[23].mxu0  ;;  %v3394_v54 = vadd.f32 %v3362_v51, %v3330_v10  ;;  %v3331_v2 = vmul.f32 %v4751_v22, %v6014_v9  ;;  %4770 = vpow2.f32 %v3198_v63  ;;  %v6117_v9 = vadd.f32 %v4383_v8, %v5984_v36  ;;  %v3369_v10 = vld [vmem:[%s6046_s8 + $0x58] sm:$0xff] }
 0x21f   : > { %v4753_v57 = vpop.eup %4752  ;;  %3429 = vst.msk [vmem:[%s6081_s11 + $0x30] sm:$0xff] %vm3422_vm7, %v3396_v48  ;;  %v3397_v61 = vadd.f32 %v3365_v16, %v3333_v23  ;;  %4772 = vpow2.f32 %v3204_v18  ;;  %v3156_v4 = vsub.f32 0.0, %v6112_v26  ;;  %v4384_v50 = vadd.f32 %v4349_v59, %v4205_v52  ;;  %v3367_v48 = vld [vmem:[%s6046_s8 + $0x48] sm:$0xff] }
 0x220   : > { %v4755_v58 = vpop.eup %4754  ;;  %v3244_v38 = vadd.f32 1.0, %v4753_v57  ;;  %3427 = vst.msk [vmem:[%s6081_s11 + $0x20] sm:$0xff] %vm3422_vm7, %v3394_v54  ;;  %v3395_v35 = vadd.f32 %v3363_v32, %v3331_v2  ;;  %v3154_v0 = vsub.f32 0.0, %v6117_v9  ;;  %v4385_v21 = vadd.f32 %v3019_v45, %v2113_v44  ;;  %v4208_v34 = vpop.f32.mrb[24].mxu1 }
 0x221   : > { %v4757_v6 = vpop.eup %4756  ;;  %v3242_v17 = vadd.f32 1.0, %v4755_v58  ;;  %3430 = vst.msk [vmem:[%s6081_s11 + $0x38] sm:$0xff] %vm3422_vm7, %v3397_v61  ;;  %v4352_v11 = vpop.f32.mrb[24].mxu0  ;;  %v3210_v3 = vmul.f32 1.442695, %v3156_v4  ;;  %v6127_v13 = vadd.f32 %v4384_v50, %v5984_v36 }
 0x222   : > { %v4759_v29 = vpop.eup %4758  ;;  %4774 = vrcp.f32 %v3244_v38  ;;  %v3245_v31 = vadd.f32 1.0, %v4757_v6  ;;  %3428 = vst.msk [vmem:[%s6081_s11 + $0x28] sm:$0xff] %vm3422_vm7, %v3395_v35  ;;  %v4386_v43 = vadd.f32 %v4352_v11, %v4208_v34  ;;  %v2126_v15 = vpop.f32.mrb[25].mxu1  ;;  %v3206_v47 = vmul.f32 1.442695, %v3154_v0 }
 0x223   : > { %4776 = vrcp.f32 %v3242_v17  ;;  %v3243_v60 = vadd.f32 1.0, %v4759_v29  ;;  %v4761_v41 = vpop.eup %4760  ;;  %v3032_v63 = vpop.f32.mrb[25].mxu0  ;;  %v6132_v51 = vadd.f32 %v4385_v21, %v5984_v36  ;;  %v3157_v16 = vsub.f32 0.0, %v6127_v13 }
 0x224   : > { %4778 = vrcp.f32 %v3245_v31  ;;  %v4763_v27 = vpop.eup %4762  ;;  %v3336_v14 = vmul.f32 %v4761_v41, %v6019_v25  ;;  %v4209_v24 = vpop.f32.mrb[26].mxu1  ;;  %v6138_v49 = vadd.f32 %v4386_v43, %v5984_v36  ;;  %v4387_v61 = vadd.f32 %v3032_v63, %v2126_v15  ;;  %v3372_v31 = vld [vmem:[%s6046_s8 + $0x70] sm:$0xff]  ;;  %v3370_v41 = vld [vmem:[%s6046_s8 + $0x60] sm:$0xff] }
 0x225   : > { %4780 = vrcp.f32 %v3243_v60  ;;  %v4353_v56 = vpop.f32.mrb[26].mxu0  ;;  %v4765_v1 = vpop.eup %4764  ;;  %v3334_v42 = vmul.f32 %v4763_v27, %v6022_v62  ;;  %v3155_v23 = vsub.f32 0.0, %v6132_v51  ;;  %v3212_v44 = vmul.f32 1.442695, %v3157_v16 }
 0x226   : > { %4782 = vpow2.f32 %v3200_v7  ;;  %v2129_v25 = vpop.f32.mrb[27].mxu1  ;;  %v3035_v8 = vpop.f32.mrb[27].mxu0  ;;  %v3400_v59 = vadd.f32 %v3368_v37, %v3336_v14  ;;  %v3337_v22 = vmul.f32 %v4765_v1, %v6027_v20  ;;  %v3160_v20 = vsub.f32 0.0, %v6138_v49  ;;  %v3373_v14 = vld [vmem:[%s6046_s8 + $0x78] sm:$0xff] }
 0x227   : > { %v4767_v52 = vpop.eup %4766  ;;  %4784 = vpow2.f32 %v3210_v3  ;;  %v3398_v32 = vadd.f32 %v3366_v40, %v3334_v42  ;;  %v3208_v2 = vmul.f32 1.442695, %v3155_v23  ;;  %v4388_v7 = vadd.f32 %v4353_v56, %v4209_v24 }
 0x228   : > { %v4769_v62 = vpop.eup %4768  ;;  %v3335_v53 = vmul.f32 %v4767_v52, %v6031_v19  ;;  %4786 = vpow2.f32 %v3206_v47  ;;  %3433 = vst.msk [vmem:[%s6081_s11 + $0x50] sm:$0xff] %vm3422_vm7, %v3400_v59  ;;  %v3401_v57 = vadd.f32 %v3369_v10, %v3337_v22  ;;  %v3218_v19 = vmul.f32 1.442695, %v3160_v20  ;;  %v4212_v35 = vpop.f32.mrb[28].mxu1  ;;  %v3371_v10 = vld [vmem:[%s6046_s8 + $0x68] sm:$0xff] }
 0x229   : > { %v4771_v45 = vpop.eup %4770  ;;  %v3248_v54 = vadd.f32 1.0, %v4769_v62  ;;  %3431 = vst.msk [vmem:[%s6081_s11 + $0x40] sm:$0xff] %vm3422_vm7, %v3398_v32  ;;  %4788 = vpow2.f32 %v3212_v44  ;;  %v4389_v6 = vadd.f32 %v3035_v8, %v2129_v25  ;;  %v4356_v17 = vpop.f32.mrb[28].mxu0  ;;  %v6155_v50 = vadd.f32 %v4387_v61, %v5984_v36 }
 0x22a   : > { %v3399_v18 = vadd.f32 %v3367_v48, %v3335_v53  ;;  %v3246_v58 = vadd.f32 1.0, %v4771_v45  ;;  %v4773_v38 = vpop.eup %4772  ;;  %3434 = vst.msk [vmem:[%s6081_s11 + $0x58] sm:$0xff] %vm3422_vm7, %v3401_v57  ;;  %v4390_v60 = vadd.f32 %v4356_v17, %v4212_v35  ;;  %v2142_v0 = vpop.f32.mrb[29].mxu1  ;;  %v6160_v37 = vadd.f32 %v4388_v7, %v5984_v36  ;;  %v3374_v35 = vld [vmem:[%s6046_s8 + $0x80] sm:$0xff] }
 0x22b   : > { %4790 = vrcp.f32 %v3248_v54  ;;  %v3249_v4 = vadd.f32 1.0, %v4773_v38  ;;  %v3048_v21 = vpop.f32.mrb[29].mxu0  ;;  %v6163_v3 = vadd.f32 %v4389_v6, %v5984_v36  ;;  %v4213_v43 = vpop.f32.mrb[30].mxu1  ;;  %v3158_v40 = vsub.f32 0.0, %v6155_v50 }
 0x22c   : > { %v4775_v29 = vpop.eup %4774  ;;  %3432 = vst.msk [vmem:[%s6081_s11 + $0x48] sm:$0xff] %vm3422_vm7, %v3399_v18  ;;  %4792 = vrcp.f32 %v3246_v58  ;;  %v4357_v15 = vpop.f32.mrb[30].mxu0  ;;  %v3161_v16 = vsub.f32 0.0, %v6160_v37  ;;  %v4391_v45 = vadd.f32 %v3048_v21, %v2142_v0  ;;  %v3376_v58 = vld [vmem:[%s6046_s8 + $0x90] sm:$0xff] }
 0x22d   : > { %v4777_v34 = vpop.eup %4776  ;;  %v3340_v11 = vmul.f32 %v4775_v29, %v6039_v12  ;;  %4794 = vpow2.f32 %v3208_v2  ;;  %v6169_v12 = vadd.f32 %v4390_v60, %v5984_v36  ;;  %v2145_v47 = vpop.f32.mrb[31].mxu1  ;;  %v3214_v52 = vmul.f32 1.442695, %v3158_v40 }
 0x22e   : > { %v4779_v63 = vpop.eup %4778  ;;  %v3338_v27 = vmul.f32 %v4777_v34, %v6049_v28  ;;  %4796 = vrcp.f32 %v3249_v4  ;;  %v3051_v24 = vpop.f32.mrb[31].mxu0  ;;  %v3159_v59 = vsub.f32 0.0, %v6163_v3  ;;  %v3220_v44 = vmul.f32 1.442695, %v3161_v16  ;;  %v3377_v34 = vld [vmem:[%s6046_s8 + $0x98] sm:$0xff] }
 0x22f   : > { %v4781_v56 = vpop.eup %4780  ;;  %v3404_v1 = vadd.f32 %v3372_v31, %v3340_v11  ;;  %v3341_v42 = vmul.f32 %v4779_v63, %v6054_v5  ;;  %4798 = vpow2.f32 %v3218_v19  ;;  %v3164_v5 = vsub.f32 0.0, %v6169_v12 }
 0x230   : > { %v4783_v28 = vpop.eup %4782  ;;  %v3402_v25 = vadd.f32 %v3370_v41, %v3338_v27  ;;  %v3339_v8 = vmul.f32 %v4781_v56, %v6058_v39  ;;  %4800 = vpow2.f32 %v3214_v52  ;;  %v3216_v54 = vmul.f32 1.442695, %v3159_v59 }
 0x231   : > { %v4785_v22 = vpop.eup %4784  ;;  %3437 = vst.msk [vmem:[%s6081_s11 + $0x70] sm:$0xff] %vm3422_vm7, %v3404_v1  ;;  %v3405_v48 = vadd.f32 %v3373_v14, %v3341_v42  ;;  %v3247_v23 = vadd.f32 1.0, %v4783_v28  ;;  %v4392_v2 = vadd.f32 %v4357_v15, %v4213_v43  ;;  %v4393_v20 = vadd.f32 %v3051_v24, %v2145_v47  ;;  %v3375_v24 = vld [vmem:[%s6046_s8 + $0x88] sm:$0xff] }
 0x232   : > { %v4787_v62 = vpop.eup %4786  ;;  %3435 = vst.msk [vmem:[%s6081_s11 + $0x60] sm:$0xff] %vm3422_vm7, %v3402_v25  ;;  %v3403_v32 = vadd.f32 %v3371_v10, %v3339_v8  ;;  %v3252_v53 = vadd.f32 1.0, %v4785_v22  ;;  %v3226_v38 = vmul.f32 1.442695, %v3164_v5  ;;  %v6187_v19 = vadd.f32 %v4391_v45, %v5984_v36  ;;  %v3380_v10 = vld [vmem:[%s6046_s8 + $0xb0] sm:$0xff]  ;;  %v3378_v25 = vld [vmem:[%s6046_s8 + $0xa0] sm:$0xff] }
 0x233   : > { %3438 = vst.msk [vmem:[%s6081_s11 + $0x78] sm:$0xff] %vm3422_vm7, %v3405_v48  ;;  %4802 = vrcp.f32 %v3247_v23  ;;  %v3250_v39 = vadd.f32 1.0, %v4787_v62  ;;  %v4789_v57 = vpop.eup %4788  ;;  %v6192_v17 = vadd.f32 %v4392_v2, %v5984_v36  ;;  %v6195_v29 = vadd.f32 %v4393_v20, %v5984_v36  ;;  %v3381_v23 = vld [vmem:[%s6046_s8 + $0xb8] sm:$0xff] }
 0x234   : > { %3436 = vst.msk [vmem:[%s6081_s11 + $0x68] sm:$0xff] %vm3422_vm7, %v3403_v32  ;;  %4804 = vrcp.f32 %v3252_v53  ;;  %v3253_v61 = vadd.f32 1.0, %v4789_v57  ;;  %v3162_v60 = vsub.f32 0.0, %v6187_v19 }
 0x235   : > { %v4791_v18 = vpop.eup %4790  ;;  %4806 = vrcp.f32 %v3250_v39  ;;  %v3165_v11 = vsub.f32 0.0, %v6192_v17  ;;  %v3163_v27 = vsub.f32 0.0, %v6195_v29  ;;  %v3379_v39 = vld [vmem:[%s6046_s8 + $0xa8] sm:$0xff] }
 0x236   : > { %v4793_v7 = vpop.eup %4792  ;;  %v3344_v6 = vmul.f32 %v4791_v18, %v6074_v55  ;;  %4808 = vpow2.f32 %v3220_v44  ;;  %v3222_v15 = vmul.f32 1.442695, %v3162_v60 }
 0x237   : > { %v4795_v31 = vpop.eup %4794  ;;  %v3342_v4 = vmul.f32 %v4793_v7, %v6078_v46  ;;  %4810 = vrcp.f32 %v3253_v61  ;;  %v3228_v63 = vmul.f32 1.442695, %v3165_v11  ;;  %v3224_v47 = vmul.f32 1.442695, %v3163_v27 }
 0x238   : > { %v4797_v0 = vpop.eup %4796  ;;  %v3408_v21 = vadd.f32 %v3376_v58, %v3344_v6  ;;  %v3251_v55 = vadd.f32 1.0, %v4795_v31  ;;  %4812 = vpow2.f32 %v3216_v54 }
 0x239   : > { %v4799_v41 = vpop.eup %4798  ;;  %v3406_v43 = vadd.f32 %v3374_v35, %v3342_v4  ;;  %v3345_v36 = vmul.f32 %v4797_v0, %v6095_v33  ;;  %4814 = vpow2.f32 %v3226_v38  ;;  %v3382_v35 = vld [vmem:[%s6046_s8 + $0xc0] sm:$0xff]  ;;  %v3385_v0 = vld [vmem:[%s6046_s8 + $0xd8] sm:$0xff] }
 0x23a   : > { %3441 = vst.msk [vmem:[%s6081_s11 + $0x90] sm:$0xff] %vm3422_vm7, %v3408_v21  ;;  %4816 = vrcp.f32 %v3251_v55  ;;  %v3256_v46 = vadd.f32 1.0, %v4799_v41  ;;  %v4801_v40 = vpop.eup %4800  ;;  %v3383_v55 = vld [vmem:[%s6046_s8 + $0xc8] sm:$0xff] }
 0x23b   : > { %3439 = vst.msk [vmem:[%s6081_s11 + $0x80] sm:$0xff] %vm3422_vm7, %v3406_v43  ;;  %v3409_v14 = vadd.f32 %v3377_v34, %v3345_v36  ;;  %4818 = vpow2.f32 %v3222_v15  ;;  %v3254_v56 = vadd.f32 1.0, %v4801_v40  ;;  %v3388_v43 = vld [vmem:[%s6046_s8 + $0xf0] sm:$0xff]  ;;  %v3389_v40 = vld [vmem:[%s6046_s8 + $0xf8] sm:$0xff] }
 0x23c   : > { %4820 = vrcp.f32 %v3256_v46 }
 0x23d   : > { %v4803_v33 = vpop.eup %4802  ;;  %3442 = vst.msk [vmem:[%s6081_s11 + $0x98] sm:$0xff] %vm3422_vm7, %v3409_v14  ;;  %4822 = vpow2.f32 %v3228_v63 }
 0x23e   : > { %v4805_v1 = vpop.eup %4804  ;;  %v3343_v42 = vmul.f32 %v4803_v33, %v6100_v30  ;;  %4824 = vpow2.f32 %v3224_v47  ;;  %v3387_v33 = vld [vmem:[%s6046_s8 + $0xe8] sm:$0xff] }
 0x23f   : > { %v4807_v16 = vpop.eup %4806  ;;  %v3348_v28 = vmul.f32 %v4805_v1, %v6112_v26  ;;  %4826 = vrcp.f32 %v3254_v56 }
 0x240   : > { %v4809_v8 = vpop.eup %4808  ;;  %v3407_v52 = vadd.f32 %v3375_v24, %v3343_v42  ;;  %v3346_v59 = vmul.f32 %v4807_v16, %v6117_v9 }
 0x241   : > { %v4811_v22 = vpop.eup %4810  ;;  %v3412_v48 = vadd.f32 %v3380_v10, %v3348_v28  ;;  %v3257_v5 = vadd.f32 1.0, %v4809_v8 }
 0x242   : > { %v4813_v62 = vpop.eup %4812  ;;  %3440 = vst.msk [vmem:[%s6081_s11 + $0x88] sm:$0xff] %vm3422_vm7, %v3407_v52  ;;  %v3410_v30 = vadd.f32 %v3378_v25, %v3346_v59  ;;  %v3349_v26 = vmul.f32 %v4811_v22, %v6127_v13  ;;  %v3384_v13 = vld [vmem:[%s6046_s8 + $0xd0] sm:$0xff] }
 0x243   : > { %v4815_v32 = vpop.eup %4814  ;;  %3445 = vst.msk [vmem:[%s6081_s11 + $0xb0] sm:$0xff] %vm3422_vm7, %v3412_v48  ;;  %4828 = vrcp.f32 %v3257_v5  ;;  %v3255_v53 = vadd.f32 1.0, %v4813_v62 }
 0x244   : > { %v4817_v44 = vpop.eup %4816  ;;  %3443 = vst.msk [vmem:[%s6081_s11 + $0xa0] sm:$0xff] %vm3422_vm7, %v3410_v30  ;;  %v3413_v9 = vadd.f32 %v3381_v23, %v3349_v26  ;;  %v3260_v45 = vadd.f32 1.0, %v4815_v32 }
 0x245   : > { %v4819_v57 = vpop.eup %4818  ;;  %v3347_v54 = vmul.f32 %v4817_v44, %v6132_v51  ;;  %4830 = vrcp.f32 %v3255_v53 }
 0x246   : > { %v4821_v2 = vpop.eup %4820  ;;  %3446 = vst.msk [vmem:[%s6081_s11 + $0xb8] sm:$0xff] %vm3422_vm7, %v3413_v9  ;;  %4832 = vrcp.f32 %v3260_v45  ;;  %v3258_v20 = vadd.f32 1.0, %v4819_v57 }
 0x247   : > { %v4823_v18 = vpop.eup %4822  ;;  %v3411_v58 = vadd.f32 %v3379_v39, %v3347_v54  ;;  %v3352_v61 = vmul.f32 %v4821_v2, %v6138_v49 }
 0x248   : > { %v4825_v38 = vpop.eup %4824  ;;  %4834 = vrcp.f32 %v3258_v20  ;;  %v3261_v7 = vadd.f32 1.0, %v4823_v18 }
 0x249   : > { %v4827_v51 = vpop.eup %4826  ;;  %3444 = vst.msk [vmem:[%s6081_s11 + $0xa8] sm:$0xff] %vm3422_vm7, %v3411_v58  ;;  %v3416_v6 = vadd.f32 %v3384_v13, %v3352_v61  ;;  %v3259_v31 = vadd.f32 1.0, %v4825_v38 }
 0x24a   : > { %v3350_v4 = vmul.f32 %v4827_v51, %v6155_v50  ;;  %4836 = vrcp.f32 %v3261_v7 }
 0x24b   : > { %3449 = vst.msk [vmem:[%s6081_s11 + $0xd0] sm:$0xff] %vm3422_vm7, %v3416_v6  ;;  %4838 = vrcp.f32 %v3259_v31 }
 0x24c   : > { %v3414_v49 = vadd.f32 %v3382_v35, %v3350_v4 }
 0x24d   : > { %v4829_v60 = vpop.eup %4828 }
 0x24e   : > { %3447 = vst.msk [vmem:[%s6081_s11 + $0xc0] sm:$0xff] %vm3422_vm7, %v3414_v49  ;;  %v3353_v21 = vmul.f32 %v4829_v60, %v6160_v37  ;;  %v3386_v37 = vld [vmem:[%s6046_s8 + $0xe0] sm:$0xff] }
 0x24f   : > { %v4831_v34 = vpop.eup %4830 }
 0x250   : > { %v4833_v50 = vpop.eup %4832  ;;  %v3417_v11 = vadd.f32 %v3385_v0, %v3353_v21  ;;  %v3351_v41 = vmul.f32 %v4831_v34, %v6163_v3 }
 0x251   : > { %v3356_v36 = vmul.f32 %v4833_v50, %v6169_v12 }
 0x252   : > { %v4835_v15 = vpop.eup %4834  ;;  %3450 = vst.msk [vmem:[%s6081_s11 + $0xd8] sm:$0xff] %vm3422_vm7, %v3417_v11  ;;  %v3415_v46 = vadd.f32 %v3383_v55, %v3351_v41 }
 0x253   : > { %v3420_v63 = vadd.f32 %v3388_v43, %v3356_v36  ;;  %v3354_v27 = vmul.f32 %v4835_v15, %v6187_v19 }
 0x254   : > { %v4837_v14 = vpop.eup %4836  ;;  %3448 = vst.msk [vmem:[%s6081_s11 + $0xc8] sm:$0xff] %vm3422_vm7, %v3415_v46 }
 0x255   : > { %v4839_v3 = vpop.eup %4838  ;;  %3453 = vst.msk [vmem:[%s6081_s11 + $0xf0] sm:$0xff] %vm3422_vm7, %v3420_v63  ;;  %v3418_v12 = vadd.f32 %v3386_v37, %v3354_v27  ;;  %v3357_v47 = vmul.f32 %v4837_v14, %v6192_v17 }
 0x256   : > { %v3355_v24 = vmul.f32 %v4839_v3, %v6195_v29 }
 0x257   : > { %3451 = vst.msk [vmem:[%s6081_s11 + $0xe0] sm:$0xff] %vm3422_vm7, %v3418_v12  ;;  %v3421_v19 = vadd.f32 %v3389_v40, %v3357_v47 }
 0x258   : > { %v3419_v56 = vadd.f32 %v3387_v33, %v3355_v24 }
 0x259   : > { %3454 = vst.msk [vmem:[%s6081_s11 + $0xf8] sm:$0xff] %vm3422_vm7, %v3421_v19 }
 0x25a   : > { %3452 = vst.msk [vmem:[%s6081_s11 + $0xe8] sm:$0xff] %vm3422_vm7, %v3419_v56 }
 0x25b   : > { %4858 = shalt.err (!%p4855_p5)
}
 0x25c   : > { %s4859_s5 = scalar_lea.hbm %s6262_s22, 4096  ;;  %s4863_s7 = scalar_lea.hbm %s6322_s4, 8192 }
 0x25d   : > { %p4860_p6 = scmp.ne.s32.totalorder %s6262_s22, %s4859_s5  ;;  %p4864_p10 = scmp.lt.u32.totalorder %s6262_s22, %s6322_s4 }
 0x25e   : > { %p4865_p11 = scmp.lt.u32.totalorder %s4863_s7, %s4859_s5  ;;  %p4867_p13 = scmp.lt.u32.totalorder %s4859_s5, %s6262_s22 }
 0x25f   : > { %p4861_p7 = pnand %p4860_p6, %p4993_p4 }
 0x260   : > { %p4866_p12 = por %p4865_p11, %p4864_p10 }
 0x261   : > { %p4862_p9 = pneg %p4861_p7 }
 0x262   : > { %p4868_p0 = por %p4867_p13, %p4866_p12 }
 0x264   : > { %p4869_p1 = pnand %p4868_p0, %p4862_p9 }
 0x266   : > { %4872 = shalt.err (!%p4869_p1)
}
 0x267   : > { %s4926_s11 = smov 128   ;;  %s4927_s12 = smov 8  }
 0x268   : > { %4619 = dma.vmem_to_hbm [thread:$0]  (%p4993_p4), %s6264_s13, 4096, %s6262_s22, %s6272_s18, %s4926_s11, %s4926_s11, %s4927_s12  }
 0x269 PF: > { %p4625_p2 = scmp.ge.s32.totalorder %s4923_s20, 2  ;;  %s3485_s14 = sand.u32 1, %s4903_s15  }
 0x26a   : > { %s3486_s21 = scalar_lea.sflag [#allocation3], %s3485_s14 }
 0x26b   : > { %p4622_p3 = pnand %p4625_p2, %p5000_p8 }
 0x26d   : > { %4898 = dma.done.wait (!%p4622_p3), %s3486_s21, 4096  }
 0x26e   : > { %4900 = vsyncadd (!%p4622_p3), %s3486_s21, 4294963200  ;;  %s17_s20 = sadd.s32 1, %s4923_s20   ;;  %s6399_s15 = smov %s4907_s16 }
 0x26f   : > { %p14_p5 = scmp.ge.s32.totalorder %s17_s20, 4   ;;  %s6400_s16 = smov %s4911_s17 }
 0x270   : > { %s6401_s17 = smov %s5006_s28  ;;  %s6402_s18 = smov %s4919_s19 }
 0x271   : > { %s6403_s19 = smov %s6405_s23  ;;  %16 = sbr.rel (!%p14_p5) target bundleno = 4 (0x4), region = 88 }
 0x278   :  { %3491 = vsyncpa [#allocation3], 1 }
 0x279   :  { %3493 = vsyncpa [#allocation3 + $0x1], 1 }

// kernel: fwd.2
= control target key start
LH: loop header
LB: loop body
LE: loop exit
PB: predicated region body
PF: predicated region fallthrough
CT: control target
= control target key end

     0   :  { %s5174_s12 = smov 0   ;;  %s5176_s13 = smov 0   ;;  %s6476_s0 = inlined_call_operand.vmem [shape: bf16[2,18,18,64], index: 0, kind: input, shape index: {}]   ;;  %s6477_s1 = inlined_call_operand.vmem [shape: bf16[9,64,32], index: 1, kind: input, shape index: {}]   ;;  %s6478_s2 = inlined_call_operand.vmem [shape: f32[1,32], index: 2, kind: input, shape index: {}]   ;;  %s6479_s3 = inlined_call_operand.vmem [shape: bf16[2,16,16,32], index: 3, kind: output, shape index: {}]  }
   0x1   :  { %s5178_s14 = smov 0  }
   0x2 LB: > { %s25_s15 = sadd.s32 1, %s5148_s13  ;;  %p3724_p0 = scmp.ge.s32.totalorder %s5152_s14, 1  ;;  %s5152_s14 = sphi %s5178_s14, %s13_s14   ;;  %s5148_s13 = sphi %s5176_s13, %s6555_s13   ;;  %s5144_s12 = sphi %s5174_s12, %s6554_s12  }
   0x3   : > { %p27_p1 = scmp.ge.s32.totalorder %s25_s15, 2  ;;  %p168_p2 = scmp.lt.s32.totalorder %s5152_s14, 3 }
   0x5   : > { %s6557_s15 = smov (%p27_p1, %s25_s15), 0  ;;  %p169_p3 = pnand %p3724_p0, %p168_p2 }
   0x7   : > { %172 = sbr.rel (%p169_p3) target bundleno = 594 (0x252), region = 32 }
   0xe   : > { %v4941_v0 = vld [vmem:[%s6477_s1 + $0x20] sm:$0xff]   ;;  %p202_p4 = scmp.lt.s32.totalorder %s5144_s12, 1  ;;  %v4943_v2 = vld [vmem:[%s6477_s1 + $0x28] sm:$0xff]   ;;  %v4945_v4 = vld [vmem:[%s6477_s1 + $0x30] sm:$0xff]   ;;  %vm285_vm0 = vsmask.f32 3328 }
   0xf   : > { %v4942_v1 = vld [vmem:[%s6477_s1 + $0x80] sm:$0xff]   ;;  %4292 = vmatprep.subr.bf16.mxu1 %v4941_v0  ;;  %v4944_v3 = vld [vmem:[%s6477_s1 + $0x88] sm:$0xff]   ;;  %v4946_v5 = vld [vmem:[%s6477_s1 + $0x90] sm:$0xff]   ;;  %vm286_vm1 = vsmask.f32 7440  ;;  %vm753_vm2 = vcmask 523264  }
  0x10   : > { %s6559_s12 = smov (!%p202_p4, %s5144_s12), 1  ;;  %4452 = vmatprep.subr.bf16.mxu0 %v4942_v1  ;;  %4293 = vmatpush3.bf16.msra.mxu1 %v4941_v0  ;;  %v4947_v6 = vld [vmem:[%s6477_s1 + $0x38] sm:$0xff]   ;;  %v5238_v18 = vld [vmem:[%s6477_s1] sm:$0xff]   ;;  %vm5258_vm3 = vmor %vm285_vm0, %vm286_vm1  ;;  %vm1292_vm4 = vcmask 1042432   ;;  %vm1293_vm5 = vcmask 1046532   ;;  %vm3580_vm7 = vcmask 257024  }
  0x11   : > { %4453 = vmatpush3.bf16.msra.mxu0 %v4942_v1  ;;  %4294 = vmatprep.subr.bf16.mxu1 %v4943_v2  ;;  %s4916_s26 = smul.u32 216, %s6559_s12  ;;  %v4948_v7 = vld [vmem:[%s6477_s1 + $0x98] sm:$0xff]   ;;  %v5246_v23 = vld [vmem:[%s6477_s1 + $0xa0] sm:$0xff]   ;;  %vm5465_vm6 = vmor %vm1292_vm4, %vm1293_vm5  ;;  %s4079_s8 = sshll.u32 %s6559_s12, 7 }
  0x12   : > { %4454 = vmatprep.subr.bf16.mxu0 %v4944_v3  ;;  %s6306_s10 = scalar_lea.vmem %s6479_s3, %s4079_s8 }
  0x13   : > { %s5219_s6 = scalar_lea.vmem %s6476_s0, %s4916_s26 }
  0x14   : > { %4295 = vmatpush3.bf16.msra.mxu1 %v4943_v2  ;;  %v5225_v8 = vld [vmem:[%s5219_s6] sm:$0xf]  ;;  %v5228_v9 = vld [vmem:[%s5219_s6 + $0x4] sm:$0xf]  ;;  %v225_v10 = vld [vmem:[%s5219_s6 + $0x8] sm:$0x1] }
  0x15   : > { %4455 = vmatpush3.bf16.msra.mxu0 %v4944_v3  ;;  %4296 = vmatprep.subr.bf16.mxu1 %v4945_v4  ;;  %v289_v11 = vshrl.u32 %v5225_v8, 16  ;;  %v292_v12 = vshll.u32 %v5225_v8, 16  ;;  %v298_v13 = vshll.u32 %v5228_v9, 16  ;;  %v302_v14 = vshrl.u32 %v5228_v9, 16  ;;  %v5241_v22 = vld [vmem:[%s5219_s6 + $0xc] sm:$0xf] }
  0x16   : > { %4456 = vmatprep.subr.bf16.mxu0 %v4946_v5  ;;  %v308_v15 = vshll.u32 %v225_v10, 16  ;;  %v5249_v25 = vld [vmem:[%s5219_s6 + $0x10] sm:$0xf]  ;;  %v5252_v26 = vld [vmem:[%s5219_s6 + $0x14] sm:$0x1]  ;;  %v313_v27 = vshrl.u32 %v5241_v22, 16 }
  0x17   : > { %v291_v16 = vrot.slane %v289_v11, 4  ;;  %v294_v17 = vrot.slane %v292_v12, 5  ;;  %v300_v19 = vrot.slane %v298_v13, 5  ;;  %v304_v20 = vrot.slane %v302_v14, 4  ;;  %v5271_v42 = vld [vmem:[%s5219_s6 + $0x18] sm:$0xf] }
  0x18   : > { %4297 = vmatpush3.bf16.msra.mxu1 %v4945_v4  ;;  %v310_v21 = vrot.slane %v308_v15, 5  ;;  %v316_v28 = vshll.u32 %v5241_v22, 16  ;;  %v322_v31 = vshll.u32 %v5249_v25, 16  ;;  %v326_v32 = vshrl.u32 %v5249_v25, 16  ;;  %v5278_v46 = vld [vmem:[%s5219_s6 + $0x1c] sm:$0xf] }
  0x19   : > { %4457 = vmatpush3.bf16.msra.mxu0 %v4946_v5  ;;  %4298 = vmatprep.subr.bf16.mxu1 %v4947_v6  ;;  %v295_v24 = vor.u32 %v294_v17, %v291_v16  ;;  %v305_v30 = vor.u32 %v304_v20, %v300_v19  ;;  %v332_v33 = vshll.u32 %v5252_v26, 16  ;;  %v315_v35 = vrot.slane %v313_v27, 4  ;;  %v5281_v47 = vld [vmem:[%s5219_s6 + $0x20] sm:$0x1]  ;;  %v5289_v53 = vld [vmem:[%s5219_s6 + $0x24] sm:$0xf] }
  0x1a   : > { %4458 = vmatprep.subr.bf16.mxu0 %v4948_v7  ;;  %v318_v36 = vrot.slane %v316_v28, 5  ;;  %v5267_v37 = vcombine.low %v5241_v22, %v5249_v25  ;;  %v324_v39 = vrot.slane %v322_v31, 5  ;;  %v328_v40 = vrot.slane %v326_v32, 4  ;;  %v5292_v54 = vld [vmem:[%s5219_s6 + $0x28] sm:$0xf] }
  0x1b   : > { %v296_v34 = vrot.slane %v295_v24, 4  ;;  %v306_v38 = vrot.slane %v305_v30, 4  ;;  %v334_v41 = vrot.slane %v332_v33, 5  ;;  %v1307_v45 = vrot.slane %v5252_v26, 5  ;;  %v5296_v59 = vld [vmem:[%s5219_s6 + $0x2c] sm:$0x1] }
  0x1c   : > { %4299 = vmatpush3.bf16.msra.mxu1 %v4947_v6  ;;  %v319_v44 = vor.u32 %v318_v36, %v315_v35  ;;  %v337_v48 = vshrl.u32 %v5271_v42, 16  ;;  %v329_v50 = vor.u32 %v328_v40, %v324_v39  ;;  %v340_v51 = vshll.u32 %v5271_v42, 16  ;;  %v5308_v10 = vld [vmem:[%s5219_s6 + $0x30] sm:$0xf]  ;;  %v4953_v11 = vld [vmem:[%s6477_s1 + $0x8] sm:$0xff]  }
  0x1d   : > { %4459 = vmatpush3.bf16.msra.mxu0 %v4948_v7  ;;  %4332 = vmatprep.subr.bf16.mxu1 %v5238_v18  ;;  %v301_v43 = vsel %vm5258_vm3, %v296_v34, %v300_v19  ;;  %v311_v49 = vsel %vm5258_vm3, %v306_v38, %v310_v21  ;;  %v346_v52 = vshll.u32 %v5278_v46, 16  ;;  %v350_v58 = vshrl.u32 %v5278_v46, 16  ;;  %v5316_v16 = vld [vmem:[%s5219_s6 + $0x34] sm:$0xf]  ;;  %v5323_v30 = vld [vmem:[%s5219_s6 + $0x38] sm:$0x1] }
  0x1e   : > { %4492 = vmatprep.subr.bf16.mxu0 %v5246_v23  ;;  %v3736_v55 = vcombine.low %v301_v43, %v311_v49  ;;  %v320_v56 = vrot.slane %v319_v44, 4  ;;  %v339_v57 = vrot.slane %v337_v48, 4  ;;  %v330_v60 = vrot.slane %v329_v50, 4  ;;  %v5331_v36 = vld [vmem:[%s5219_s6 + $0x3c] sm:$0xf]  ;;  %v4952_v40 = vld [vmem:[%s6477_s1 + $0xa8] sm:$0xff]  }
  0x1f   : > { %v342_v61 = vrot.slane %v340_v51, 5  ;;  %v348_v62 = vrot.slane %v346_v52, 5  ;;  %v356_v63 = vshll.u32 %v5281_v47, 16  ;;  %v352_v1 = vrot.slane %v350_v58, 4  ;;  %v4956_v43 = vld [vmem:[%s6477_s1 + $0x10] sm:$0xff]  }
  0x20   : > { %4300 = vmatprep.mubr.msk.bf16.mxu1 %vm753_vm2, %v3736_v55  ;;  %v325_v0 = vsel %vm5258_vm3, %v320_v56, %v324_v39  ;;  %v1311_v2 = vrot.slane %v5278_v46, 5  ;;  %v1314_v3 = vrot.slane %v5281_v47, 5  ;;  %v335_v4 = vsel %vm5258_vm3, %v330_v60, %v334_v41  ;;  %v5346_v51 = vld [vmem:[%s5219_s6 + $0x40] sm:$0xf] }
  0x21   : > { %v343_v5 = vor.u32 %v342_v61, %v339_v57  ;;  %v358_v6 = vrot.slane %v356_v63, 5  ;;  %v361_v7 = vshrl.u32 %v5289_v53, 16  ;;  %v3737_v12 = vcombine.low %v325_v0, %v335_v4 }
  0x22   : > { %v353_v13 = vor.u32 %v352_v1, %v348_v62  ;;  %v364_v14 = vshll.u32 %v5289_v53, 16  ;;  %v370_v15 = vshll.u32 %v5292_v54, 16  ;;  %v374_v20 = vshrl.u32 %v5292_v54, 16 }
  0x23   : > { %v344_v17 = vrot.slane %v343_v5, 4  ;;  %v363_v19 = vrot.slane %v361_v7, 4  ;;  %v380_v21 = vshll.u32 %v5296_v59, 16  ;;  %4460 = vmatprep.mubr.msk.bf16.mxu0 %vm753_vm2, %v3737_v12  ;;  %4301 = vmatmul.mubr.msk.bf16.vlgmr.msra.gmra.mrb[0].mxu1 %vm753_vm2, %v3737_v12  ;;  %v385_v31 = vshrl.u32 %v5308_v10, 16 }
  0x24   : > { %v354_v24 = vrot.slane %v353_v13, 4  ;;  %v366_v27 = vrot.slane %v364_v14, 5  ;;  %v372_v28 = vrot.slane %v370_v15, 5  ;;  %4333 = vmatpush3.bf16.msra.mxu1 %v5238_v18  ;;  %v376_v33 = vrot.slane %v374_v20, 4  ;;  %v5371_v15 = vld [vmem:[%s5219_s6 + $0x4c] sm:$0xf] }
  0x25   : > { %v349_v32 = vsel %vm5258_vm3, %v344_v17, %v348_v62  ;;  %v382_v34 = vrot.slane %v380_v21, 5  ;;  %v388_v35 = vshll.u32 %v5308_v10, 16  ;;  %v387_v41 = vrot.slane %v385_v31, 4  ;;  %4334 = vmatprep.subr.bf16.mxu1 %v4953_v11  ;;  %v5355_v62 = vld [vmem:[%s5219_s6 + $0x44] sm:$0x1]  ;;  %v4958_v21 = vld [vmem:[%s6477_s1 + $0x18] sm:$0xff]  }
  0x26   : > { %v359_v38 = vsel %vm5258_vm3, %v354_v24, %v358_v6  ;;  %v367_v39 = vor.u32 %v366_v27, %v363_v19  ;;  %v394_v18 = vshll.u32 %v5316_v16, 16  ;;  %v377_v48 = vor.u32 %v376_v33, %v372_v28  ;;  %v5363_v6 = vld [vmem:[%s5219_s6 + $0x48] sm:$0xf]  ;;  %v5383_v31 = vld [vmem:[%s5219_s6 + $0x50] sm:$0x1] }
  0x27   : > { %v5342_v44 = vcombine.low %v349_v32, %v359_v38  ;;  %v390_v49 = vrot.slane %v388_v35, 5  ;;  %v398_v50 = vshrl.u32 %v5316_v16, 16  ;;  %v404_v56 = vshll.u32 %v5323_v30, 16 }
  0x28   : > { %v368_v52 = vrot.slane %v367_v39, 4  ;;  %v396_v55 = vrot.slane %v394_v18, 5  ;;  %v409_v57 = vshrl.u32 %v5331_v36, 16  ;;  %v378_v58 = vrot.slane %v377_v48, 4  ;;  %4335 = vmatpush3.bf16.msra.mxu1 %v4953_v11  ;;  %v5393_v39 = vld [vmem:[%s5219_s6 + $0x54] sm:$0xf] }
  0x29   : > { %6512 = vst [vmem:[#allocation2_spill] sm:$0xff] %v5342_v44  ;;  %4461 = vmatmul.mubr.msk.bf16.vlgmr.msra.gmra.mrb[0].mxu0 %vm753_vm2, %v5342_v44  ;;  %4304 = vmatprep.mubr.msk.bf16.mxu1 %vm753_vm2, %v5342_v44  ;;  %v391_v60 = vor.u32 %v390_v49, %v387_v41  ;;  %v400_v61 = vrot.slane %v398_v50, 4  ;;  %v412_v63 = vshll.u32 %v5331_v36, 16  ;;  %v406_v1 = vrot.slane %v404_v56, 5  ;;  %6514 = vst [vmem:[#allocation4_spill] sm:$0xff] %v5393_v39  ;;  %v4955_v41 = vld [vmem:[%s6477_s1 + $0xb8] sm:$0xff]  }
  0x2a   : > { %4493 = vmatpush3.bf16.msra.mxu0 %v5246_v23  ;;  %v373_v0 = vsel %vm5258_vm3, %v368_v52, %v372_v28  ;;  %v411_v4 = vrot.slane %v409_v57, 4  ;;  %v418_v5 = vshll.u32 %v5346_v51, 16  ;;  %v383_v7 = vsel %vm5258_vm3, %v378_v58, %v382_v34  ;;  %v4954_v23 = vld [vmem:[%s6477_s1 + $0xb0] sm:$0xff]   ;;  %4336 = vmatprep.subr.bf16.mxu1 %v4956_v43  ;;  %v5402_v52 = vld [vmem:[%s5219_s6 + $0x58] sm:$0xf] }
  0x2b   : > { %4494 = vmatprep.subr.bf16.mxu0 %v4952_v40  ;;  %v392_v12 = vrot.slane %v391_v60, 4  ;;  %v401_v13 = vor.u32 %v400_v61, %v396_v55  ;;  %v414_v14 = vrot.slane %v412_v63, 5  ;;  %v5373_v17 = vcombine.low %v373_v0, %v383_v7  ;;  %v5412_v61 = vld [vmem:[%s5219_s6 + $0x5c] sm:$0x1] }
  0x2c   : > { %v420_v11 = vrot.slane %v418_v5, 5  ;;  %v422_v19 = vshrl.u32 %v5346_v51, 16  ;;  %v428_v20 = vshll.u32 %v5355_v62, 16  ;;  %v433_v32 = vshrl.u32 %v5363_v6, 16  ;;  %4337 = vmatpush3.bf16.msra.mxu1 %v4956_v43 }
  0x2d   : > { %6513 = vst [vmem:[#allocation3_spill] sm:$0xff] %v5373_v17  ;;  %v397_v24 = vsel %vm5258_vm3, %v392_v12, %v396_v55  ;;  %v402_v27 = vrot.slane %v401_v13, 4  ;;  %v415_v28 = vor.u32 %v414_v14, %v411_v4  ;;  %4464 = vmatprep.mubr.msk.bf16.mxu0 %vm753_vm2, %v5373_v17  ;;  %4305 = vmatmul.mubr.msk.bf16.gmra.mrb[4].mxu1 %vm753_vm2, %v5373_v17  ;;  %v436_v35 = vshll.u32 %v5363_v6, 16  ;;  %v5407_v55 = vld [vmem:[%s6477_s1 + $0x40] sm:$0xff]  }
  0x2e   : > { %v424_v33 = vrot.slane %v422_v19, 4  ;;  %v430_v34 = vrot.slane %v428_v20, 5  ;;  %v442_v38 = vshll.u32 %v5371_v15, 16  ;;  %4495 = vmatpush3.bf16.msra.mxu0 %v4952_v40  ;;  %v435_v49 = vrot.slane %v433_v32, 4  ;;  %4338 = vmatprep.subr.bf16.mxu1 %v4958_v21  ;;  %v5426_v19 = vld [vmem:[%s5219_s6 + $0x60] sm:$0xf] }
  0x2f   : > { %v407_v18 = vsel %vm5258_vm3, %v402_v27, %v406_v1  ;;  %v416_v48 = vrot.slane %v415_v28, 4  ;;  %v446_v50 = vshrl.u32 %v5371_v15, 16  ;;  %4496 = vmatprep.subr.bf16.mxu0 %v4954_v23  ;;  %v438_v58 = vrot.slane %v436_v35, 5  ;;  %v5431_v32 = vld [vmem:[%s5219_s6 + $0x64] sm:$0xf] }
  0x30   : > { %v5409_v56 = vcombine.low %v397_v24, %v407_v18  ;;  %v425_v57 = vor.u32 %v424_v33, %v420_v11  ;;  %v444_v60 = vrot.slane %v442_v38, 5  ;;  %v452_v43 = vshll.u32 %v5383_v31, 16  ;;  %4339 = vmatpush3.bf16.msra.mxu1 %v4958_v21  ;;  %v5440_v21 = vld [vmem:[%s6477_s1 + $0xc0] sm:$0xff]  }
  0x31   : > { %v421_v40 = vsel %vm5258_vm3, %v416_v48, %v420_v11  ;;  %v448_v63 = vrot.slane %v446_v50, 4  ;;  %v457_v0 = vshrl.u32 %v5393_v39, 16  ;;  %v439_v4 = vor.u32 %v438_v58, %v435_v49  ;;  %4372 = vmatprep.subr.bf16.mxu1 %v5407_v55  ;;  %v5445_v48 = vld [vmem:[%s5219_s6 + $0x68] sm:$0x1] }
  0x32   : > { %6515 = vst [vmem:[#allocation5_spill] sm:$0xff] %v5409_v56  ;;  %4465 = vmatmul.mubr.msk.bf16.gmra.mrb[4].mxu0 %vm753_vm2, %v5409_v56  ;;  %4308 = vmatprep.mubr.msk.bf16.mxu1 %vm753_vm2, %v5409_v56  ;;  %v426_v1 = vrot.slane %v425_v57, 4  ;;  %v460_v5 = vshll.u32 %v5393_v39, 16  ;;  %v466_v7 = vshll.u32 %v5402_v52, 16  ;;  %v454_v13 = vrot.slane %v452_v43, 5 }
  0x33   : > { %v449_v12 = vor.u32 %v448_v63, %v444_v60  ;;  %4497 = vmatpush3.bf16.msra.mxu0 %v4954_v23  ;;  %v459_v14 = vrot.slane %v457_v0, 4  ;;  %v470_v11 = vshrl.u32 %v5402_v52, 16  ;;  %v440_v24 = vrot.slane %v439_v4, 4  ;;  %v5459_v4 = vld [vmem:[%s5219_s6 + $0x6c] sm:$0xf] }
  0x34   : > { %v431_v20 = vsel %vm5258_vm3, %v426_v1, %v430_v34  ;;  %v462_v27 = vrot.slane %v460_v5, 5  ;;  %v468_v28 = vrot.slane %v466_v7, 5  ;;  %4498 = vmatprep.subr.bf16.mxu0 %v4955_v41  ;;  %v476_v38 = vshll.u32 %v5412_v61, 16 }
  0x35   : > { %v5434_v33 = vcombine.low %v421_v40, %v431_v20  ;;  %v450_v23 = vrot.slane %v449_v12, 4  ;;  %v472_v35 = vrot.slane %v470_v11, 4  ;;  %v445_v34 = vsel %vm5258_vm3, %v440_v24, %v444_v60 }
  0x36   : > { %v463_v18 = vor.u32 %v462_v27, %v459_v14  ;;  %v481_v49 = vshrl.u32 %v5426_v19, 16  ;;  %v484_v50 = vshll.u32 %v5426_v19, 16  ;;  %v478_v40 = vrot.slane %v476_v38, 5  ;;  %v5479_v27 = vld [vmem:[%s5219_s6 + $0x70] sm:$0xf] }
  0x37   : > { %6516 = vst [vmem:[#allocation6_spill] sm:$0xff] %v5434_v33  ;;  %4468 = vmatprep.mubr.msk.bf16.mxu0 %vm753_vm2, %v5434_v33  ;;  %4309 = vmatmul.mubr.msk.bf16.gmra.mrb[8].mxu1 %vm753_vm2, %v5434_v33  ;;  %v455_v57 = vsel %vm5258_vm3, %v450_v23, %v454_v13  ;;  %v473_v58 = vor.u32 %v472_v35, %v468_v28  ;;  %v490_v60 = vshll.u32 %v5431_v32, 16  ;;  %v494_v12 = vshrl.u32 %v5431_v32, 16 }
  0x38   : > { %v5456_v63 = vcombine.low %v445_v34, %v455_v57  ;;  %v464_v43 = vrot.slane %v463_v18, 4  ;;  %v483_v0 = vrot.slane %v481_v49, 4  ;;  %v486_v1 = vrot.slane %v484_v50, 5  ;;  %4499 = vmatpush3.bf16.msra.mxu0 %v4955_v41  ;;  %v5484_v34 = vld [vmem:[%s5219_s6 + $0x74] sm:$0x1] }
  0x39   : > { %v474_v5 = vrot.slane %v473_v58, 4  ;;  %v492_v7 = vrot.slane %v490_v60, 5  ;;  %v500_v13 = vshll.u32 %v5445_v48, 16  ;;  %4532 = vmatprep.subr.bf16.mxu0 %v5440_v21  ;;  %v3809_v20 = vrot.slane %v5241_v22, 9 }
  0x3a   : > { %6517 = vst [vmem:[#allocation7_spill] sm:$0xff] %v5456_v63  ;;  %4469 = vmatmul.mubr.msk.bf16.gmra.mrb[8].mxu0 %vm753_vm2, %v5456_v63  ;;  %4312 = vmatprep.mubr.msk.bf16.mxu1 %vm753_vm2, %v5456_v63  ;;  %v469_v41 = vsel %vm5258_vm3, %v464_v43, %v468_v28  ;;  %v487_v11 = vor.u32 %v486_v1, %v483_v0  ;;  %v1304_v24 = vrot.slane %v5249_v25, 5  ;;  %v496_v35 = vrot.slane %v494_v12, 4 }
  0x3b   : > { %v479_v23 = vsel %vm5258_vm3, %v474_v5, %v478_v40  ;;  %v502_v38 = vrot.slane %v500_v13, 5  ;;  %v505_v18 = vshrl.u32 %v5459_v4, 16  ;;  %v508_v58 = vshll.u32 %v5459_v4, 16  ;;  %v5504_v5 = vld [vmem:[%s5219_s6 + $0x78] sm:$0xf] }
  0x3c   : > { %v5487_v49 = vcombine.low %v469_v41, %v479_v23  ;;  %v488_v28 = vrot.slane %v487_v11, 4  ;;  %v1305_v22 = vsel %vm5465_vm6, %v3809_v20, %v1304_v24  ;;  %v1306_v50 = vrot.slane %v1304_v24, 4 }
  0x3d   : > { %v497_v25 = vor.u32 %v496_v35, %v492_v7  ;;  %v507_v57 = vrot.slane %v505_v18, 4  ;;  %v514_v40 = vshll.u32 %v5479_v27, 16  ;;  %v518_v0 = vshrl.u32 %v5479_v27, 16  ;;  %v5516_v35 = vld [vmem:[%s5219_s6 + $0x7c] sm:$0xf] }
  0x3e   : > { %6520 = vst [vmem:[#allocation8_spill] sm:$0xff] %v5487_v49  ;;  %4472 = vmatprep.mubr.msk.bf16.mxu0 %vm753_vm2, %v5487_v49  ;;  %v493_v60 = vsel %vm5258_vm3, %v488_v28, %v492_v7  ;;  %v1308_v43 = vsel %vm5465_vm6, %v1306_v50, %v1307_v45  ;;  %v524_v1 = vshll.u32 %v5484_v34, 16  ;;  %v510_v7 = vrot.slane %v508_v58, 5  ;;  %v5519_v18 = vld [vmem:[%s5219_s6 + $0x80] sm:$0x1] }
  0x3f   : > { %4313 = vmatmul.mubr.msk.bf16.gmra.mrb[12].mxu1 %vm753_vm2, %v5487_v49  ;;  %v498_v12 = vrot.slane %v497_v25, 4  ;;  %v5508_v13 = vcombine.low %v1305_v22, %v1308_v43  ;;  %v516_v41 = vrot.slane %v514_v40, 5  ;;  %v520_v26 = vrot.slane %v518_v0, 4 }
  0x40   : > { %v526_v11 = vrot.slane %v524_v1, 5  ;;  %v3810_v20 = vrot.slane %v5271_v42, 9  ;;  %v1313_v45 = vrot.slane %v1311_v2, 4  ;;  %v511_v23 = vor.u32 %v510_v7, %v507_v57  ;;  %v5536_v1 = vld [vmem:[%s5219_s6 + $0x84] sm:$0xf] }
  0x41   : > { %6521 = vst [vmem:[#allocation9_spill] sm:$0xff] %v5508_v13  ;;  %v503_v24 = vsel %vm5258_vm3, %v498_v12, %v502_v38  ;;  %v529_v28 = vshrl.u32 %v5504_v5, 16  ;;  %v532_v22 = vshll.u32 %v5504_v5, 16  ;;  %v521_v25 = vor.u32 %v520_v26, %v516_v41  ;;  %v5546_v12 = vld [vmem:[%s5219_s6 + $0x88] sm:$0xf] }
  0x42   : > { %v5523_v50 = vcombine.low %v493_v60, %v503_v24  ;;  %v1312_v58 = vsel %vm5465_vm6, %v3810_v20, %v1311_v2  ;;  %v1315_v38 = vsel %vm5465_vm6, %v1313_v45, %v1314_v3  ;;  %v512_v57 = vrot.slane %v511_v23, 4  ;;  %v5549_v7 = vld [vmem:[%s5219_s6 + $0x8c] sm:$0x1] }
  0x43   : > { %v5533_v40 = vcombine.low %v1312_v58, %v1315_v38  ;;  %v531_v43 = vrot.slane %v529_v28, 4  ;;  %v534_v0 = vrot.slane %v532_v22, 5  ;;  %v522_v60 = vrot.slane %v521_v25, 4 }
  0x44   : > { %6522 = vst [vmem:[#allocation10_spill] sm:$0xff] %v5523_v50  ;;  %4473 = vmatmul.mubr.msk.bf16.gmra.mrb[12].mxu0 %vm753_vm2, %v5523_v50  ;;  %4316 = vmatprep.mubr.msk.bf16.mxu1 %vm753_vm2, %v5523_v50  ;;  %v538_v2 = vshll.u32 %v5516_v35, 16  ;;  %v542_v47 = vshrl.u32 %v5516_v35, 16  ;;  %v548_v3 = vshll.u32 %v5519_v18, 16  ;;  %v517_v26 = vsel %vm5258_vm3, %v512_v57, %v516_v41 }
  0x45   : > { %6523 = vst [vmem:[#allocation11_spill] sm:$0xff] %v5533_v40  ;;  %4500 = vmatprep.mubr.msk.bf16.mxu0 %vm753_vm2, %v5508_v13  ;;  %v535_v20 = vor.u32 %v534_v0, %v531_v43  ;;  %v3811_v45 = vrot.slane %v5289_v53, 9  ;;  %v1318_v24 = vrot.slane %v5292_v54, 5  ;;  %v527_v23 = vsel %vm5258_vm3, %v522_v60, %v526_v11 }
  0x46   : > { %v540_v28 = vrot.slane %v538_v2, 5  ;;  %v544_v22 = vrot.slane %v542_v47, 4  ;;  %v550_v25 = vrot.slane %v548_v3, 5  ;;  %v5559_v58 = vcombine.low %v517_v26, %v527_v23 }
  0x47   : > { %v536_v38 = vrot.slane %v535_v20, 4  ;;  %v1319_v50 = vsel %vm5465_vm6, %v3811_v45, %v1318_v24  ;;  %v1320_v49 = vrot.slane %v1318_v24, 4  ;;  %v1321_v57 = vrot.slane %v5296_v59, 5  ;;  %v5576_v45 = vld [vmem:[%s5219_s6 + $0x90] sm:$0xf]  ;;  %v4959_v24 = vld [vmem:[%s6477_s1 + $0xc8] sm:$0xff]  }
  0x48   : > { %6524 = vst [vmem:[#allocation12_spill] sm:$0xff] %v5559_v58  ;;  %v545_v41 = vor.u32 %v544_v22, %v540_v28  ;;  %v553_v43 = vshrl.u32 %v5536_v1, 16  ;;  %v556_v0 = vshll.u32 %v5536_v1, 16  ;;  %4317 = vmatmul.mubr.msk.bf16.gmra.mrb[16].mxu1 %vm753_vm2, %v5559_v58  ;;  %v562_v60 = vshll.u32 %v5546_v12, 16  ;;  %v5584_v58 = vld [vmem:[%s5219_s6 + $0x94] sm:$0xf] }
  0x49   : > { %v541_v11 = vsel %vm5258_vm3, %v536_v38, %v540_v28  ;;  %v566_v2 = vshrl.u32 %v5546_v12, 16  ;;  %v572_v47 = vshll.u32 %v5549_v7, 16  ;;  %v1322_v59 = vsel %vm5465_vm6, %v1320_v49, %v1321_v57 }
  0x4a   : > { %v546_v3 = vrot.slane %v545_v41, 4  ;;  %v555_v26 = vrot.slane %v553_v43, 4  ;;  %v558_v20 = vrot.slane %v556_v0, 5  ;;  %v5581_v23 = vcombine.low %v1319_v50, %v1322_v59  ;;  %v5593_v0 = vld [vmem:[%s5219_s6 + $0x98] sm:$0x1] }
  0x4b   : > { %v564_v28 = vrot.slane %v562_v60, 5  ;;  %v568_v22 = vrot.slane %v566_v2, 4  ;;  %v574_v38 = vrot.slane %v572_v47, 5  ;;  %v3812_v57 = vrot.slane %v5308_v10, 9 }
  0x4c   : > { %6525 = vst [vmem:[#allocation13_spill] sm:$0xff] %v5581_v23  ;;  %4501 = vmatmul.mubr.msk.bf16.vlgmr.msra.gmra.mrb[0].mxu0 %vm753_vm2, %v5533_v40  ;;  %v551_v49 = vsel %vm5258_vm3, %v546_v3, %v550_v25  ;;  %v559_v41 = vor.u32 %v558_v20, %v555_v26  ;;  %v1325_v43 = vrot.slane %v5316_v16, 5  ;;  %v1328_v2 = vrot.slane %v5323_v30, 5  ;;  %v5703_v40 = vld [vmem:[%s5219_s6 + $0xbc] sm:$0x1] }
  0x4d   : > { %4533 = vmatpush3.bf16.msra.mxu0 %v5440_v21  ;;  %v5596_v50 = vcombine.low %v541_v11, %v551_v49  ;;  %4504 = vmatprep.mubr.msk.bf16.mxu0 %vm753_vm2, %v5581_v23  ;;  %v569_v60 = vor.u32 %v568_v22, %v564_v28  ;;  %v577_v25 = vshrl.u32 %v5576_v45, 16  ;;  %v580_v26 = vshll.u32 %v5576_v45, 16  ;;  %v5606_v21 = vld [vmem:[%s5219_s6 + $0x9c] sm:$0xf]  ;;  %v4962_v11 = vld [vmem:[%s6477_s1 + $0xd0] sm:$0xff]  }
  0x4e   : > { %v560_v47 = vrot.slane %v559_v41, 4  ;;  %v1326_v3 = vsel %vm5465_vm6, %v3812_v57, %v1325_v43  ;;  %v1327_v59 = vrot.slane %v1325_v43, 4  ;;  %4534 = vmatprep.subr.bf16.mxu0 %v4959_v24  ;;  %v586_v22 = vshll.u32 %v5584_v58, 16  ;;  %v5616_v41 = vld [vmem:[%s5219_s6 + $0xa0] sm:$0xf] }
  0x4f   : > { %6526 = vst [vmem:[#allocation14_spill] sm:$0xff] %v5596_v50  ;;  %4320 = vmatprep.mubr.msk.bf16.mxu1 %vm753_vm2, %v5596_v50  ;;  %v570_v30 = vrot.slane %v569_v60, 4  ;;  %v579_v20 = vrot.slane %v577_v25, 4  ;;  %v590_v49 = vshrl.u32 %v5584_v58, 16  ;;  %v582_v63 = vrot.slane %v580_v26, 5  ;;  %v4967_v60 = vld [vmem:[%s6477_s1 + $0xd8] sm:$0xff]  }
  0x50   : > { %v565_v57 = vsel %vm5258_vm3, %v560_v47, %v564_v28  ;;  %v1329_v43 = vsel %vm5465_vm6, %v1327_v59, %v1328_v2  ;;  %v596_v33 = vshll.u32 %v5593_v0, 16  ;;  %v588_v56 = vrot.slane %v586_v22, 5  ;;  %v5634_v59 = vld [vmem:[%s5219_s6 + $0xa4] sm:$0x1] }
  0x51   : > { %v575_v25 = vsel %vm5258_vm3, %v570_v30, %v574_v38  ;;  %v5628_v50 = vcombine.low %v1326_v3, %v1329_v43  ;;  %v592_v17 = vrot.slane %v590_v49, 4  ;;  %4535 = vmatpush3.bf16.msra.mxu0 %v4959_v24  ;;  %v583_v28 = vor.u32 %v582_v63, %v579_v20 }
  0x52   : > { %v5630_v44 = vcombine.low %v565_v57, %v575_v25  ;;  %v598_v2 = vrot.slane %v596_v33, 5  ;;  %v3813_v47 = vrot.slane %v5331_v36, 9  ;;  %4536 = vmatprep.subr.bf16.mxu0 %v4962_v11  ;;  %v1332_v23 = vrot.slane %v5346_v51, 5 }
  0x53   : > { %6527 = vst [vmem:[#allocation15_spill] sm:$0xff] %v5628_v50  ;;  %v593_v26 = vor.u32 %v592_v17, %v588_v56  ;;  %v1335_v38 = vrot.slane %v5355_v62, 5  ;;  %v601_v3 = vshrl.u32 %v5606_v21, 16  ;;  %v584_v63 = vrot.slane %v583_v28, 4  ;;  %v5647_v17 = vld [vmem:[%s5219_s6 + $0xa8] sm:$0xf] }
  0x54   : > { %6528 = vst [vmem:[#allocation16_spill] sm:$0xff] %v5630_v44  ;;  %4321 = vmatmul.mubr.msk.bf16.gmra.mrb[20].mxu1 %vm753_vm2, %v5630_v44  ;;  %4505 = vmatmul.mubr.msk.bf16.gmra.mrb[4].mxu0 %vm753_vm2, %v5628_v50  ;;  %v604_v33 = vshll.u32 %v5606_v21, 16  ;;  %v610_v24 = vshll.u32 %v5616_v41, 16  ;;  %v614_v30 = vshrl.u32 %v5616_v41, 16  ;;  %v1333_v62 = vsel %vm5465_vm6, %v3813_v47, %v1332_v23  ;;  %v5656_v44 = vld [vmem:[%s6477_s1 + $0xe0] sm:$0xff]  }
  0x55   : > { %v594_v20 = vrot.slane %v593_v26, 4  ;;  %v1334_v22 = vrot.slane %v1332_v23, 4  ;;  %v603_v49 = vrot.slane %v601_v3, 4  ;;  %4537 = vmatpush3.bf16.msra.mxu0 %v4962_v11  ;;  %v589_v57 = vsel %vm5258_vm3, %v584_v63, %v588_v56  ;;  %6529 = vst [vmem:[#allocation17_spill] sm:$0xff] %v5656_v44  ;;  %v5665_v56 = vld [vmem:[%s5219_s6 + $0xac] sm:$0xf] }
  0x56   : > { %v606_v43 = vrot.slane %v604_v33, 5  ;;  %v612_v25 = vrot.slane %v610_v24, 5  ;;  %v616_v28 = vrot.slane %v614_v30, 4  ;;  %4538 = vmatprep.subr.bf16.mxu0 %v4967_v60  ;;  %v620_v11 = vshll.u32 %v5634_v59, 16  ;;  %v5672_v30 = vld [vmem:[%s5219_s6 + $0xb0] sm:$0x1] }
  0x57   : > { %v599_v26 = vsel %vm5258_vm3, %v594_v20, %v598_v2  ;;  %v1336_v23 = vsel %vm5465_vm6, %v1334_v22, %v1335_v38  ;;  %v3814_v47 = vrot.slane %v5363_v6, 9  ;;  %v1339_v2 = vrot.slane %v5371_v15, 5 }
  0x58   : > { %v5667_v3 = vcombine.low %v589_v57, %v599_v26  ;;  %v5669_v63 = vcombine.low %v1333_v62, %v1336_v23  ;;  %v607_v33 = vor.u32 %v606_v43, %v603_v49  ;;  %v617_v24 = vor.u32 %v616_v28, %v612_v25  ;;  %v5684_v43 = vld [vmem:[%s5219_s6 + $0xb4] sm:$0xf] }
  0x59   : > { %v622_v50 = vrot.slane %v620_v11, 5  ;;  %v1342_v38 = vrot.slane %v5383_v31, 5  ;;  %v625_v20 = vshrl.u32 %v5647_v17, 16  ;;  %4539 = vmatpush3.bf16.msra.mxu0 %v4967_v60  ;;  %v628_v49 = vshll.u32 %v5647_v17, 16 }
  0x5a   : > { %6530 = vst [vmem:[#allocation18_spill] sm:$0xff] %v5667_v3  ;;  %6531 = vst [vmem:[#allocation19_spill] sm:$0xff] %v5669_v63  ;;  %4324 = vmatprep.mubr.msk.bf16.mxu1 %vm753_vm2, %v5667_v3  ;;  %4508 = vmatprep.mubr.msk.bf16.mxu0 %vm753_vm2, %v5669_v63  ;;  %v608_v62 = vrot.slane %v607_v33, 4  ;;  %v618_v22 = vrot.slane %v617_v24, 4  ;;  %v634_v57 = vshll.u32 %v5665_v56, 16  ;;  %v1340_v31 = vsel %vm5465_vm6, %v3814_v47, %v1339_v2 }
  0x5b   : > { %v1341_v60 = vrot.slane %v1339_v2, 4  ;;  %v627_v28 = vrot.slane %v625_v20, 4  ;;  %v638_v26 = vshrl.u32 %v5665_v56, 16  ;;  %4572 = vmatprep.subr.bf16.mxu0 %v5656_v44  ;;  %v630_v33 = vrot.slane %v628_v49, 5  ;;  %v5695_v3 = vld [vmem:[%s5219_s6 + $0xb8] sm:$0xf] }
  0x5c   : > { %v613_v23 = vsel %vm5258_vm3, %v608_v62, %v612_v25  ;;  %v623_v11 = vsel %vm5258_vm3, %v618_v22, %v622_v50  ;;  %v636_v24 = vrot.slane %v634_v57, 5  ;;  %v644_v20 = vshll.u32 %v5672_v30, 16 }
  0x5d   : > { %v5697_v63 = vcombine.low %v613_v23, %v623_v11  ;;  %v1343_v47 = vsel %vm5465_vm6, %v1341_v60, %v1342_v38  ;;  %v640_v2 = vrot.slane %v638_v26, 4  ;;  %v631_v25 = vor.u32 %v630_v33, %v627_v28 }
  0x5e   : > { %v5705_v13 = vcombine.low %v1340_v31, %v1343_v47  ;;  %v3815_v62 = vrot.slane %v5393_v39, 9  ;;  %v1346_v50 = vrot.slane %v5402_v52, 5  ;;  %v646_v49 = vrot.slane %v644_v20, 5 }
  0x5f   : > { %6532 = vst [vmem:[#allocation20_spill] sm:$0xff] %v5697_v63  ;;  %4325 = vmatmul.mubr.msk.bf16.gmra.mrb[24].mxu1 %vm753_vm2, %v5697_v63  ;;  %v641_v22 = vor.u32 %v640_v2, %v636_v24  ;;  %v1349_v57 = vrot.slane %v5412_v61, 5  ;;  %v649_v38 = vshrl.u32 %v5684_v43, 16  ;;  %v632_v60 = vrot.slane %v631_v25, 4 }
  0x60   : > { %6533 = vst [vmem:[#allocation21_spill] sm:$0xff] %v5705_v13  ;;  %4509 = vmatmul.mubr.msk.bf16.gmra.mrb[8].mxu0 %vm753_vm2, %v5705_v13  ;;  %v1347_v31 = vsel %vm5465_vm6, %v3815_v62, %v1346_v50  ;;  %v1348_v28 = vrot.slane %v1346_v50, 4  ;;  %v652_v26 = vshll.u32 %v5684_v43, 16  ;;  %v658_v33 = vshll.u32 %v5695_v3, 16 }
  0x61   : > { %v642_v23 = vrot.slane %v641_v22, 4  ;;  %v651_v11 = vrot.slane %v649_v38, 4  ;;  %v662_v47 = vshrl.u32 %v5695_v3, 16  ;;  %v637_v61 = vsel %vm5258_vm3, %v632_v60, %v636_v24 }
  0x62   : > { %v1350_v2 = vsel %vm5465_vm6, %v1348_v28, %v1349_v57  ;;  %v654_v20 = vrot.slane %v652_v26, 5  ;;  %v668_v25 = vshll.u32 %v5703_v40, 16  ;;  %v660_v22 = vrot.slane %v658_v33, 5 }
  0x63   : > { %v647_v62 = vsel %vm5258_vm3, %v642_v23, %v646_v49  ;;  %v5727_v50 = vcombine.low %v1347_v31, %v1350_v2  ;;  %v664_v38 = vrot.slane %v662_v47, 4  ;;  %v3816_v39 = vrot.slane %v5426_v19, 9 }
  0x64   : > { %v5729_v63 = vcombine.low %v637_v61, %v647_v62  ;;  %v655_v13 = vor.u32 %v654_v20, %v651_v11  ;;  %v670_v44 = vrot.slane %v668_v25, 5  ;;  %v1353_v57 = vrot.slane %v5431_v32, 5 }
  0x65   : > { %4512 = vmatprep.mubr.msk.bf16.mxu0 %vm753_vm2, %v5727_v50  ;;  %v665_v24 = vor.u32 %v664_v38, %v660_v22  ;;  %v1356_v60 = vrot.slane %v5445_v48, 5  ;;  %v3817_v49 = vrot.slane %v5459_v4, 9  ;;  %v3772_v28 = vcombine.low %v5225_v8, %v5228_v9 }
  0x66   : > { %4328 = vmatprep.mubr.msk.bf16.mxu1 %vm753_vm2, %v5729_v63  ;;  %v656_v31 = vrot.slane %v655_v13, 4  ;;  %v1360_v26 = vrot.slane %v5479_v27, 5  ;;  %v1363_v23 = vrot.slane %v5484_v34, 5  ;;  %v1354_v33 = vsel %vm5465_vm6, %v3816_v39, %v1353_v57 }
  0x67   : > { %v666_v11 = vrot.slane %v665_v24, 4  ;;  %v1355_v47 = vrot.slane %v1353_v57, 4  ;;  %v1367_v48 = vrot.slane %v5516_v35, 5  ;;  %v3818_v8 = vrot.slane %v5504_v5, 9 }
  0x68   : > { %v661_v61 = vsel %vm5258_vm3, %v656_v31, %v660_v22  ;;  %v1361_v13 = vsel %vm5465_vm6, %v3817_v49, %v1360_v26  ;;  %v1362_v2 = vrot.slane %v1360_v26, 4  ;;  %v1370_v39 = vrot.slane %v5519_v18, 5 }
  0x69   : > { %v671_v9 = vsel %vm5258_vm3, %v666_v11, %v670_v44  ;;  %v1357_v34 = vsel %vm5465_vm6, %v1355_v47, %v1356_v60  ;;  %v1369_v20 = vrot.slane %v1367_v48, 4  ;;  %v3819_v24 = vrot.slane %v5536_v1, 9 }
  0x6a   : > { %v5756_v25 = vcombine.low %v661_v61, %v671_v9  ;;  %v5758_v62 = vcombine.low %v1354_v33, %v1357_v34  ;;  %v1364_v22 = vsel %vm5465_vm6, %v1362_v2, %v1363_v23  ;;  %v1374_v57 = vrot.slane %v5546_v12, 5  ;;  %v4966_v2 = vld [vmem:[%s6477_s1 + $0x48] sm:$0xff]  }
  0x6b   : > { %v5762_v38 = vcombine.low %v1361_v13, %v1364_v22  ;;  %v1377_v44 = vrot.slane %v5549_v7, 5  ;;  %v1368_v18 = vsel %vm5465_vm6, %v3818_v8, %v1367_v48  ;;  %v1371_v60 = vsel %vm5465_vm6, %v1369_v20, %v1370_v39 }
  0x6c   : > { %4329 = vmatmul.mubr.msk.bf16.gmra.mrb[28].mxu1 %vm753_vm2, %v5756_v25  ;;  %4513 = vmatmul.mubr.msk.bf16.gmra.mrb[12].mxu0 %vm753_vm2, %v5758_v62  ;;  %v1376_v49 = vrot.slane %v1374_v57, 4  ;;  %v1381_v31 = vrot.slane %v5584_v58, 5  ;;  %v1388_v26 = vrot.slane %v5616_v41, 5  ;;  %v1375_v23 = vsel %vm5465_vm6, %v3819_v24, %v1374_v57 }
  0x6d   : > { %4340 = vmatprep.mubr.msk.bf16.mxu1 %vm753_vm2, %v3772_v28  ;;  %4516 = vmatprep.mubr.msk.bf16.mxu0 %vm753_vm2, %v5762_v38  ;;  %v5784_v28 = vcombine.low %v1368_v18, %v1371_v60  ;;  %v3820_v11 = vrot.slane %v5576_v45, 9  ;;  %v1384_v47 = vrot.slane %v5593_v0, 5  ;;  %v5790_v48 = vcombine.low %v5271_v42, %v5278_v46 }
  0x6e   : > { %v1378_v7 = vsel %vm5465_vm6, %v1376_v49, %v1377_v44  ;;  %v1383_v33 = vrot.slane %v1381_v31, 4  ;;  %v3821_v61 = vrot.slane %v5606_v21, 9  ;;  %v1390_v8 = vrot.slane %v1388_v26, 4 }
  0x6f   : > { %v5793_v13 = vcombine.low %v1375_v23, %v1378_v7  ;;  %v1391_v9 = vrot.slane %v5634_v59, 5  ;;  %v1395_v34 = vrot.slane %v5665_v56, 5  ;;  %v1382_v42 = vsel %vm5465_vm6, %v3820_v11, %v1381_v31  ;;  %v5909_v31 = vld [vmem:[%s6477_s1 + $0x60] sm:$0xff]  }
  0x70   : > { %v1385_v46 = vsel %vm5465_vm6, %v1383_v33, %v1384_v47  ;;  %v5813_v0 = vcombine.low %v5289_v53, %v5292_v54  ;;  %v1389_v59 = vsel %vm5465_vm6, %v3821_v61, %v1388_v26  ;;  %v5819_v20 = vcombine.low %v5426_v19, %v5431_v32  ;;  %v4972_v53 = vld [vmem:[%s6477_s1 + $0x50] sm:$0xff]  }
  0x71   : > { %v3822_v39 = vrot.slane %v5647_v17, 9  ;;  %v1402_v22 = vrot.slane %v5695_v3, 5  ;;  %v5832_v54 = vcombine.low %v5459_v4, %v5479_v27  ;;  %v5834_v19 = vcombine.low %v1382_v42, %v1385_v46 }
  0x72   : > { %v1397_v32 = vrot.slane %v1395_v34, 4  ;;  %v1398_v24 = vrot.slane %v5672_v30, 5  ;;  %v5839_v57 = vcombine.low %v5504_v5, %v5516_v35  ;;  %v5843_v44 = vcombine.low %v5536_v1, %v5546_v12  ;;  %v273_v30 = vld [vmem:[%s5219_s6 + $0xc8] sm:$0x1] }
  0x73   : > { %v5847_v18 = vcombine.low %v5576_v45, %v5584_v58  ;;  %v5851_v4 = vcombine.low %v5606_v21, %v5616_v41  ;;  %v5855_v27 = vcombine.low %v5647_v17, %v5665_v56  ;;  %v5859_v5 = vcombine.low %v5308_v10, %v5316_v16  ;;  %v5870_v21 = vld [vmem:[%s5219_s6 + $0xc4] sm:$0xf]  ;;  %v4978_v10 = vld [vmem:[%s6477_s1 + $0x58] sm:$0xff]  }
  0x74   : > { %4341 = vmatmul.mubr.msk.bf16.vlgmr.msra.gmra.mrb[0].mxu1 %vm753_vm2, %v5267_v37  ;;  %4517 = vmatmul.mubr.msk.bf16.gmra.mrb[16].mxu0 %vm753_vm2, %v5784_v28  ;;  %v5865_v1 = vcombine.low %v5684_v43, %v5695_v3  ;;  %v3823_v12 = vrot.slane %v5684_v43, 9  ;;  %v1404_v58 = vrot.slane %v1402_v22, 4  ;;  %v1405_v45 = vrot.slane %v5703_v40, 5  ;;  %v5893_v3 = vld [vmem:[%s5219_s6 + $0xc0] sm:$0xf] }
  0x75   : > { %4373 = vmatpush3.bf16.msra.mxu1 %v5407_v55  ;;  %4344 = vmatprep.mubr.msk.bf16.mxu1 %vm753_vm2, %v5790_v48  ;;  %v1392_v55 = vsel %vm5465_vm6, %v1390_v8, %v1391_v9  ;;  %v1396_v16 = vsel %vm5465_vm6, %v3822_v39, %v1395_v34  ;;  %v1399_v41 = vsel %vm5465_vm6, %v1397_v32, %v1398_v24  ;;  %v2222_v40 = vrot.slane %v5870_v21, 5 }
  0x76   : > { %4520 = vmatprep.mubr.msk.bf16.mxu0 %vm753_vm2, %v5793_v13  ;;  %4374 = vmatprep.subr.bf16.mxu1 %v4966_v2  ;;  %v5861_v35 = vcombine.low %v1389_v59, %v1392_v55  ;;  %v1403_v17 = vsel %vm5465_vm6, %v3823_v12, %v1402_v22  ;;  %v1406_v56 = vsel %vm5465_vm6, %v1404_v58, %v1405_v45  ;;  %v1964_v26 = vshrl.u32 %v5893_v3, 16  ;;  %v6534_v22 = vld [vmem:[#allocation4_spill] sm:$0xff]  ;;  %v6535_v45 = vld [vmem:[#allocation17_spill] sm:$0xff] }
  0x77   : > { %v5898_v43 = vcombine.low %v5331_v36, %v5346_v51  ;;  %v5900_v60 = vcombine.low %v1396_v16, %v1399_v41  ;;  %v5904_v49 = vcombine.low %v5363_v6, %v5371_v15  ;;  %v1967_v23 = vshll.u32 %v5893_v3, 16  ;;  %v4986_v16 = vld [vmem:[%s6477_s1 + $0xf8] sm:$0xff]   ;;  %v5123_v41 = vld [vmem:[%s5219_s6 + $0x4] sm:$0xf] }
  0x78   : > { %v1973_v7 = vshll.u32 %v5870_v21, 16  ;;  %v1977_v36 = vshrl.u32 %v5870_v21, 16  ;;  %v5915_v51 = vcombine.low %v1403_v17, %v1406_v56  ;;  %v3926_v11 = vrot.slane %v5893_v3, 9  ;;  %v4990_v17 = vld [vmem:[%s6477_s1 + $0x100] sm:$0xff]   ;;  %v5124_v56 = vld [vmem:[%s5219_s6 + $0x8] sm:$0x1] }
  0x79   : > { %4375 = vmatpush3.bf16.msra.mxu1 %v4966_v2  ;;  %v2224_v6 = vrot.slane %v2222_v40, 4  ;;  %v2225_v15 = vrot.slane %v273_v30, 5  ;;  %v1966_v33 = vrot.slane %v1964_v26, 4  ;;  %v1969_v47 = vrot.slane %v1967_v23, 5  ;;  %v5125_v26 = vld [vmem:[%s5219_s6] sm:$0xf] }
  0x7a   : > { %4376 = vmatprep.subr.bf16.mxu1 %v4972_v53  ;;  %v1975_v61 = vrot.slane %v1973_v7, 5  ;;  %v1979_v2 = vrot.slane %v1977_v36, 4  ;;  %v1983_v34 = vshll.u32 %v273_v30, 16  ;;  %v2223_v42 = vsel %vm5465_vm6, %v3926_v11, %v2222_v40 }
  0x7b   : > { %v1970_v8 = vor.u32 %v1969_v47, %v1966_v33  ;;  %v2226_v46 = vsel %vm5465_vm6, %v2224_v6, %v2225_v15  ;;  %v1297_v40 = vrot.slane %v5123_v41, 5  ;;  %v1300_v30 = vrot.slane %v5124_v56, 5  ;;  %v4985_v15 = vld [vmem:[%s6477_s1 + $0x68] sm:$0xff]   ;;  %v6536_v33 = vld [vmem:[#allocation9_spill] sm:$0xff]  ;;  %v6548_v41 = vld [vmem:[#allocation10_spill] sm:$0xff] }
  0x7c   : > { %4345 = vmatmul.mubr.msk.bf16.gmra.mrb[4].mxu1 %vm753_vm2, %v5813_v0  ;;  %4521 = vmatmul.mubr.msk.bf16.gmra.mrb[20].mxu0 %vm753_vm2, %v5834_v19  ;;  %v1980_v9 = vor.u32 %v1979_v2, %v1975_v61  ;;  %v1985_v39 = vrot.slane %v1983_v34, 5  ;;  %v5935_v32 = vcombine.low %v2223_v42, %v2226_v46  ;;  %v3808_v23 = vrot.slane %v5125_v26, 9  ;;  %v6537_v47 = vld [vmem:[#allocation11_spill] sm:$0xff]  ;;  %v4991_v2 = vld [vmem:[%s6477_s1 + $0x78] sm:$0xff]   ;;  %v5126_v34 = vld [vmem:[%s6477_s1 + $0x80] sm:$0xff]  }
  0x7d   : > { %4348 = vmatprep.mubr.msk.bf16.mxu1 %vm753_vm2, %v5859_v5  ;;  %4524 = vmatprep.mubr.msk.bf16.mxu0 %vm753_vm2, %v5861_v35  ;;  %v1971_v59 = vrot.slane %v1970_v8, 4  ;;  %v1299_v7 = vrot.slane %v1297_v40, 4  ;;  %v6538_v8 = vld [vmem:[#allocation13_spill] sm:$0xff]  ;;  %v6540_v42 = vld [vmem:[#allocation19_spill] sm:$0xff]  ;;  %v6551_v56 = vld [vmem:[#allocation16_spill] sm:$0xff] }
  0x7e   : > { %4377 = vmatpush3.bf16.msra.mxu1 %v4972_v53  ;;  %v1981_v55 = vrot.slane %v1980_v9, 4  ;;  %v5933_v53 = vcombine.low %v6534_v22, %v5402_v52  ;;  %v4979_v52 = vld [vmem:[%s6477_s1 + $0xe8] sm:$0xff]   ;;  %v1298_v36 = vsel %vm5465_vm6, %v3808_v23, %v1297_v40  ;;  %v6030_v9 = vcombine.low %v5893_v3, %v5870_v21  ;;  %v6541_v46 = vld [vmem:[#allocation21_spill] sm:$0xff]  ;;  %v6047_v3 = vld [vmem:[%s5219_s6 + $0xd0] sm:$0xf] }
  0x7f   : > { %4378 = vmatprep.subr.bf16.mxu1 %v4978_v10  ;;  %v1976_v24 = vsel %vm5258_vm3, %v1971_v59, %v1975_v61  ;;  %v1301_v11 = vsel %vm5465_vm6, %v1299_v7, %v1300_v30  ;;  %v4989_v61 = vld [vmem:[%s6477_s1 + $0x70] sm:$0xff]   ;;  %v6044_v21 = vld [vmem:[%s5219_s6 + $0xcc] sm:$0xf]  ;;  %v2707_v23 = vshrl.u32 %v6047_v3, 16  ;;  %v6552_v7 = vld [vmem:[#allocation18_spill] sm:$0xff]  ;;  %v2952_v29 = vrot.slane %v6047_v3, 5 }
  0x80   : > { %v1986_v12 = vsel %vm5258_vm3, %v1981_v55, %v1985_v39  ;;  %v3832_v6 = vcombine.low %v1298_v36, %v1301_v11  ;;  %v3964_v59 = vcombine.low %v6044_v21, %v6047_v3  ;;  %v6542_v55 = vld [vmem:[#allocation2_spill] sm:$0xff]  ;;  %v4992_v39 = vld [vmem:[%s6477_s1 + $0x108] sm:$0xff]   ;;  %v6549_v40 = vld [vmem:[#allocation12_spill] sm:$0xff]  ;;  %v2694_v30 = vshrl.u32 %v6044_v21, 16 }
  0x81   : > { %v5941_v58 = vcombine.low %v1976_v24, %v1986_v12  ;;  %v6543_v22 = vld [vmem:[#allocation3_spill] sm:$0xff]  ;;  %v6544_v24 = vld [vmem:[#allocation5_spill] sm:$0xff]  ;;  %v4993_v12 = vld [vmem:[%s6477_s1 + $0x110] sm:$0xff]   ;;  %v2697_v26 = vshll.u32 %v6044_v21, 16 }
  0x82   : > { %4379 = vmatpush3.bf16.msra.mxu1 %v4978_v10  ;;  %v4984_v10 = vld [vmem:[%s6477_s1 + $0xf0] sm:$0xff]   ;;  %v2696_v36 = vrot.slane %v2694_v30, 4 }
  0x83   : > { %4412 = vmatprep.subr.bf16.mxu1 %v5909_v31  ;;  %v2699_v11 = vrot.slane %v2697_v26, 5 }
  0x84   : > { %4349 = vmatmul.mubr.msk.bf16.gmra.mrb[8].mxu1 %vm753_vm2, %v5898_v43  ;;  %4525 = vmatmul.mubr.msk.bf16.gmra.mrb[24].mxu0 %vm753_vm2, %v5900_v60 }
  0x85   : > { %4352 = vmatprep.mubr.msk.bf16.mxu1 %vm753_vm2, %v5904_v49  ;;  %4528 = vmatprep.mubr.msk.bf16.mxu0 %vm753_vm2, %v5915_v51 }
  0x8c   : > { %4353 = vmatmul.mubr.msk.bf16.gmra.mrb[12].mxu1 %vm753_vm2, %v5933_v53  ;;  %4529 = vmatmul.mubr.msk.bf16.gmra.mrb[28].mxu0 %vm753_vm2, %v5935_v32 }
  0x8d   : > { %4356 = vmatprep.mubr.msk.bf16.mxu1 %vm753_vm2, %v5819_v20  ;;  %4540 = vmatprep.mubr.msk.bf16.mxu0 %vm753_vm2, %v5790_v48 }
  0x94   : > { %4357 = vmatmul.mubr.msk.bf16.gmra.mrb[16].mxu1 %vm753_vm2, %v5832_v54  ;;  %4541 = vmatmul.mubr.msk.bf16.vlgmr.msra.gmra.mrb[0].mxu0 %vm753_vm2, %v5813_v0 }
  0x95   : > { %4573 = vmatpush3.bf16.msra.mxu0 %v6535_v45  ;;  %4360 = vmatprep.mubr.msk.bf16.mxu1 %vm753_vm2, %v5839_v57  ;;  %v6545_v45 = vld [vmem:[#allocation6_spill] sm:$0xff] }
  0x96   : > { %4544 = vmatprep.mubr.msk.bf16.mxu0 %vm753_vm2, %v5859_v5  ;;  %4574 = vmatprep.subr.bf16.mxu0 %v4979_v52 }
  0x99   : > { %4575 = vmatpush3.bf16.msra.mxu0 %v4979_v52  ;;  %v4994_v52 = vld [vmem:[%s6477_s1 + $0x118] sm:$0xff]  }
  0x9a   : > { %4576 = vmatprep.subr.bf16.mxu0 %v4984_v10 }
  0x9c   : > { %4361 = vmatmul.mubr.msk.bf16.gmra.mrb[20].mxu1 %vm753_vm2, %v5843_v44  ;;  %4545 = vmatmul.mubr.msk.bf16.gmra.mrb[4].mxu0 %vm753_vm2, %v5898_v43 }
  0x9d   : > { %4364 = vmatprep.mubr.msk.bf16.mxu1 %vm753_vm2, %v5847_v18  ;;  %4548 = vmatprep.mubr.msk.bf16.mxu0 %vm753_vm2, %v5904_v49 }
  0x9e   : > { %4577 = vmatpush3.bf16.msra.mxu0 %v4984_v10  ;;  %v6546_v10 = vld [vmem:[#allocation7_spill] sm:$0xff] }
  0x9f   : > { %4578 = vmatprep.subr.bf16.mxu0 %v4986_v16 }
  0xa2   : > { %4579 = vmatpush3.bf16.msra.mxu0 %v4986_v16  ;;  %v6547_v16 = vld [vmem:[#allocation8_spill] sm:$0xff] }
  0xa3   : > { %4612 = vmatprep.subr.bf16.mxu0 %v4990_v17 }
  0xa4   : > { %4365 = vmatmul.mubr.msk.bf16.gmra.mrb[24].mxu1 %vm753_vm2, %v5851_v4  ;;  %4549 = vmatmul.mubr.msk.bf16.gmra.mrb[8].mxu0 %vm753_vm2, %v5933_v53 }
  0xa5   : > { %4368 = vmatprep.mubr.msk.bf16.mxu1 %vm753_vm2, %v5855_v27  ;;  %4552 = vmatprep.mubr.msk.bf16.mxu0 %vm753_vm2, %v5819_v20 }
  0xac   : > { %4369 = vmatmul.mubr.msk.bf16.gmra.mrb[28].mxu1 %vm753_vm2, %v5865_v1  ;;  %4553 = vmatmul.mubr.msk.bf16.gmra.mrb[12].mxu0 %vm753_vm2, %v5832_v54 }
  0xad   : > { %4380 = vmatprep.mubr.msk.bf16.mxu1 %vm753_vm2, %v3832_v6  ;;  %4556 = vmatprep.mubr.msk.bf16.mxu0 %vm753_vm2, %v5839_v57 }
  0xb4   : > { %4381 = vmatmul.mubr.msk.bf16.vlgmr.msra.gmra.mrb[0].mxu1 %vm753_vm2, %v6536_v33  ;;  %4557 = vmatmul.mubr.msk.bf16.gmra.mrb[16].mxu0 %vm753_vm2, %v5843_v44  ;;  %v6115_v33 = vld [vmem:[%s5219_s6 + $0xd4] sm:$0x1] }
  0xb5   : > { %4413 = vmatpush3.bf16.msra.mxu1 %v5909_v31  ;;  %4384 = vmatprep.mubr.msk.bf16.mxu1 %vm753_vm2, %v6537_v47  ;;  %v6539_v31 = vld [vmem:[#allocation15_spill] sm:$0xff] }
  0xb6   : > { %4560 = vmatprep.mubr.msk.bf16.mxu0 %vm753_vm2, %v5847_v18  ;;  %4414 = vmatprep.subr.bf16.mxu1 %v4985_v15 }
  0xb9   : > { %4415 = vmatpush3.bf16.msra.mxu1 %v4985_v15  ;;  %v2709_v15 = vrot.slane %v2707_v23, 4 }
  0xba   : > { %4416 = vmatprep.subr.bf16.mxu1 %v4989_v61 }
  0xbc   : > { %4385 = vmatmul.mubr.msk.bf16.gmra.mrb[4].mxu1 %vm753_vm2, %v6538_v8  ;;  %4561 = vmatmul.mubr.msk.bf16.gmra.mrb[20].mxu0 %vm753_vm2, %v5851_v4 }
  0xbd   : > { %4388 = vmatprep.mubr.msk.bf16.mxu1 %vm753_vm2, %v6539_v31  ;;  %4564 = vmatprep.mubr.msk.bf16.mxu0 %vm753_vm2, %v5855_v27 }
  0xbe   : > { %4417 = vmatpush3.bf16.msra.mxu1 %v4989_v61  ;;  %v6553_v61 = vld [vmem:[#allocation20_spill] sm:$0xff] }
  0xbf   : > { %4418 = vmatprep.subr.bf16.mxu1 %v4991_v2 }
  0xc2   : > { %4419 = vmatpush3.bf16.msra.mxu1 %v4991_v2  ;;  %v2700_v2 = vor.u32 %v2699_v11, %v2696_v36 }
  0xc3   : > { %4652 = vmatprep.subr.bf16.mxu1 %v5126_v34 }
  0xc4   : > { %4389 = vmatmul.mubr.msk.bf16.gmra.mrb[8].mxu1 %vm753_vm2, %v6540_v42  ;;  %4565 = vmatmul.mubr.msk.bf16.gmra.mrb[24].mxu0 %vm753_vm2, %v5865_v1 }
  0xc5   : > { %4392 = vmatprep.mubr.msk.bf16.mxu1 %vm753_vm2, %v6541_v46  ;;  %4568 = vmatprep.mubr.msk.bf16.mxu0 %vm753_vm2, %v6030_v9 }
  0xcc   : > { %4393 = vmatmul.mubr.msk.bf16.gmra.mrb[12].mxu1 %vm753_vm2, %v5727_v50  ;;  %4569 = vmatmul.mubr.msk.bf16.gmra.mrb[28].mxu0 %vm753_vm2, %v3964_v59  ;;  %v2713_v59 = vshll.u32 %v6115_v33, 16 }
  0xcd   : > { %4396 = vmatprep.mubr.msk.bf16.mxu1 %vm753_vm2, %v5758_v62  ;;  %4580 = vmatprep.mubr.msk.bf16.mxu0 %vm753_vm2, %v6542_v55  ;;  %v5129_v55 = vld [vmem:[%s6477_s1 + $0x98] sm:$0xff]  }
  0xd4   : > { %4397 = vmatmul.mubr.msk.bf16.gmra.mrb[16].mxu1 %vm753_vm2, %v5762_v38  ;;  %4581 = vmatmul.mubr.msk.bf16.vlgmr.msra.gmra.mrb[0].mxu0 %vm753_vm2, %v6543_v22  ;;  %v2715_v22 = vrot.slane %v2713_v59, 5 }
  0xd5   : > { %4613 = vmatpush3.bf16.msra.mxu0 %v4990_v17  ;;  %4400 = vmatprep.mubr.msk.bf16.mxu1 %vm753_vm2, %v5784_v28  ;;  %v6550_v17 = vld [vmem:[#allocation14_spill] sm:$0xff] }
  0xd6   : > { %4584 = vmatprep.mubr.msk.bf16.mxu0 %vm753_vm2, %v6544_v24  ;;  %4614 = vmatprep.subr.bf16.mxu0 %v4992_v39 }
  0xd9   : > { %4615 = vmatpush3.bf16.msra.mxu0 %v4992_v39 }
  0xda   : > { %4616 = vmatprep.subr.bf16.mxu0 %v4993_v12 }
  0xdc   : > { %4401 = vmatmul.mubr.msk.bf16.gmra.mrb[20].mxu1 %vm753_vm2, %v5793_v13  ;;  %4585 = vmatmul.mubr.msk.bf16.gmra.mrb[4].mxu0 %vm753_vm2, %v6545_v45 }
  0xdd   : > { %4404 = vmatprep.mubr.msk.bf16.mxu1 %vm753_vm2, %v5834_v19  ;;  %4588 = vmatprep.mubr.msk.bf16.mxu0 %vm753_vm2, %v6546_v10 }
  0xde   : > { %4617 = vmatpush3.bf16.msra.mxu0 %v4993_v12 }
  0xdf   : > { %4618 = vmatprep.subr.bf16.mxu0 %v4994_v52 }
  0xe2   : > { %4619 = vmatpush3.bf16.msra.mxu0 %v4994_v52 }
  0xe4   : > { %4405 = vmatmul.mubr.msk.bf16.gmra.mrb[24].mxu1 %vm753_vm2, %v5861_v35  ;;  %4589 = vmatmul.mubr.msk.bf16.gmra.mrb[8].mxu0 %vm753_vm2, %v6547_v16 }
  0xe5   : > { %4408 = vmatprep.mubr.msk.bf16.mxu1 %vm753_vm2, %v5900_v60  ;;  %4592 = vmatprep.mubr.msk.bf16.mxu0 %vm753_vm2, %v6548_v41 }
  0xec   : > { %4409 = vmatmul.mubr.msk.bf16.gmra.mrb[28].mxu1 %vm753_vm2, %v5915_v51  ;;  %4593 = vmatmul.mubr.msk.bf16.gmra.mrb[12].mxu0 %vm753_vm2, %v6549_v40 }
  0xed   : > { %4420 = vmatprep.mubr.msk.bf16.mxu1 %vm753_vm2, %v5267_v37  ;;  %4596 = vmatprep.mubr.msk.bf16.mxu0 %vm753_vm2, %v6550_v17  ;;  %v2703_v37 = vshll.u32 %v6047_v3, 16 }
  0xef   : > { %v2705_v6 = vrot.slane %v2703_v37, 5 }
  0xf4   : > { %4421 = vmatmul.mubr.msk.bf16.vlgmr.msra.gmra.mrb[0].mxu1 %vm753_vm2, %v5790_v48  ;;  %4597 = vmatmul.mubr.msk.bf16.gmra.mrb[16].mxu0 %vm753_vm2, %v6551_v56  ;;  %v5127_v48 = vld [vmem:[%s6477_s1 + $0x88] sm:$0xff]  }
  0xf5   : > { %4656 = vmatpush3.bf16.msra.mxu1 %v5126_v34  ;;  %4424 = vmatprep.mubr.msk.bf16.mxu1 %vm753_vm2, %v5813_v0  ;;  %v5128_v0 = vld [vmem:[%s6477_s1 + $0x90] sm:$0xff]   ;;  %v2710_v34 = vor.u32 %v2709_v15, %v2705_v6 }
  0xf6   : > { %4600 = vmatprep.mubr.msk.bf16.mxu0 %vm753_vm2, %v6552_v7  ;;  %4653 = vmatprep.subr.bf16.mxu1 %v5127_v48 }
  0xf7   : > { %v2711_v39 = vrot.slane %v2710_v34, 4 }
  0xf9   : > { %4657 = vmatpush3.bf16.msra.mxu1 %v5127_v48  ;;  %v2716_v24 = vsel %vm5258_vm3, %v2711_v39, %v2715_v22 }
  0xfa   : > { %4654 = vmatprep.subr.bf16.mxu1 %v5128_v0 }
  0xfc   : > { %4425 = vmatmul.mubr.msk.bf16.gmra.mrb[4].mxu1 %vm753_vm2, %v5859_v5  ;;  %4601 = vmatmul.mubr.msk.bf16.gmra.mrb[20].mxu0 %vm753_vm2, %v6553_v61  ;;  %v2701_v5 = vrot.slane %v2700_v2, 4 }
  0xfd   : > { %4428 = vmatprep.mubr.msk.bf16.mxu1 %vm753_vm2, %v5898_v43  ;;  %4604 = vmatprep.mubr.msk.bf16.mxu0 %vm753_vm2, %v5729_v63 }
  0xfe   : > { %4658 = vmatpush3.bf16.msra.mxu1 %v5128_v0  ;;  %v2706_v43 = vsel %vm5258_vm3, %v2701_v5, %v2705_v6 }
  0xff   : > { %4655 = vmatprep.subr.bf16.mxu1 %v5129_v55  ;;  %v3993_v12 = vcombine.low %v2706_v43, %v2716_v24 }
 0x102   : > { %4659 = vmatpush3.bf16.msra.mxu1 %v5129_v55 }
 0x104   : > { %4429 = vmatmul.mubr.msk.bf16.gmra.mrb[8].mxu1 %vm753_vm2, %v5904_v49  ;;  %4605 = vmatmul.mubr.msk.bf16.gmra.mrb[24].mxu0 %vm753_vm2, %v5756_v25 }
 0x105   : > { %4432 = vmatprep.mubr.msk.bf16.mxu1 %vm753_vm2, %v5933_v53  ;;  %4608 = vmatprep.mubr.msk.bf16.mxu0 %vm753_vm2, %v5941_v58 }
 0x10c   : > { %4433 = vmatmul.mubr.msk.bf16.gmra.mrb[12].mxu1 %vm753_vm2, %v5819_v20  ;;  %4609 = vmatmul.mubr.msk.bf16.gmra.mrb[28].mxu0 %vm753_vm2, %v3993_v12 }
 0x10d   : > { %4436 = vmatprep.mubr.msk.bf16.mxu1 %vm753_vm2, %v5832_v54  ;;  %4620 = vmatprep.mubr.msk.bf16.mxu0 %vm753_vm2, %v6537_v47 }
 0x114   : > { %4437 = vmatmul.mubr.msk.bf16.gmra.mrb[16].mxu1 %vm753_vm2, %v5839_v57  ;;  %4621 = vmatmul.mubr.msk.bf16.vlgmr.msra.gmra.mrb[0].mxu0 %vm753_vm2, %v6538_v8 }
 0x115   : > { %4440 = vmatprep.mubr.msk.bf16.mxu1 %vm753_vm2, %v5843_v44  ;;  %4624 = vmatprep.mubr.msk.bf16.mxu0 %vm753_vm2, %v6539_v31 }
 0x11c   : > { %4441 = vmatmul.mubr.msk.bf16.gmra.mrb[20].mxu1 %vm753_vm2, %v5847_v18  ;;  %4625 = vmatmul.mubr.msk.bf16.gmra.mrb[4].mxu0 %vm753_vm2, %v6540_v42 }
 0x11d   : > { %4444 = vmatprep.mubr.msk.bf16.mxu1 %vm753_vm2, %v5851_v4  ;;  %4628 = vmatprep.mubr.msk.bf16.mxu0 %vm753_vm2, %v6541_v46 }
 0x124   : > { %4445 = vmatmul.mubr.msk.bf16.gmra.mrb[24].mxu1 %vm753_vm2, %v5855_v27  ;;  %4629 = vmatmul.mubr.msk.bf16.gmra.mrb[8].mxu0 %vm753_vm2, %v5727_v50  ;;  %v4014_v50 = vrot.slane %v6044_v21, 9 }
 0x125   : > { %4448 = vmatprep.mubr.msk.bf16.mxu1 %vm753_vm2, %v5865_v1  ;;  %4632 = vmatprep.mubr.msk.bf16.mxu0 %vm753_vm2, %v5758_v62  ;;  %v2954_v62 = vrot.slane %v2952_v29, 4 }
 0x12c   : > { %4449 = vmatmul.mubr.msk.bf16.gmra.mrb[28].mxu1 %vm753_vm2, %v6030_v9  ;;  %4633 = vmatmul.mubr.msk.bf16.gmra.mrb[12].mxu0 %vm753_vm2, %v5762_v38  ;;  %v2955_v38 = vrot.slane %v6115_v33, 5 }
 0x12d   : > { %4476 = vmatprep.mubr.msk.bf16.mxu1 %vm753_vm2, %v6549_v40  ;;  %4636 = vmatprep.mubr.msk.bf16.mxu0 %vm753_vm2, %v5784_v28  ;;  %v2953_v28 = vsel %vm5465_vm6, %v4014_v50, %v2952_v29 }
 0x134   : > { %4477 = vmatmul.mubr.msk.bf16.vlgmr.msra.gmra.mrb[16].mxu1 %vm753_vm2, %v6550_v17  ;;  %4637 = vmatmul.mubr.msk.bf16.gmra.mrb[16].mxu0 %vm753_vm2, %v5793_v13  ;;  %v2956_v13 = vsel %vm5465_vm6, %v2954_v62, %v2955_v38 }
 0x135   : > { %4480 = vmatprep.mubr.msk.bf16.mxu1 %vm753_vm2, %v6551_v56  ;;  %4640 = vmatprep.mubr.msk.bf16.mxu0 %vm753_vm2, %v5834_v19  ;;  %v4023_v20 = vcombine.low %v2953_v28, %v2956_v13 }
 0x13c   : > { %4481 = vmatmul.mubr.msk.bf16.gmra.mrb[20].mxu1 %vm753_vm2, %v6552_v7  ;;  %4641 = vmatmul.mubr.msk.bf16.gmra.mrb[20].mxu0 %vm753_vm2, %v5861_v35 }
 0x13d   : > { %4484 = vmatprep.mubr.msk.bf16.mxu1 %vm753_vm2, %v6553_v61  ;;  %4644 = vmatprep.mubr.msk.bf16.mxu0 %vm753_vm2, %v5900_v60 }
 0x144   : > { %4485 = vmatmul.mubr.msk.bf16.gmra.mrb[24].mxu1 %vm753_vm2, %v5729_v63  ;;  %4645 = vmatmul.mubr.msk.bf16.gmra.mrb[24].mxu0 %vm753_vm2, %v5915_v51 }
 0x145   : > { %4488 = vmatprep.mubr.msk.bf16.mxu1 %vm753_vm2, %v5756_v25  ;;  %4648 = vmatprep.mubr.msk.bf16.mxu0 %vm753_vm2, %v5935_v32 }
 0x14c   : > { %4489 = vmatmul.mubr.msk.bf16.gmra.mrb[28].mxu1 %vm753_vm2, %v5941_v58  ;;  %4649 = vmatmul.mubr.msk.bf16.gmra.mrb[28].mxu0 %vm753_vm2, %v4023_v20  ;;  %v6230_v58 = vld [vmem:[%s6478_s2] ss:$0 sm:$0xff] }
 0x1c7   : > { %v4422_v63 = vpop.f32.mrb[0].mxu1 }
 0x1c8   : > { %v1804_v54 = vpop.f32.mrb[1].mxu1 }
 0x1c9   : > { %v4423_v19 = vpop.f32.mrb[2].mxu1 }
 0x1ca   : > { %v1807_v57 = vpop.f32.mrb[3].mxu1 }
 0x1cf   : > { %v4426_v25 = vpop.f32.mrb[4].mxu1 }
 0x1d0   : > { %v1820_v44 = vpop.f32.mrb[5].mxu1 }
 0x1d1   : > { %v4427_v18 = vpop.f32.mrb[6].mxu1 }
 0x1d2   : > { %v1823_v4 = vpop.f32.mrb[7].mxu1 }
 0x1d7   : > { %v4430_v27 = vpop.f32.mrb[8].mxu1 }
 0x1d8   : > { %v1836_v35 = vpop.f32.mrb[9].mxu1 }
 0x1d9   : > { %v4431_v1 = vpop.f32.mrb[10].mxu1 }
 0x1da   : > { %v6217_v60 = vpop.f32.mrb[11].mxu1 }
 0x1df   : > { %v6219_v14 = vpop.f32.mrb[12].mxu1 }
 0x1e0   : > { %v6221_v49 = vpop.f32.mrb[13].mxu1 }
 0x1e1   : > { %v6223_v51 = vpop.f32.mrb[14].mxu1 }
 0x1e2   : > { %v6225_v53 = vpop.f32.mrb[15].mxu1 }
 0x1e7   : > { %v4622_v32 = vpop.f32.mrb[0].mxu0 }
 0x1e8   : > { %v4660_v47 = vadd.f32 %v4622_v32, %v4422_v63  ;;  %v3030_v8 = vpop.f32.mrb[1].mxu0 }
 0x1e9   : > { %v4661_v31 = vadd.f32 %v3030_v8, %v1804_v54  ;;  %v4623_v9 = vpop.f32.mrb[2].mxu0 }
 0x1ea   : > { %v6233_v42 = vadd.f32 %v4660_v47, %v6230_v58  ;;  %v4662_v46 = vadd.f32 %v4623_v9, %v4423_v19  ;;  %v3033_v21 = vpop.f32.mrb[3].mxu0 }
 0x1eb   : > { %v6236_v3 = vadd.f32 %v4661_v31, %v6230_v58  ;;  %v4663_v52 = vadd.f32 %v3033_v21, %v1807_v57 }
 0x1ec   : > { %v3230_v45 = vsub.f32 0.0, %v6233_v42  ;;  %v6240_v10 = vadd.f32 %v4662_v46, %v6230_v58 }
 0x1ed   : > { %v3228_v16 = vsub.f32 0.0, %v6236_v3  ;;  %v6244_v41 = vadd.f32 %v4663_v52, %v6230_v58 }
 0x1ee   : > { %v3264_v40 = vmul.f32 1.442695, %v3230_v45  ;;  %v3231_v17 = vsub.f32 0.0, %v6240_v10 }
 0x1ef   : > { %v3260_v56 = vmul.f32 1.442695, %v3228_v16  ;;  %v3229_v30 = vsub.f32 0.0, %v6244_v41  ;;  %v4626_v26 = vpop.f32.mrb[4].mxu0 }
 0x1f0   : > { %4995 = vpow2.f32 %v3264_v40  ;;  %v3266_v23 = vmul.f32 1.442695, %v3231_v17  ;;  %v4664_v37 = vadd.f32 %v4626_v26, %v4426_v25  ;;  %v3046_v7 = vpop.f32.mrb[5].mxu0 }
 0x1f1   : > { %4997 = vpow2.f32 %v3260_v56  ;;  %v3262_v48 = vmul.f32 1.442695, %v3229_v30  ;;  %v4665_v36 = vadd.f32 %v3046_v7, %v1820_v44  ;;  %v4627_v11 = vpop.f32.mrb[6].mxu0 }
 0x1f2   : > { %4999 = vpow2.f32 %v3266_v23  ;;  %v6249_v6 = vadd.f32 %v4664_v37, %v6230_v58  ;;  %v4666_v15 = vadd.f32 %v4627_v11, %v4427_v18  ;;  %v3049_v33 = vpop.f32.mrb[7].mxu0 }
 0x1f3   : > { %5001 = vpow2.f32 %v3262_v48  ;;  %v6252_v0 = vadd.f32 %v4665_v36, %v6230_v58  ;;  %v4667_v61 = vadd.f32 %v3049_v33, %v1823_v4 }
 0x1f4   : > { %v3234_v2 = vsub.f32 0.0, %v6249_v6  ;;  %v6256_v34 = vadd.f32 %v4666_v15, %v6230_v58 }
 0x1f5   : > { %v3232_v59 = vsub.f32 0.0, %v6252_v0  ;;  %v6260_v55 = vadd.f32 %v4667_v61, %v6230_v58 }
 0x1f6   : > { %v3272_v5 = vmul.f32 1.442695, %v3234_v2  ;;  %v3235_v39 = vsub.f32 0.0, %v6256_v34 }
 0x1f7   : > { %v3268_v22 = vmul.f32 1.442695, %v3232_v59  ;;  %v3233_v43 = vsub.f32 0.0, %v6260_v55  ;;  %v4630_v24 = vpop.f32.mrb[8].mxu0 }
 0x1f8   : > { %5003 = vpow2.f32 %v3272_v5  ;;  %v3274_v12 = vmul.f32 1.442695, %v3235_v39  ;;  %v4668_v29 = vadd.f32 %v4630_v24, %v4430_v27  ;;  %v3062_v50 = vpop.f32.mrb[9].mxu0 }
 0x1f9   : > { %5005 = vpow2.f32 %v3268_v22  ;;  %v3270_v62 = vmul.f32 1.442695, %v3233_v43  ;;  %v4669_v38 = vadd.f32 %v3062_v50, %v1836_v35  ;;  %v4631_v28 = vpop.f32.mrb[10].mxu0 }
 0x1fa   : > { %v4996_v13 = vpop.eup %4995  ;;  %5007 = vpow2.f32 %v3274_v12  ;;  %v6265_v20 = vadd.f32 %v4668_v29, %v6230_v58  ;;  %v4670_v63 = vadd.f32 %v4631_v28, %v4431_v1  ;;  %v3065_v54 = vpop.f32.mrb[11].mxu0 }
 0x1fb   : > { %v4998_v19 = vpop.eup %4997  ;;  %v3326_v57 = vadd.f32 1.0, %v4996_v13  ;;  %5009 = vpow2.f32 %v3270_v62  ;;  %v6268_v25 = vadd.f32 %v4669_v38, %v6230_v58  ;;  %v4671_v44 = vadd.f32 %v3065_v54, %v6217_v60 }
 0x1fc   : > { %v5000_v18 = vpop.eup %4999  ;;  %v3324_v4 = vadd.f32 1.0, %v4998_v19  ;;  %v3238_v27 = vsub.f32 0.0, %v6265_v20  ;;  %v6273_v35 = vadd.f32 %v4670_v63, %v6230_v58 }
 0x1fd   : > { %v5002_v32 = vpop.eup %5001  ;;  %5011 = vrcp.f32 %v3326_v57  ;;  %v3327_v47 = vadd.f32 1.0, %v5000_v18  ;;  %v3236_v1 = vsub.f32 0.0, %v6268_v25  ;;  %v6277_v8 = vadd.f32 %v4671_v44, %v6230_v58 }
 0x1fe   : > { %5013 = vrcp.f32 %v3324_v4  ;;  %v3325_v31 = vadd.f32 1.0, %v5002_v32  ;;  %v3280_v9 = vmul.f32 1.442695, %v3238_v27  ;;  %v3239_v60 = vsub.f32 0.0, %v6273_v35 }
 0x1ff   : > { %5015 = vrcp.f32 %v3327_v47  ;;  %v3276_v46 = vmul.f32 1.442695, %v3236_v1  ;;  %v3237_v21 = vsub.f32 0.0, %v6277_v8  ;;  %v4634_v52 = vpop.f32.mrb[12].mxu0 }
 0x200   : > { %5017 = vrcp.f32 %v3325_v31  ;;  %v3282_v45 = vmul.f32 1.442695, %v3239_v60  ;;  %v4672_v16 = vadd.f32 %v4634_v52, %v6219_v14  ;;  %v3078_v40 = vpop.f32.mrb[13].mxu0 }
 0x201   : > { %5019 = vpow2.f32 %v3280_v9  ;;  %v3278_v17 = vmul.f32 1.442695, %v3237_v21  ;;  %v4673_v56 = vadd.f32 %v3078_v40, %v6221_v49  ;;  %v4635_v30 = vpop.f32.mrb[14].mxu0 }
 0x202   : > { %v5004_v26 = vpop.eup %5003  ;;  %5021 = vpow2.f32 %v3276_v46  ;;  %v6284_v23 = vadd.f32 %v4672_v16, %v6230_v58  ;;  %v4674_v37 = vadd.f32 %v4635_v30, %v6223_v51  ;;  %v3081_v7 = vpop.f32.mrb[15].mxu0 }
 0x203   : > { %v5006_v48 = vpop.eup %5005  ;;  %v3330_v36 = vadd.f32 1.0, %v5004_v26  ;;  %5023 = vpow2.f32 %v3282_v45  ;;  %v6288_v14 = vadd.f32 %v4673_v56, %v6230_v58  ;;  %v4675_v11 = vadd.f32 %v3081_v7, %v6225_v53 }
 0x204   : > { %v5008_v15 = vpop.eup %5007  ;;  %v3328_v49 = vadd.f32 1.0, %v5006_v48  ;;  %5025 = vpow2.f32 %v3278_v17  ;;  %v3242_v33 = vsub.f32 0.0, %v6284_v23  ;;  %v6293_v61 = vadd.f32 %v4674_v37, %v6230_v58 }
 0x205   : > { %v5010_v2 = vpop.eup %5009  ;;  %5027 = vrcp.f32 %v3330_v36  ;;  %v3331_v51 = vadd.f32 1.0, %v5008_v15  ;;  %v3240_v59 = vsub.f32 0.0, %v6288_v14  ;;  %v6297_v5 = vadd.f32 %v4675_v11, %v6230_v58 }
 0x206   : > { %5029 = vrcp.f32 %v3328_v49  ;;  %v3329_v39 = vadd.f32 1.0, %v5010_v2  ;;  %v3288_v53 = vmul.f32 1.442695, %v3242_v33  ;;  %v3243_v22 = vsub.f32 0.0, %v6293_v61 }
 0x207   : > { %v5012_v43 = vpop.eup %5011  ;;  %5031 = vrcp.f32 %v3331_v51  ;;  %v3284_v24 = vmul.f32 1.442695, %v3240_v59  ;;  %v3241_v12 = vsub.f32 0.0, %v6297_v5  ;;  %v4478_v29 = vpop.f32.mrb[16].mxu1 }
 0x208   : > { %v4638_v50 = vpop.f32.mrb[16].mxu0  ;;  %v5014_v62 = vpop.eup %5013  ;;  %v3422_v38 = vmul.f32 %v5012_v43, %v6233_v42  ;;  %5033 = vrcp.f32 %v3329_v39  ;;  %v3290_v28 = vmul.f32 1.442695, %v3243_v22 }
 0x209   : > { %v4676_v13 = vadd.f32 %v4638_v50, %v4478_v29  ;;  %v2124_v63 = vpop.f32.mrb[17].mxu1  ;;  %v3094_v54 = vpop.f32.mrb[17].mxu0  ;;  %v3420_v57 = vmul.f32 %v5014_v62, %v6236_v3  ;;  %5035 = vpow2.f32 %v3288_v53  ;;  %v3286_v44 = vmul.f32 1.442695, %v3241_v12 }
 0x20a   : > { %v5016_v19 = vpop.eup %5015  ;;  %v4677_v18 = vadd.f32 %v3094_v54, %v2124_v63  ;;  %v4479_v4 = vpop.f32.mrb[18].mxu1  ;;  %v4082_v32 = vpack.c.bf16 %v3422_v38, %v3422_v38  ;;  %5037 = vpow2.f32 %v3284_v24 }
 0x20b   : > { %v4639_v27 = vpop.f32.mrb[18].mxu0  ;;  %v5018_v42 = vpop.eup %5017  ;;  %v3423_v47 = vmul.f32 %v5016_v19, %v6240_v10  ;;  %v6311_v1 = vadd.f32 %v4676_v13, %v6230_v58  ;;  %v4080_v46 = vpack.c.bf16 %v3420_v57, %v3420_v57  ;;  %5039 = vpow2.f32 %v3290_v28 }
 0x20c   : > { %v2127_v31 = vpop.f32.mrb[19].mxu1  ;;  %v3097_v9 = vpop.f32.mrb[19].mxu0  ;;  %v3421_v3 = vmul.f32 %v5018_v42, %v6244_v41  ;;  %v6315_v21 = vadd.f32 %v4677_v18, %v6230_v58  ;;  %3583 = vst.msk [vmem:[%s6306_s10 + $0x8] sm:$0xf] %vm3580_vm7, %v4082_v32  ;;  %5041 = vpow2.f32 %v3286_v44  ;;  %v4678_v30 = vadd.f32 %v4639_v27, %v4479_v4 }
 0x20d   : > { %v5020_v60 = vpop.eup %5019  ;;  %v4083_v10 = vpack.c.bf16 %v3423_v47, %v3423_v47  ;;  %v3246_v16 = vsub.f32 0.0, %v6311_v1  ;;  %3581 = vst.msk [vmem:[%s6306_s10] sm:$0xf] %vm3580_vm7, %v4080_v46  ;;  %v4679_v48 = vadd.f32 %v3097_v9, %v2127_v31 }
 0x20e   : > { %v5022_v52 = vpop.eup %5021  ;;  %v3334_v45 = vadd.f32 1.0, %v5020_v60  ;;  %v4081_v17 = vpack.c.bf16 %v3421_v3, %v3421_v3  ;;  %v3244_v41 = vsub.f32 0.0, %v6315_v21  ;;  %v6328_v49 = vadd.f32 %v4678_v30, %v6230_v58 }
 0x20f   : > { %v5024_v40 = vpop.eup %5023  ;;  %v3332_v56 = vadd.f32 1.0, %v5022_v52  ;;  %3584 = vst.msk [vmem:[%s6306_s10 + $0xc] sm:$0xf] %vm3580_vm7, %v4083_v10  ;;  %v3296_v7 = vmul.f32 1.442695, %v3246_v16  ;;  %v4482_v33 = vpop.f32.mrb[20].mxu1  ;;  %v6332_v39 = vadd.f32 %v4679_v48, %v6230_v58 }
 0x210   : > { %v5026_v26 = vpop.eup %5025  ;;  %5043 = vrcp.f32 %v3334_v45  ;;  %v3335_v37 = vadd.f32 1.0, %v5024_v40  ;;  %3582 = vst.msk [vmem:[%s6306_s10 + $0x4] sm:$0xf] %vm3580_vm7, %v4081_v17  ;;  %v3292_v15 = vmul.f32 1.442695, %v3244_v41  ;;  %v4642_v2 = vpop.f32.mrb[20].mxu0 }
 0x211   : > { %v5028_v36 = vpop.eup %5027  ;;  %5045 = vrcp.f32 %v3332_v56  ;;  %v3333_v11 = vadd.f32 1.0, %v5026_v26  ;;  %v4680_v53 = vadd.f32 %v4642_v2, %v4482_v33  ;;  %v2140_v22 = vpop.f32.mrb[21].mxu1  ;;  %v3247_v29 = vsub.f32 0.0, %v6328_v49 }
 0x212   : > { %v5030_v51 = vpop.eup %5029  ;;  %v3426_v59 = vmul.f32 %v5028_v36, %v6249_v6  ;;  %5047 = vrcp.f32 %v3335_v37  ;;  %v3110_v43 = vpop.f32.mrb[21].mxu0  ;;  %v3245_v63 = vsub.f32 0.0, %v6332_v39 }
 0x213   : > { %v5032_v24 = vpop.eup %5031  ;;  %v3424_v12 = vmul.f32 %v5030_v51, %v6252_v0  ;;  %5049 = vrcp.f32 %v3333_v11  ;;  %v4681_v50 = vadd.f32 %v3110_v43, %v2140_v22  ;;  %v4483_v62 = vpop.f32.mrb[22].mxu1  ;;  %v3298_v18 = vmul.f32 1.442695, %v3247_v29 }
 0x214   : > { %v4643_v38 = vpop.f32.mrb[22].mxu0  ;;  %v5034_v28 = vpop.eup %5033  ;;  %v4086_v13 = vpack.c.bf16 %v3426_v59, %v3426_v59  ;;  %v3427_v6 = vmul.f32 %v5032_v24, %v6256_v34  ;;  %5051 = vpow2.f32 %v3296_v7  ;;  %v3294_v34 = vmul.f32 1.442695, %v3245_v63 }
 0x215   : > { %v2143_v54 = vpop.f32.mrb[23].mxu1  ;;  %v3113_v19 = vpop.f32.mrb[23].mxu0  ;;  %v4084_v44 = vpack.c.bf16 %v3424_v12, %v3424_v12  ;;  %v3425_v0 = vmul.f32 %v5034_v28, %v6260_v55  ;;  %5053 = vpow2.f32 %v3292_v15  ;;  %v6342_v32 = vadd.f32 %v4680_v53, %v6230_v58 }
 0x216   : > { %v5036_v57 = vpop.eup %5035  ;;  %3587 = vst.msk [vmem:[%s6306_s10 + $0x18] sm:$0xf] %vm3580_vm7, %v4086_v13  ;;  %v4087_v27 = vpack.c.bf16 %v3427_v6, %v3427_v6  ;;  %5055 = vpow2.f32 %v3298_v18  ;;  %v6347_v55 = vadd.f32 %v4681_v50, %v6230_v58  ;;  %v4682_v52 = vadd.f32 %v4643_v38, %v4483_v62 }
 0x217   : > { %v5038_v4 = vpop.eup %5037  ;;  %v3338_v42 = vadd.f32 1.0, %v5036_v57  ;;  %3585 = vst.msk [vmem:[%s6306_s10 + $0x10] sm:$0xf] %vm3580_vm7, %v4084_v44  ;;  %v4085_v31 = vpack.c.bf16 %v3425_v0, %v3425_v0  ;;  %v3250_v3 = vsub.f32 0.0, %v6342_v32  ;;  %v4683_v16 = vadd.f32 %v3113_v19, %v2143_v54  ;;  %v4486_v40 = vpop.f32.mrb[24].mxu1 }
 0x218   : > { %v5040_v47 = vpop.eup %5039  ;;  %v3336_v9 = vadd.f32 1.0, %v5038_v4  ;;  %3588 = vst.msk [vmem:[%s6306_s10 + $0x1c] sm:$0xf] %vm3580_vm7, %v4087_v27  ;;  %v3248_v45 = vsub.f32 0.0, %v6347_v55  ;;  %v4646_v17 = vpop.f32.mrb[24].mxu0  ;;  %v6356_v30 = vadd.f32 %v4682_v52, %v6230_v58 }
 0x219   : > { %v5042_v60 = vpop.eup %5041  ;;  %5057 = vrcp.f32 %v3338_v42  ;;  %v3339_v46 = vadd.f32 1.0, %v5040_v47  ;;  %3586 = vst.msk [vmem:[%s6306_s10 + $0x14] sm:$0xf] %vm3580_vm7, %v4085_v31  ;;  %v3304_v41 = vmul.f32 1.442695, %v3250_v3  ;;  %v4684_v26 = vadd.f32 %v4646_v17, %v4486_v40  ;;  %v2156_v37 = vpop.f32.mrb[25].mxu1 }
 0x21a   : > { %5059 = vrcp.f32 %v3336_v9  ;;  %v3337_v10 = vadd.f32 1.0, %v5042_v60  ;;  %v5044_v56 = vpop.eup %5043  ;;  %v3126_v7 = vpop.f32.mrb[25].mxu0  ;;  %v3300_v11 = vmul.f32 1.442695, %v3248_v45  ;;  %v6360_v15 = vadd.f32 %v4683_v16, %v6230_v58 }
 0x21b   : > { %5061 = vrcp.f32 %v3339_v46  ;;  %v5046_v48 = vpop.eup %5045  ;;  %v3430_v36 = vmul.f32 %v5044_v56, %v6265_v20  ;;  %v4487_v33 = vpop.f32.mrb[26].mxu1  ;;  %v3251_v53 = vsub.f32 0.0, %v6356_v30  ;;  %v6365_v22 = vadd.f32 %v4684_v26, %v6230_v58 }
 0x21c   : > { %5063 = vrcp.f32 %v3337_v10  ;;  %v4647_v2 = vpop.f32.mrb[26].mxu0  ;;  %v5048_v51 = vpop.eup %5047  ;;  %v3428_v59 = vmul.f32 %v5046_v48, %v6268_v25  ;;  %v3249_v50 = vsub.f32 0.0, %v6360_v15  ;;  %v4685_v44 = vadd.f32 %v3126_v7, %v2156_v37 }
 0x21d   : > { %5065 = vpow2.f32 %v3294_v34  ;;  %v2159_v43 = vpop.f32.mrb[27].mxu1  ;;  %v3129_v24 = vpop.f32.mrb[27].mxu0  ;;  %v4090_v12 = vpack.c.bf16 %v3430_v36, %v3430_v36  ;;  %v3431_v29 = vmul.f32 %v5048_v51, %v6273_v35  ;;  %v3306_v28 = vmul.f32 1.442695, %v3251_v53 }
 0x21e   : > { %v5050_v20 = vpop.eup %5049  ;;  %5067 = vpow2.f32 %v3304_v41  ;;  %v4088_v38 = vpack.c.bf16 %v3428_v59, %v3428_v59  ;;  %v3302_v54 = vmul.f32 1.442695, %v3249_v50  ;;  %v3254_v19 = vsub.f32 0.0, %v6365_v22 }
 0x21f   : > { %v5052_v62 = vpop.eup %5051  ;;  %v3429_v25 = vmul.f32 %v5050_v20, %v6277_v8  ;;  %5069 = vpow2.f32 %v3300_v11  ;;  %3591 = vst.msk [vmem:[%s6306_s10 + $0x28] sm:$0xf] %vm3580_vm7, %v4090_v12  ;;  %v4091_v6 = vpack.c.bf16 %v3431_v29, %v3431_v29  ;;  %v4686_v18 = vadd.f32 %v4647_v2, %v4487_v33  ;;  %v4490_v27 = vpop.f32.mrb[28].mxu1 }
 0x220   : > { %v5054_v13 = vpop.eup %5053  ;;  %v3342_v63 = vadd.f32 1.0, %v5052_v62  ;;  %3589 = vst.msk [vmem:[%s6306_s10 + $0x20] sm:$0xf] %vm3580_vm7, %v4088_v38  ;;  %5071 = vpow2.f32 %v3306_v28  ;;  %v3312_v8 = vmul.f32 1.442695, %v3254_v19  ;;  %v4687_v4 = vadd.f32 %v3129_v24, %v2159_v43  ;;  %v4650_v42 = vpop.f32.mrb[28].mxu0 }
 0x221   : > { %v4089_v35 = vpack.c.bf16 %v3429_v25, %v3429_v25  ;;  %v3340_v57 = vadd.f32 1.0, %v5054_v13  ;;  %v5056_v0 = vpop.eup %5055  ;;  %3592 = vst.msk [vmem:[%s6306_s10 + $0x2c] sm:$0xf] %vm3580_vm7, %v4091_v6  ;;  %v6380_v31 = vadd.f32 %v4685_v44, %v6230_v58  ;;  %v4688_v9 = vadd.f32 %v4650_v42, %v4490_v27  ;;  %v2172_v60 = vpop.f32.mrb[29].mxu1 }
 0x222   : > { %5073 = vrcp.f32 %v3342_v63  ;;  %v3343_v47 = vadd.f32 1.0, %v5056_v0  ;;  %v3142_v46 = vpop.f32.mrb[29].mxu0  ;;  %v6384_v10 = vadd.f32 %v4686_v18, %v6230_v58  ;;  %v6387_v45 = vadd.f32 %v4687_v4, %v6230_v58  ;;  %v4491_v16 = vpop.f32.mrb[30].mxu1 }
 0x223   : > { %v5058_v34 = vpop.eup %5057  ;;  %3590 = vst.msk [vmem:[%s6306_s10 + $0x24] sm:$0xf] %vm3580_vm7, %v4089_v35  ;;  %5075 = vrcp.f32 %v3340_v57  ;;  %v4651_v40 = vpop.f32.mrb[30].mxu0  ;;  %v3252_v41 = vsub.f32 0.0, %v6380_v31  ;;  %v6392_v26 = vadd.f32 %v4688_v9, %v6230_v58  ;;  %v4689_v62 = vadd.f32 %v3142_v46, %v2172_v60 }
 0x224   : > { %v5060_v3 = vpop.eup %5059  ;;  %v3434_v52 = vmul.f32 %v5058_v34, %v6284_v23  ;;  %5077 = vpow2.f32 %v3302_v54  ;;  %v2175_v23 = vpop.f32.mrb[31].mxu1  ;;  %v3255_v11 = vsub.f32 0.0, %v6384_v10  ;;  %v3253_v59 = vsub.f32 0.0, %v6387_v45 }
 0x225   : > { %v5062_v17 = vpop.eup %5061  ;;  %v3432_v56 = vmul.f32 %v5060_v3, %v6288_v14  ;;  %5079 = vrcp.f32 %v3343_v47  ;;  %v3145_v37 = vpop.f32.mrb[31].mxu0  ;;  %v3308_v51 = vmul.f32 1.442695, %v3252_v41  ;;  %v3258_v20 = vsub.f32 0.0, %v6392_v26 }
 0x226   : > { %v5064_v7 = vpop.eup %5063  ;;  %v4094_v48 = vpack.c.bf16 %v3434_v52, %v3434_v52  ;;  %v3435_v36 = vmul.f32 %v5062_v17, %v6293_v61  ;;  %5081 = vpow2.f32 %v3312_v8  ;;  %v3314_v50 = vmul.f32 1.442695, %v3255_v11 }
 0x227   : > { %v5066_v33 = vpop.eup %5065  ;;  %v4092_v14 = vpack.c.bf16 %v3432_v56, %v3432_v56  ;;  %v3433_v2 = vmul.f32 %v5064_v7, %v6297_v5  ;;  %5083 = vpow2.f32 %v3308_v51  ;;  %v3310_v25 = vmul.f32 1.442695, %v3253_v59 }
 0x228   : > { %v5068_v53 = vpop.eup %5067  ;;  %3595 = vst.msk [vmem:[%s6306_s10 + $0x38] sm:$0xf] %vm3580_vm7, %v4094_v48  ;;  %v4095_v43 = vpack.c.bf16 %v3435_v36, %v3435_v36  ;;  %v3341_v24 = vadd.f32 1.0, %v5066_v33  ;;  %v4690_v28 = vadd.f32 %v4651_v40, %v4491_v16  ;;  %v4691_v13 = vadd.f32 %v3145_v37, %v2175_v23 }
 0x229   : > { %v5070_v61 = vpop.eup %5069  ;;  %3593 = vst.msk [vmem:[%s6306_s10 + $0x30] sm:$0xf] %vm3580_vm7, %v4092_v14  ;;  %v4093_v12 = vpack.c.bf16 %v3433_v2, %v3433_v2  ;;  %v3346_v29 = vadd.f32 1.0, %v5068_v53  ;;  %v3320_v54 = vmul.f32 1.442695, %v3258_v20  ;;  %v6408_v19 = vadd.f32 %v4689_v62, %v6230_v58 }
 0x22a   : > { %3596 = vst.msk [vmem:[%s6306_s10 + $0x3c] sm:$0xf] %vm3580_vm7, %v4095_v43  ;;  %5085 = vrcp.f32 %v3341_v24  ;;  %v3344_v5 = vadd.f32 1.0, %v5070_v61  ;;  %v5072_v38 = vpop.eup %5071  ;;  %v6412_v44 = vadd.f32 %v4690_v28, %v6230_v58  ;;  %v6415_v0 = vadd.f32 %v4691_v13, %v6230_v58 }
 0x22b   : > { %3594 = vst.msk [vmem:[%s6306_s10 + $0x34] sm:$0xf] %vm3580_vm7, %v4093_v12  ;;  %5087 = vrcp.f32 %v3346_v29  ;;  %v3347_v63 = vadd.f32 1.0, %v5072_v38  ;;  %v3256_v4 = vsub.f32 0.0, %v6408_v19 }
 0x22c   : > { %v5074_v6 = vpop.eup %5073  ;;  %5089 = vrcp.f32 %v3344_v5  ;;  %v3257_v3 = vsub.f32 0.0, %v6415_v0 }
 0x22d   : > { %v5076_v35 = vpop.eup %5075  ;;  %v3438_v57 = vmul.f32 %v5074_v6, %v6311_v1  ;;  %5091 = vpow2.f32 %v3314_v50  ;;  %v3259_v1 = vsub.f32 0.0, %v6412_v44  ;;  %v3316_v58 = vmul.f32 1.442695, %v3256_v4 }
 0x22e   : > { %v5078_v8 = vpop.eup %5077  ;;  %v3436_v18 = vmul.f32 %v5076_v35, %v6315_v21  ;;  %5093 = vrcp.f32 %v3347_v63  ;;  %v3318_v40 = vmul.f32 1.442695, %v3257_v3 }
 0x22f   : > { %v5080_v27 = vpop.eup %5079  ;;  %v4098_v42 = vpack.c.bf16 %v3438_v57, %v3438_v57  ;;  %v3345_v34 = vadd.f32 1.0, %v5078_v8  ;;  %5095 = vpow2.f32 %v3310_v25  ;;  %v3322_v46 = vmul.f32 1.442695, %v3259_v1 }
 0x230   : > { %v5082_v47 = vpop.eup %5081  ;;  %v4096_v9 = vpack.c.bf16 %v3436_v18, %v3436_v18  ;;  %v3439_v60 = vmul.f32 %v5080_v27, %v6328_v49  ;;  %5097 = vpow2.f32 %v3320_v54 }
 0x231   : > { %3599 = vst.msk [vmem:[%s6306_s10 + $0x48] sm:$0xf] %vm3580_vm7, %v4098_v42  ;;  %5099 = vrcp.f32 %v3345_v34  ;;  %v3350_v21 = vadd.f32 1.0, %v5082_v47  ;;  %v5084_v16 = vpop.eup %5083 }
 0x232   : > { %3597 = vst.msk [vmem:[%s6306_s10 + $0x40] sm:$0xf] %vm3580_vm7, %v4096_v9  ;;  %v4099_v52 = vpack.c.bf16 %v3439_v60, %v3439_v60  ;;  %5101 = vpow2.f32 %v3316_v58  ;;  %v3348_v49 = vadd.f32 1.0, %v5084_v16 }
 0x233   : > { %5103 = vrcp.f32 %v3350_v21 }
 0x234   : > { %v5086_v17 = vpop.eup %5085  ;;  %3600 = vst.msk [vmem:[%s6306_s10 + $0x4c] sm:$0xf] %vm3580_vm7, %v4099_v52  ;;  %5105 = vpow2.f32 %v3322_v46 }
 0x235   : > { %v5088_v56 = vpop.eup %5087  ;;  %v3437_v41 = vmul.f32 %v5086_v17, %v6332_v39  ;;  %5107 = vpow2.f32 %v3318_v40 }
 0x236   : > { %v5090_v23 = vpop.eup %5089  ;;  %v3442_v37 = vmul.f32 %v5088_v56, %v6342_v32  ;;  %5109 = vrcp.f32 %v3348_v49 }
 0x237   : > { %v5092_v7 = vpop.eup %5091  ;;  %v4097_v48 = vpack.c.bf16 %v3437_v41, %v3437_v41  ;;  %v3440_v36 = vmul.f32 %v5090_v23, %v6347_v55 }
 0x238   : > { %v5094_v11 = vpop.eup %5093  ;;  %v4102_v33 = vpack.c.bf16 %v3442_v37, %v3442_v37  ;;  %v3351_v14 = vadd.f32 1.0, %v5092_v7 }
 0x239   : > { %v5096_v2 = vpop.eup %5095  ;;  %3598 = vst.msk [vmem:[%s6306_s10 + $0x44] sm:$0xf] %vm3580_vm7, %v4097_v48  ;;  %v4100_v51 = vpack.c.bf16 %v3440_v36, %v3440_v36  ;;  %v3443_v39 = vmul.f32 %v5094_v11, %v6356_v30 }
 0x23a   : > { %v5098_v59 = vpop.eup %5097  ;;  %3603 = vst.msk [vmem:[%s6306_s10 + $0x58] sm:$0xf] %vm3580_vm7, %v4102_v33  ;;  %5111 = vrcp.f32 %v3351_v14  ;;  %v3349_v32 = vadd.f32 1.0, %v5096_v2 }
 0x23b   : > { %v5100_v53 = vpop.eup %5099  ;;  %3601 = vst.msk [vmem:[%s6306_s10 + $0x50] sm:$0xf] %vm3580_vm7, %v4100_v51  ;;  %v4103_v43 = vpack.c.bf16 %v3443_v39, %v3443_v39  ;;  %v3354_v55 = vadd.f32 1.0, %v5098_v59 }
 0x23c   : > { %v5102_v24 = vpop.eup %5101  ;;  %v3441_v20 = vmul.f32 %v5100_v53, %v6360_v15  ;;  %5113 = vrcp.f32 %v3349_v32 }
 0x23d   : > { %v5104_v61 = vpop.eup %5103  ;;  %3604 = vst.msk [vmem:[%s6306_s10 + $0x5c] sm:$0xf] %vm3580_vm7, %v4103_v43  ;;  %5115 = vrcp.f32 %v3354_v55  ;;  %v3352_v30 = vadd.f32 1.0, %v5102_v24 }
 0x23e   : > { %v5106_v12 = vpop.eup %5105  ;;  %v4101_v29 = vpack.c.bf16 %v3441_v20, %v3441_v20  ;;  %v3446_v50 = vmul.f32 %v5104_v61, %v6365_v22 }
 0x23f   : > { %v5108_v5 = vpop.eup %5107  ;;  %5117 = vrcp.f32 %v3352_v30  ;;  %v3355_v62 = vadd.f32 1.0, %v5106_v12 }
 0x240   : > { %v5110_v38 = vpop.eup %5109  ;;  %3602 = vst.msk [vmem:[%s6306_s10 + $0x54] sm:$0xf] %vm3580_vm7, %v4101_v29  ;;  %v4106_v25 = vpack.c.bf16 %v3446_v50, %v3446_v50  ;;  %v3353_v15 = vadd.f32 1.0, %v5108_v5 }
 0x241   : > { %v3444_v28 = vmul.f32 %v5110_v38, %v6380_v31  ;;  %5119 = vrcp.f32 %v3355_v62 }
 0x242   : > { %3607 = vst.msk [vmem:[%s6306_s10 + $0x68] sm:$0xf] %vm3580_vm7, %v4106_v25  ;;  %5121 = vrcp.f32 %v3353_v15 }
 0x243   : > { %v4104_v13 = vpack.c.bf16 %v3444_v28, %v3444_v28 }
 0x244   : > { %v5112_v6 = vpop.eup %5111 }
 0x245   : > { %3605 = vst.msk [vmem:[%s6306_s10 + $0x60] sm:$0xf] %vm3580_vm7, %v4104_v13  ;;  %v3447_v22 = vmul.f32 %v5112_v6, %v6384_v10 }
 0x246   : > { %v5114_v63 = vpop.eup %5113 }
 0x247   : > { %v5116_v54 = vpop.eup %5115  ;;  %v4107_v35 = vpack.c.bf16 %v3447_v22, %v3447_v22  ;;  %v3445_v57 = vmul.f32 %v5114_v63, %v6387_v45 }
 0x248   : > { %v3450_v31 = vmul.f32 %v5116_v54, %v6392_v26 }
 0x249   : > { %v5118_v8 = vpop.eup %5117  ;;  %3608 = vst.msk [vmem:[%s6306_s10 + $0x6c] sm:$0xf] %vm3580_vm7, %v4107_v35  ;;  %v4105_v18 = vpack.c.bf16 %v3445_v57, %v3445_v57 }
 0x24a   : > { %v4110_v4 = vpack.c.bf16 %v3450_v31, %v3450_v31  ;;  %v3448_v27 = vmul.f32 %v5118_v8, %v6408_v19 }
 0x24b   : > { %v5120_v42 = vpop.eup %5119  ;;  %3606 = vst.msk [vmem:[%s6306_s10 + $0x64] sm:$0xf] %vm3580_vm7, %v4105_v18 }
 0x24c   : > { %v5122_v10 = vpop.eup %5121  ;;  %3611 = vst.msk [vmem:[%s6306_s10 + $0x78] sm:$0xf] %vm3580_vm7, %v4110_v4  ;;  %v4108_v34 = vpack.c.bf16 %v3448_v27, %v3448_v27  ;;  %v3451_v45 = vmul.f32 %v5120_v42, %v6412_v44 }
 0x24d   : > { %v3449_v26 = vmul.f32 %v5122_v10, %v6415_v0 }
 0x24e   : > { %3609 = vst.msk [vmem:[%s6306_s10 + $0x70] sm:$0xf] %vm3580_vm7, %v4108_v34  ;;  %v4111_v1 = vpack.c.bf16 %v3451_v45, %v3451_v45 }
 0x24f   : > { %v4109_v47 = vpack.c.bf16 %v3449_v26, %v3449_v26 }
 0x250   : > { %3612 = vst.msk [vmem:[%s6306_s10 + $0x7c] sm:$0xf] %vm3580_vm7, %v4111_v1 }
 0x251   : > { %3610 = vst.msk [vmem:[%s6306_s10 + $0x74] sm:$0xf] %vm3580_vm7, %v4109_v47 }
 0x252 PF: > { %s13_s14 = sadd.s32 1, %s5152_s14   ;;  %s6554_s12 = smov %s5148_s13 }
 0x253   : > { %p10_p5 = scmp.ge.s32.totalorder %s13_s14, 4   ;;  %s6555_s13 = smov %s6557_s15 }
 0x255   :  { %12 = sbr.rel (!%p10_p5) target bundleno = 2 (0x2), region = 76 }

</bundles_post_ra>
